<compile_context>
chip_gen: v7x
topology: tpu7x:2x2x1
jax: 0.10.0
libtpu: 0.0.40
codegen_flags: <defaults>
</compile_context>

<pallas_src>
import functools
import math

import numpy as np
import jax
import jax.numpy as jnp
from jax import lax
from jax.experimental import pallas as pl
from jax.experimental.pallas import tpu as pltpu


# ----------------------------------------------------------------------------
# Config (small, consistent with the module's forward)
# ----------------------------------------------------------------------------
SEQ_LEN = 128
PATCH_SIZE = 16
IN_CHANS = 4
EMBED_DIM = 32
ENC_DEPTH = 2
ENC_HEADS = 4
DEC_EMBED_DIM = 32
DEC_DEPTH = 2
DEC_HEADS = 4
MLP_RATIO = 4.0
NUM_PATCHES = SEQ_LEN // PATCH_SIZE
MASK_RATIO = 0.75
LN_EPS = 1e-5


# ----------------------------------------------------------------------------
# In-kernel helpers
# ----------------------------------------------------------------------------
def _ln_rows(x, g, b):
    """LayerNorm over last dim; x:[M,D], g,b:[1,D] (f32 math, eps=1e-5)."""
    mean = jnp.mean(x, axis=-1, keepdims=True)
    var = jnp.mean((x - mean) ** 2, axis=-1, keepdims=True)
    return (x - mean) * lax.rsqrt(var + LN_EPS) * g + b


def _block_diag_bias(m, batch, seqlen):
    """Additive bias [M,M]: 0 within a sample's S x S block, -1e9 across
    samples, so attention on the flattened [B*S, D] slab equals per-sample
    attention exactly."""
    r = lax.broadcasted_iota(jnp.int32, (m, m), 0)
    c = lax.broadcasted_iota(jnp.int32, (m, m), 1)

    def block_pred(b):
        lo = b * seqlen
        hi = lo + seqlen
        return (r >= lo) & (r < hi) & (c >= lo) & (c < hi)

    same = block_pred(0)
    for b in range(1, batch):
        same = jnp.logical_or(same, block_pred(b))
    return jnp.where(same, 0.0, -1e9).astype(jnp.float32)


def _tx_layer_stack(xs, wqkv_ref, bqkv_ref, wo_ref, bo_ref, ln1_ref,
                    w1_ref, b1_ref, w2_ref, b2_ref, ln2_ref,
                    *, nlayers, nheads, batch, seqlen):
    """Runs `nlayers` post-norm TransformerEncoderLayers (ReLU MLP, eval mode)
    on a flattened [B*S, D] slab that never leaves VMEM/vregs."""
    m, d = xs.shape
    dh = d // nheads
    scale = 1.0 / math.sqrt(dh)
    bias = _block_diag_bias(m, batch, seqlen)

    for l in range(nlayers):  # static unroll (depth is small)
        wqkv = wqkv_ref[l]                          # [3, D, D]
        bqkv = bqkv_ref[l]                          # [3, 1, D]
        q = jnp.dot(xs, wqkv[0], preferred_element_type=jnp.float32) + bqkv[0]
        k = jnp.dot(xs, wqkv[1], preferred_element_type=jnp.float32) + bqkv[1]
        v = jnp.dot(xs, wqkv[2], preferred_element_type=jnp.float32) + bqkv[2]

        # per-head attention on the flattened slab; single out-proj at the end
        heads = []
        for hh in range(nheads):
            lo = hh * dh
            qh = q[:, lo:lo + dh]
            kh = k[:, lo:lo + dh]
            vh = v[:, lo:lo + dh]
            s = lax.dot_general(qh, kh, (((1,), (1,)), ((), ())),
                                preferred_element_type=jnp.float32) * scale + bias
            s = s - jnp.max(s, axis=-1, keepdims=True)
            p = jnp.exp(s)
            p = p / jnp.sum(p, axis=-1, keepdims=True)   # exact division
            heads.append(jnp.dot(p, vh, preferred_element_type=jnp.float32))
        attn = jnp.dot(jnp.concatenate(heads, axis=-1), wo_ref[l],
                       preferred_element_type=jnp.float32) + bo_ref[l]

        # residual + LN1 (post-norm)
        ln1 = ln1_ref[l]                            # [2, 1, D]
        y = _ln_rows(xs + attn, ln1[0], ln1[1])

        # MLP (ReLU) + residual + LN2
        h1 = jnp.maximum(
            jnp.dot(y, w1_ref[l], preferred_element_type=jnp.float32) + b1_ref[l],
            0.0)
        h2 = jnp.dot(h1, w2_ref[l], preferred_element_type=jnp.float32) + b2_ref[l]
        ln2 = ln2_ref[l]
        xs = _ln_rows(y + h2, ln2[0], ln2[1])
    return xs


# ----------------------------------------------------------------------------
# Pallas kernels (all single-invocation, full-array VMEM blocks)
# ----------------------------------------------------------------------------
def _patch_embed_kernel(xp_ref, w_ref, b_ref, pos_ref, o_ref, *, batch):
    """Conv1d(stride=kernel) as a lane-dense matmul, fused with pos-embed add."""
    y = jnp.dot(xp_ref[...], w_ref[...],
                preferred_element_type=jnp.float32) + b_ref[...]
    o_ref[...] = y + jnp.concatenate([pos_ref[...]] * batch, axis=0)


def _encoder_kernel(x_ref, wqkv_ref, bqkv_ref, wo_ref, bo_ref, ln1_ref,
                    w1_ref, b1_ref, w2_ref, b2_ref, ln2_ref,
                    wde_ref, bde_ref, o_ref,
                    *, nlayers, nheads, batch, seqlen):
    """All encoder layers + decoder_embed linear, one kernel."""
    xs = _tx_layer_stack(x_ref[...], wqkv_ref, bqkv_ref, wo_ref, bo_ref, ln1_ref,
                         w1_ref, b1_ref, w2_ref, b2_ref, ln2_ref,
                         nlayers=nlayers, nheads=nheads,
                         batch=batch, seqlen=seqlen)
    o_ref[...] = jnp.dot(xs, wde_ref[...],
                         preferred_element_type=jnp.float32) + bde_ref[...]


def _decoder_kernel(x_ref, wqkv_ref, bqkv_ref, wo_ref, bo_ref, ln1_ref,
                    w1_ref, b1_ref, w2_ref, b2_ref, ln2_ref,
                    wpred_ref, bpred_ref, target_ref, maskcol_ref,
                    pred_ref, loss_ref,
                    *, nlayers, nheads, batch, seqlen):
    """All decoder layers + extra residual + decoder_pred + masked MSE loss."""
    x0 = x_ref[...]                                 # decoder_input, [B*S, D]
    xs = _tx_layer_stack(x0, wqkv_ref, bqkv_ref, wo_ref, bo_ref, ln1_ref,
                         w1_ref, b1_ref, w2_ref, b2_ref, ln2_ref,
                         nlayers=nlayers, nheads=nheads,
                         batch=batch, seqlen=seqlen)
    xs = xs + x0                                    # x = decoder(x) + decoder_input

    # drop the cls row of every sample -> [B*(S-1), D] patch rows
    vis = jnp.concatenate(
        [xs[b * seqlen + 1:(b + 1) * seqlen, :] for b in range(batch)], axis=0)

    pred = jnp.dot(vis, wpred_ref[...],
                   preferred_element_type=jnp.float32) + bpred_ref[...]
    pred_ref[...] = pred                            # [B*h, P*C]

    d = pred - target_ref[...]
    msk = maskcol_ref[...]                          # [B*h, 1]
    num = jnp.sum(d * d * msk) * (1.0 / pred.shape[-1])   # sum_b,h mask*mean_d(..)
    den = jnp.sum(msk)
    loss_ref[0, 0] = num / den                      # SMEM scalar output


# ----------------------------------------------------------------------------
# Wrappers
# ----------------------------------------------------------------------------
def patch_embed_pallas(xp, w, b, pos, *, batch):
    m = xp.shape[0]
    e = w.shape[1]
    kern = functools.partial(_patch_embed_kernel, batch=batch)
    return pl.pallas_call(
        kern, out_shape=jax.ShapeDtypeStruct((m, e), jnp.float32),
    )(xp, w, b, pos)


def encoder_stack_pallas(x_flat, enc, wde, bde, *, batch, seqlen):
    m = x_flat.shape[0]
    ddec = wde.shape[1]
    kern = functools.partial(_encoder_kernel, nlayers=ENC_DEPTH, nheads=ENC_HEADS,
                             batch=batch, seqlen=seqlen)
    return pl.pallas_call(
        kern, out_shape=jax.ShapeDtypeStruct((m, ddec), jnp.float32),
    )(x_flat, enc["wqkv"], enc["bqkv"], enc["wo"], enc["bo"], enc["ln1"],
      enc["w1"], enc["b1"], enc["w2"], enc["b2"], enc["ln2"], wde, bde)


def decoder_stack_pallas(x_flat, dec, wpred, bpred, target, maskcol,
                         *, batch, seqlen):
    bh, pc = target.shape
    kern = functools.partial(_decoder_kernel, nlayers=DEC_DEPTH, nheads=DEC_HEADS,
                             batch=batch, seqlen=seqlen)
    n_in = 15
    return pl.pallas_call(
        kern,
        out_shape=(jax.ShapeDtypeStruct((bh, pc), jnp.float32),   # pred
                   jax.ShapeDtypeStruct((1, 1), jnp.float32)),    # loss scalar
        in_specs=[pl.BlockSpec(memory_space=pltpu.MemorySpace.VMEM)] * n_in,
        out_specs=(pl.BlockSpec(memory_space=pltpu.MemorySpace.VMEM),
                   pl.BlockSpec(memory_space=pltpu.MemorySpace.SMEM)),
    )(x_flat, dec["wqkv"], dec["bqkv"], dec["wo"], dec["bo"], dec["ln1"],
      dec["w1"], dec["b1"], dec["w2"], dec["b2"], dec["ln2"],
      wpred, bpred, target, maskcol)


# ----------------------------------------------------------------------------
# Parameter init (deterministic; weights pre-transposed and stacked per layer)
# ----------------------------------------------------------------------------
def get_1d_sincos_pos_embed(embed_dim, length, cls_token=False):
    grid = np.arange(length, dtype=np.float64)
    half = embed_dim // 2
    omega = np.arange(half, dtype=np.float64) / half
    omega = 1.0 / 10000 ** omega
    out = np.einsum("m,d->md", grid, omega)
    emb = np.concatenate([np.sin(out), np.cos(out)], axis=1)
    if cls_token:
        emb = np.concatenate([np.zeros([1, embed_dim]), emb], axis=0)
    return jnp.asarray(emb, dtype=jnp.float32)[None]


def _xavier(key, shape, fan_in, fan_out):
    bound = math.sqrt(6.0 / (fan_in + fan_out))
    return jax.random.uniform(key, shape, minval=-bound, maxval=bound,
                              dtype=jnp.float32)


def init_layer_stack(key, depth, d, dff):
    wqkv, wo, w1, w2 = [], [], [], []
    for kl in jax.random.split(key, depth):
        kq, ko, k1, k2 = jax.random.split(kl, 4)
        wqkv.append(jnp.stack([_xavier(kk, (d, d), d, d)
                               for kk in jax.random.split(kq, 3)]))
        wo.append(_xavier(ko, (d, d), d, d))
        w1.append(_xavier(k1, (d, dff), d, dff))
        w2.append(_xavier(k2, (dff, d), dff, d))
    ones = jnp.ones((depth, 1, d), jnp.float32)
    zeros = jnp.zeros((depth, 1, d), jnp.float32)
    return dict(
        wqkv=jnp.stack(wqkv),                               # [L,3,D,D]  (x @ W)
        bqkv=jnp.zeros((depth, 3, 1, d), jnp.float32),
        wo=jnp.stack(wo),                                   # [L,D,D]
        bo=jnp.zeros((depth, 1, d), jnp.float32),
        ln1=jnp.stack([ones, zeros], axis=1),               # [L,2,1,D] (w, b)
        w1=jnp.stack(w1), b1=jnp.zeros((depth, 1, dff), jnp.float32),
        w2=jnp.stack(w2), b2=jnp.zeros((depth, 1, d), jnp.float32),
        ln2=jnp.stack([ones, zeros], axis=1),
    )


def init_params(key):
    ks = jax.random.split(key, 8)
    enc_ff = int(EMBED_DIM * MLP_RATIO)
    dec_ff = int(DEC_EMBED_DIM * MLP_RATIO)
    proj_w = 0.02 * jax.random.normal(ks[0], (EMBED_DIM, IN_CHANS, PATCH_SIZE),
                                      dtype=jnp.float32)
    return dict(
        # conv-as-matmul weight, flattened (c,p) and pre-transposed -> [C*P, E]
        proj_w_flat=proj_w.reshape(EMBED_DIM, IN_CHANS * PATCH_SIZE).T,
        proj_b=jnp.zeros((1, EMBED_DIM), jnp.float32),
        cls_token=0.02 * jax.random.normal(ks[1], (1, 1, EMBED_DIM), dtype=jnp.float32),
        pos_embed=get_1d_sincos_pos_embed(EMBED_DIM, NUM_PATCHES, cls_token=True),
        enc=init_layer_stack(ks[2], ENC_DEPTH, EMBED_DIM, enc_ff),
        dec_embed_w=_xavier(ks[3], (EMBED_DIM, DEC_EMBED_DIM), EMBED_DIM, DEC_EMBED_DIM),
        dec_embed_b=jnp.zeros((1, DEC_EMBED_DIM), jnp.float32),
        mask_token=0.02 * jax.random.normal(ks[4], (1, 1, DEC_EMBED_DIM), dtype=jnp.float32),
        dec_pos_embed=get_1d_sincos_pos_embed(DEC_EMBED_DIM, NUM_PATCHES, cls_token=True),
        dec=init_layer_stack(ks[5], DEC_DEPTH, DEC_EMBED_DIM, dec_ff),
        pred_w=_xavier(ks[6], (DEC_EMBED_DIM, PATCH_SIZE * IN_CHANS),
                       DEC_EMBED_DIM, PATCH_SIZE * IN_CHANS),
        pred_b=jnp.zeros((1, PATCH_SIZE * IN_CHANS), jnp.float32),
    )


# ----------------------------------------------------------------------------
# Forward (MaskedAutoencoderViT.forward == forward_loss), jit-compiled
# ----------------------------------------------------------------------------
def random_masking2(x, mask_ratio, key):
    B, L, D = x.shape
    len_keep = int(L * (1 - mask_ratio))
    noise = jax.random.uniform(key, (B, L))
    ids_shuffle = jnp.argsort(noise, axis=1)
    ids_restore = jnp.argsort(ids_shuffle, axis=1)
    ids_keep = ids_shuffle[:, :len_keep]
    x_masked = jnp.take_along_axis(
        x, jnp.broadcast_to(ids_keep[:, :, None], (B, len_keep, D)), axis=1)
    mask = jnp.zeros((B, L), jnp.float32)
    ids_mask = ids_shuffle[:, len_keep:]
    bidx = jnp.arange(B)[:, None]
    mask = mask.at[bidx, ids_mask].set(1.0)
    mask = jnp.take_along_axis(mask, ids_restore, axis=1)
    return x_masked, mask, ids_restore


@functools.partial(jax.jit, static_argnames=("mask_ratio",))
def mae_forward(params, series, rng_key, mask_ratio=MASK_RATIO):
    B, C, L = series.shape
    P = PATCH_SIZE
    h = L // P
    E = EMBED_DIM
    Dd = DEC_EMBED_DIM

    # --- patch embed (Conv1d stride=kernel == one matmul) fused with pos add ---
    xp = series.reshape(B, C, h, P).transpose(0, 2, 1, 3).reshape(B * h, C * P)
    pos_patch = params["pos_embed"][0, 1:, :]                     # [h, E]
    x = patch_embed_pallas(xp, params["proj_w_flat"], params["proj_b"],
                           pos_patch, batch=B).reshape(B, h, E)

    # --- random masking (argsort / gather / scatter stays in plain JAX) ---
    x, mask, ids_restore = random_masking2(x, mask_ratio, rng_key)

    # --- cls token + fused encoder stack (decoder_embed folded in) ---
    cls = params["cls_token"] + params["pos_embed"][:, :1, :]
    x = jnp.concatenate([jnp.broadcast_to(cls, (B, 1, E)), x], axis=1)
    S_enc = x.shape[1]
    x_dec = encoder_stack_pallas(x.reshape(B * S_enc, E), params["enc"],
                                 params["dec_embed_w"], params["dec_embed_b"],
                                 batch=B, seqlen=S_enc).reshape(B, S_enc, Dd)

    # --- unshuffle with mask tokens (gather stays in plain JAX) ---
    n_mask = ids_restore.shape[1] + 1 - x_dec.shape[1]
    mask_tokens = jnp.broadcast_to(params["mask_token"], (B, n_mask, Dd))
    x_ = jnp.concatenate([x_dec[:, 1:, :], mask_tokens], axis=1)
    x_ = jnp.take_along_axis(
        x_, jnp.broadcast_to(ids_restore[:, :, None], (B, h, Dd)), axis=1)
    decoder_input = (jnp.concatenate([x_dec[:, :1, :], x_], axis=1)
                     + params["dec_pos_embed"])
    S_dec = decoder_input.shape[1]

    # --- patchify target: [B,C,L] -> [B*h, P*C] with (p, c) flatten order ---
    target = series.reshape(B, C, h, P).transpose(0, 2, 3, 1).reshape(B * h, P * C)

    # --- fused decoder stack + extra residual + decoder_pred + masked MSE ---
    pred_flat, loss11 = decoder_stack_pallas(
        decoder_input.reshape(B * S_dec, Dd), params["dec"],
        params["pred_w"], params["pred_b"], target, mask.reshape(B * h, 1),
        batch=B, seqlen=S_dec)

    pred = pred_flat.reshape(B, h, P * C)
    return loss11[0, 0], pred, mask


# ----------------------------------------------------------------------------
if __name__ == "__main__":
    root = jax.random.PRNGKey(0)
    k_param, k_data, k_mask = jax.random.split(root, 3)

    params = init_params(k_param)
    series = jax.random.normal(k_data, (2, IN_CHANS, SEQ_LEN), dtype=jnp.float32)

    loss, pred, mask = mae_forward(params, series, k_mask, mask_ratio=MASK_RATIO)
    loss = jax.block_until_ready(loss)
    pred = jax.block_until_ready(pred)
    mask = jax.block_until_ready(mask)

    assert pred.shape == (2, NUM_PATCHES, PATCH_SIZE * IN_CHANS)
    assert mask.shape == (2, NUM_PATCHES)
    assert jnp.isfinite(loss)
    print("KERNEL_OK")
</pallas_src>

<mosaic_0001>
module attributes {stable_mosaic.version = 11 : i64} {
  func.func @_patch_embed_kernel(%arg0: memref<16x64xf32, #tpu.memory_space<vmem>>, %arg1: memref<64x32xf32, #tpu.memory_space<vmem>>, %arg2: memref<1x32xf32, #tpu.memory_space<vmem>>, %arg3: memref<8x32xf32, #tpu.memory_space<vmem>>, %arg4: memref<16x32xf32, #tpu.memory_space<vmem>>) attributes {dimension_semantics = [], scalar_prefetch = 0 : i64, scratch_operands = 0 : i64, tpu.core_type = #tpu.core_type<tc>} {
    %c0 = arith.constant 0 : index
    %c0_0 = arith.constant 0 : index
    %0 = vector.load %arg0[%c0, %c0_0] : memref<16x64xf32, #tpu.memory_space<vmem>>, vector<16x64xf32>
    %c0_1 = arith.constant 0 : index
    %c0_2 = arith.constant 0 : index
    %1 = vector.load %arg1[%c0_1, %c0_2] : memref<64x32xf32, #tpu.memory_space<vmem>>, vector<64x32xf32>
    %cst = arith.constant dense<0.000000e+00> : vector<16x32xf32>
    %2 = tpu.matmul %0, %1, %cst {dimension_numbers = #tpu.dot_dimension_numbers<[1], [0], [0], [1], [0, 0, 1, 1], [], []>} : vector<16x64xf32>, vector<64x32xf32>, vector<16x32xf32> -> vector<16x32xf32>
    %c0_3 = arith.constant 0 : index
    %c0_4 = arith.constant 0 : index
    %3 = vector.load %arg2[%c0_3, %c0_4] : memref<1x32xf32, #tpu.memory_space<vmem>>, vector<1x32xf32>
    %4 = vector.broadcast %3 : vector<1x32xf32> to vector<16x32xf32>
    %5 = arith.addf %2, %4 : vector<16x32xf32>
    %c0_5 = arith.constant 0 : index
    %c0_6 = arith.constant 0 : index
    %6 = vector.load %arg3[%c0_5, %c0_6] : memref<8x32xf32, #tpu.memory_space<vmem>>, vector<8x32xf32>
    %7 = tpu.concatenate %6, %6 in 0 : vector<8x32xf32>, vector<8x32xf32> -> vector<16x32xf32>
    %8 = arith.addf %5, %7 : vector<16x32xf32>
    %c0_7 = arith.constant 0 : index
    %c0_8 = arith.constant 0 : index
    %9 = vector.load %arg4[%c0_7, %c0_8] : memref<16x32xf32, #tpu.memory_space<vmem>>, vector<16x32xf32>
    tpu.vector_store %arg4[%c0_7, %c0_8], %8 {strides = array<i32>} : memref<16x32xf32, #tpu.memory_space<vmem>>, vector<16x32xf32>,
    return
  }
}

module attributes {stable_mosaic.version = 11 : i64} {
  func.func @_encoder_kernel(%arg0: memref<6x32xf32, #tpu.memory_space<vmem>>, %arg1: memref<2x3x32x32xf32, #tpu.memory_space<vmem>>, %arg2: memref<2x3x1x32xf32, #tpu.memory_space<vmem>>, %arg3: memref<2x32x32xf32, #tpu.memory_space<vmem>>, %arg4: memref<2x1x32xf32, #tpu.memory_space<vmem>>, %arg5: memref<2x2x1x32xf32, #tpu.memory_space<vmem>>, %arg6: memref<2x32x128xf32, #tpu.memory_space<vmem>>, %arg7: memref<2x1x128xf32, #tpu.memory_space<vmem>>, %arg8: memref<2x128x32xf32, #tpu.memory_space<vmem>>, %arg9: memref<2x1x32xf32, #tpu.memory_space<vmem>>, %arg10: memref<2x2x1x32xf32, #tpu.memory_space<vmem>>, %arg11: memref<32x32xf32, #tpu.memory_space<vmem>>, %arg12: memref<1x32xf32, #tpu.memory_space<vmem>>, %arg13: memref<6x32xf32, #tpu.memory_space<vmem>>) attributes {dimension_semantics = [], scalar_prefetch = 0 : i64, scratch_operands = 0 : i64, tpu.core_type = #tpu.core_type<tc>} {
    %c0 = arith.constant 0 : index
    %c0_0 = arith.constant 0 : index
    %0 = vector.load %arg0[%c0, %c0_0] : memref<6x32xf32, #tpu.memory_space<vmem>>, vector<6x32xf32>
    %1 = tpu.iota {dimensions = array<i32: 0>} : vector<6x6xi32>
    %2 = tpu.iota {dimensions = array<i32: 1>} : vector<6x6xi32>
    %c0_i32 = arith.constant 0 : i32
    %3 = vector.broadcast %c0_i32 : i32 to vector<6x6xi32>
    %4 = arith.cmpi sge, %1, %3 : vector<6x6xi32>
    %c3_i32 = arith.constant 3 : i32
    %5 = vector.broadcast %c3_i32 : i32 to vector<6x6xi32>
    %6 = arith.cmpi slt, %1, %5 : vector<6x6xi32>
    %7 = arith.andi %4, %6 : vector<6x6xi1>
    %c0_i32_1 = arith.constant 0 : i32
    %8 = vector.broadcast %c0_i32_1 : i32 to vector<6x6xi32>
    %9 = arith.cmpi sge, %2, %8 : vector<6x6xi32>
    %10 = arith.andi %7, %9 : vector<6x6xi1>
    %c3_i32_2 = arith.constant 3 : i32
    %11 = vector.broadcast %c3_i32_2 : i32 to vector<6x6xi32>
    %12 = arith.cmpi slt, %2, %11 : vector<6x6xi32>
    %13 = arith.andi %10, %12 : vector<6x6xi1>
    %c3_i32_3 = arith.constant 3 : i32
    %14 = vector.broadcast %c3_i32_3 : i32 to vector<6x6xi32>
    %15 = arith.cmpi sge, %1, %14 : vector<6x6xi32>
    %c6_i32 = arith.constant 6 : i32
    %16 = vector.broadcast %c6_i32 : i32 to vector<6x6xi32>
    %17 = arith.cmpi slt, %1, %16 : vector<6x6xi32>
    %18 = arith.andi %15, %17 : vector<6x6xi1>
    %c3_i32_4 = arith.constant 3 : i32
    %19 = vector.broadcast %c3_i32_4 : i32 to vector<6x6xi32>
    %20 = arith.cmpi sge, %2, %19 : vector<6x6xi32>
    %21 = arith.andi %18, %20 : vector<6x6xi1>
    %c6_i32_5 = arith.constant 6 : i32
    %22 = vector.broadcast %c6_i32_5 : i32 to vector<6x6xi32>
    %23 = arith.cmpi slt, %2, %22 : vector<6x6xi32>
    %24 = arith.andi %21, %23 : vector<6x6xi1>
    %25 = arith.ori %13, %24 : vector<6x6xi1>
    %cst = arith.constant 0.000000e+00 : f32
    %cst_6 = arith.constant -1.000000e+09 : f32
    %26 = vector.broadcast %cst : f32 to vector<6x6xf32>
    %27 = vector.broadcast %cst_6 : f32 to vector<6x6xf32>
    %28 = arith.select %25, %26, %27 : vector<6x6xi1>, vector<6x6xf32>
    %c0_7 = arith.constant 0 : index
    %c0_8 = arith.constant 0 : index
    %c0_9 = arith.constant 0 : index
    %c0_10 = arith.constant 0 : index
    %29 = vector.load %arg1[%c0_7, %c0_8, %c0_9, %c0_10] : memref<2x3x32x32xf32, #tpu.memory_space<vmem>>, vector<1x3x32x32xf32>
    %30 = vector.shape_cast %29 : vector<1x3x32x32xf32> to vector<3x32x32xf32>
    %c0_11 = arith.constant 0 : index
    %c0_12 = arith.constant 0 : index
    %c0_13 = arith.constant 0 : index
    %c0_14 = arith.constant 0 : index
    %31 = vector.load %arg2[%c0_11, %c0_12, %c0_13, %c0_14] : memref<2x3x1x32xf32, #tpu.memory_space<vmem>>, vector<1x3x1x32xf32>
    %32 = vector.shape_cast %31 : vector<1x3x1x32xf32> to vector<3x1x32xf32>
    %33 = vector.extract_strided_slice %30 {offsets = [0, 0, 0], sizes = [1, 32, 32], strides = [1, 1, 1]} : vector<3x32x32xf32> to vector<1x32x32xf32>
    %34 = vector.shape_cast %33 : vector<1x32x32xf32> to vector<32x32xf32>
    %cst_15 = arith.constant dense<0.000000e+00> : vector<6x32xf32>
    %35 = tpu.matmul %0, %34, %cst_15 {dimension_numbers = #tpu.dot_dimension_numbers<[1], [0], [0], [1], [0, 0, 1, 1], [], []>} : vector<6x32xf32>, vector<32x32xf32>, vector<6x32xf32> -> vector<6x32xf32>
    %36 = vector.extract_strided_slice %32 {offsets = [0, 0, 0], sizes = [1, 1, 32], strides = [1, 1, 1]} : vector<3x1x32xf32> to vector<1x1x32xf32>
    %37 = vector.shape_cast %36 : vector<1x1x32xf32> to vector<1x32xf32>
    %38 = vector.broadcast %37 : vector<1x32xf32> to vector<6x32xf32>
    %39 = arith.addf %35, %38 : vector<6x32xf32>
    %40 = vector.extract_strided_slice %30 {offsets = [1, 0, 0], sizes = [1, 32, 32], strides = [1, 1, 1]} : vector<3x32x32xf32> to vector<1x32x32xf32>
    %41 = vector.shape_cast %40 : vector<1x32x32xf32> to vector<32x32xf32>
    %cst_16 = arith.constant dense<0.000000e+00> : vector<6x32xf32>
    %42 = tpu.matmul %0, %41, %cst_16 {dimension_numbers = #tpu.dot_dimension_numbers<[1], [0], [0], [1], [0, 0, 1, 1], [], []>} : vector<6x32xf32>, vector<32x32xf32>, vector<6x32xf32> -> vector<6x32xf32>
    %43 = vector.extract_strided_slice %32 {offsets = [1, 0, 0], sizes = [1, 1, 32], strides = [1, 1, 1]} : vector<3x1x32xf32> to vector<1x1x32xf32>
    %44 = vector.shape_cast %43 : vector<1x1x32xf32> to vector<1x32xf32>
    %45 = vector.broadcast %44 : vector<1x32xf32> to vector<6x32xf32>
    %46 = arith.addf %42, %45 : vector<6x32xf32>
    %47 = vector.extract_strided_slice %30 {offsets = [2, 0, 0], sizes = [1, 32, 32], strides = [1, 1, 1]} : vector<3x32x32xf32> to vector<1x32x32xf32>
    %48 = vector.shape_cast %47 : vector<1x32x32xf32> to vector<32x32xf32>
    %cst_17 = arith.constant dense<0.000000e+00> : vector<6x32xf32>
    %49 = tpu.matmul %0, %48, %cst_17 {dimension_numbers = #tpu.dot_dimension_numbers<[1], [0], [0], [1], [0, 0, 1, 1], [], []>} : vector<6x32xf32>, vector<32x32xf32>, vector<6x32xf32> -> vector<6x32xf32>
    %50 = vector.extract_strided_slice %32 {offsets = [2, 0, 0], sizes = [1, 1, 32], strides = [1, 1, 1]} : vector<3x1x32xf32> to vector<1x1x32xf32>
    %51 = vector.shape_cast %50 : vector<1x1x32xf32> to vector<1x32xf32>
    %52 = vector.broadcast %51 : vector<1x32xf32> to vector<6x32xf32>
    %53 = arith.addf %49, %52 : vector<6x32xf32>
    %54 = vector.extract_strided_slice %39 {offsets = [0, 0], sizes = [6, 8], strides = [1, 1]} : vector<6x32xf32> to vector<6x8xf32>
    %55 = vector.extract_strided_slice %46 {offsets = [0, 0], sizes = [6, 8], strides = [1, 1]} : vector<6x32xf32> to vector<6x8xf32>
    %56 = vector.extract_strided_slice %53 {offsets = [0, 0], sizes = [6, 8], strides = [1, 1]} : vector<6x32xf32> to vector<6x8xf32>
    %cst_18 = arith.constant dense<0.000000e+00> : vector<6x6xf32>
    %57 = tpu.matmul %54, %55, %cst_18 {dimension_numbers = #tpu.dot_dimension_numbers<[1], [1], [0], [0], [0, 0, 1, 0], [], []>} : vector<6x8xf32>, vector<6x8xf32>, vector<6x6xf32> -> vector<6x6xf32>
    %cst_19 = arith.constant 0.353553385 : f32
    %58 = vector.broadcast %cst_19 : f32 to vector<6x6xf32>
    %59 = arith.mulf %57, %58 : vector<6x6xf32>
    %60 = arith.addf %59, %28 : vector<6x6xf32>
    %cst_20 = arith.constant dense<0xFF800000> : vector<6xf32>
    %61 = vector.multi_reduction <maximumf>, %60, %cst_20 [1] : vector<6x6xf32> to vector<6xf32>
    %62 = vector.shape_cast %61 : vector<6xf32> to vector<6x1xf32>
    %63 = vector.broadcast %62 : vector<6x1xf32> to vector<6x6xf32>
    %64 = arith.subf %60, %63 : vector<6x6xf32>
    %65 = math.exp %64 : vector<6x6xf32>
    %cst_21 = arith.constant dense<0.000000e+00> : vector<6xf32>
    %66 = vector.multi_reduction <add>, %65, %cst_21 [1] : vector<6x6xf32> to vector<6xf32>
    %67 = vector.shape_cast %66 : vector<6xf32> to vector<6x1xf32>
    %68 = vector.broadcast %67 : vector<6x1xf32> to vector<6x6xf32>
    %69 = arith.divf %65, %68 : vector<6x6xf32>
    %cst_22 = arith.constant dense<0.000000e+00> : vector<6x8xf32>
    %70 = tpu.matmul %69, %56, %cst_22 {dimension_numbers = #tpu.dot_dimension_numbers<[1], [0], [0], [1], [0, 0, 1, 1], [], []>} : vector<6x6xf32>, vector<6x8xf32>, vector<6x8xf32> -> vector<6x8xf32>
    %71 = vector.extract_strided_slice %39 {offsets = [0, 8], sizes = [6, 8], strides = [1, 1]} : vector<6x32xf32> to vector<6x8xf32>
    %72 = vector.extract_strided_slice %46 {offsets = [0, 8], sizes = [6, 8], strides = [1, 1]} : vector<6x32xf32> to vector<6x8xf32>
    %73 = vector.extract_strided_slice %53 {offsets = [0, 8], sizes = [6, 8], strides = [1, 1]} : vector<6x32xf32> to vector<6x8xf32>
    %cst_23 = arith.constant dense<0.000000e+00> : vector<6x6xf32>
    %74 = tpu.matmul %71, %72, %cst_23 {dimension_numbers = #tpu.dot_dimension_numbers<[1], [1], [0], [0], [0, 0, 1, 0], [], []>} : vector<6x8xf32>, vector<6x8xf32>, vector<6x6xf32> -> vector<6x6xf32>
    %cst_24 = arith.constant 0.353553385 : f32
    %75 = vector.broadcast %cst_24 : f32 to vector<6x6xf32>
    %76 = arith.mulf %74, %75 : vector<6x6xf32>
    %77 = arith.addf %76, %28 : vector<6x6xf32>
    %cst_25 = arith.constant dense<0xFF800000> : vector<6xf32>
    %78 = vector.multi_reduction <maximumf>, %77, %cst_25 [1] : vector<6x6xf32> to vector<6xf32>
    %79 = vector.shape_cast %78 : vector<6xf32> to vector<6x1xf32>
    %80 = vector.broadcast %79 : vector<6x1xf32> to vector<6x6xf32>
    %81 = arith.subf %77, %80 : vector<6x6xf32>
    %82 = math.exp %81 : vector<6x6xf32>
    %cst_26 = arith.constant dense<0.000000e+00> : vector<6xf32>
    %83 = vector.multi_reduction <add>, %82, %cst_26 [1] : vector<6x6xf32> to vector<6xf32>
    %84 = vector.shape_cast %83 : vector<6xf32> to vector<6x1xf32>
    %85 = vector.broadcast %84 : vector<6x1xf32> to vector<6x6xf32>
    %86 = arith.divf %82, %85 : vector<6x6xf32>
    %cst_27 = arith.constant dense<0.000000e+00> : vector<6x8xf32>
    %87 = tpu.matmul %86, %73, %cst_27 {dimension_numbers = #tpu.dot_dimension_numbers<[1], [0], [0], [1], [0, 0, 1, 1], [], []>} : vector<6x6xf32>, vector<6x8xf32>, vector<6x8xf32> -> vector<6x8xf32>
    %88 = vector.extract_strided_slice %39 {offsets = [0, 16], sizes = [6, 8], strides = [1, 1]} : vector<6x32xf32> to vector<6x8xf32>
    %89 = vector.extract_strided_slice %46 {offsets = [0, 16], sizes = [6, 8], strides = [1, 1]} : vector<6x32xf32> to vector<6x8xf32>
    %90 = vector.extract_strided_slice %53 {offsets = [0, 16], sizes = [6, 8], strides = [1, 1]} : vector<6x32xf32> to vector<6x8xf32>
    %cst_28 = arith.constant dense<0.000000e+00> : vector<6x6xf32>
    %91 = tpu.matmul %88, %89, %cst_28 {dimension_numbers = #tpu.dot_dimension_numbers<[1], [1], [0], [0], [0, 0, 1, 0], [], []>} : vector<6x8xf32>, vector<6x8xf32>, vector<6x6xf32> -> vector<6x6xf32>
    %cst_29 = arith.constant 0.353553385 : f32
    %92 = vector.broadcast %cst_29 : f32 to vector<6x6xf32>
    %93 = arith.mulf %91, %92 : vector<6x6xf32>
    %94 = arith.addf %93, %28 : vector<6x6xf32>
    %cst_30 = arith.constant dense<0xFF800000> : vector<6xf32>
    %95 = vector.multi_reduction <maximumf>, %94, %cst_30 [1] : vector<6x6xf32> to vector<6xf32>
    %96 = vector.shape_cast %95 : vector<6xf32> to vector<6x1xf32>
    %97 = vector.broadcast %96 : vector<6x1xf32> to vector<6x6xf32>
    %98 = arith.subf %94, %97 : vector<6x6xf32>
    %99 = math.exp %98 : vector<6x6xf32>
    %cst_31 = arith.constant dense<0.000000e+00> : vector<6xf32>
    %100 = vector.multi_reduction <add>, %99, %cst_31 [1] : vector<6x6xf32> to vector<6xf32>
    %101 = vector.shape_cast %100 : vector<6xf32> to vector<6x1xf32>
    %102 = vector.broadcast %101 : vector<6x1xf32> to vector<6x6xf32>
    %103 = arith.divf %99, %102 : vector<6x6xf32>
    %cst_32 = arith.constant dense<0.000000e+00> : vector<6x8xf32>
    %104 = tpu.matmul %103, %90, %cst_32 {dimension_numbers = #tpu.dot_dimension_numbers<[1], [0], [0], [1], [0, 0, 1, 1], [], []>} : vector<6x6xf32>, vector<6x8xf32>, vector<6x8xf32> -> vector<6x8xf32>
    %105 = vector.extract_strided_slice %39 {offsets = [0, 24], sizes = [6, 8], strides = [1, 1]} : vector<6x32xf32> to vector<6x8xf32>
    %106 = vector.extract_strided_slice %46 {offsets = [0, 24], sizes = [6, 8], strides = [1, 1]} : vector<6x32xf32> to vector<6x8xf32>
    %107 = vector.extract_strided_slice %53 {offsets = [0, 24], sizes = [6, 8], strides = [1, 1]} : vector<6x32xf32> to vector<6x8xf32>
    %cst_33 = arith.constant dense<0.000000e+00> : vector<6x6xf32>
    %108 = tpu.matmul %105, %106, %cst_33 {dimension_numbers = #tpu.dot_dimension_numbers<[1], [1], [0], [0], [0, 0, 1, 0], [], []>} : vector<6x8xf32>, vector<6x8xf32>, vector<6x6xf32> -> vector<6x6xf32>
    %cst_34 = arith.constant 0.353553385 : f32
    %109 = vector.broadcast %cst_34 : f32 to vector<6x6xf32>
    %110 = arith.mulf %108, %109 : vector<6x6xf32>
    %111 = arith.addf %110, %28 : vector<6x6xf32>
    %cst_35 = arith.constant dense<0xFF800000> : vector<6xf32>
    %112 = vector.multi_reduction <maximumf>, %111, %cst_35 [1] : vector<6x6xf32> to vector<6xf32>
    %113 = vector.shape_cast %112 : vector<6xf32> to vector<6x1xf32>
    %114 = vector.broadcast %113 : vector<6x1xf32> to vector<6x6xf32>
    %115 = arith.subf %111, %114 : vector<6x6xf32>
    %116 = math.exp %115 : vector<6x6xf32>
    %cst_36 = arith.constant dense<0.000000e+00> : vector<6xf32>
    %117 = vector.multi_reduction <add>, %116, %cst_36 [1] : vector<6x6xf32> to vector<6xf32>
    %118 = vector.shape_cast %117 : vector<6xf32> to vector<6x1xf32>
    %119 = vector.broadcast %118 : vector<6x1xf32> to vector<6x6xf32>
    %120 = arith.divf %116, %119 : vector<6x6xf32>
    %cst_37 = arith.constant dense<0.000000e+00> : vector<6x8xf32>
    %121 = tpu.matmul %120, %107, %cst_37 {dimension_numbers = #tpu.dot_dimension_numbers<[1], [0], [0], [1], [0, 0, 1, 1], [], []>} : vector<6x6xf32>, vector<6x8xf32>, vector<6x8xf32> -> vector<6x8xf32>
    %122 = tpu.concatenate %70, %87, %104, %121 in 1 : vector<6x8xf32>, vector<6x8xf32>, vector<6x8xf32>, vector<6x8xf32> -> vector<6x32xf32>
    %c0_38 = arith.constant 0 : index
    %c0_39 = arith.constant 0 : index
    %c0_40 = arith.constant 0 : index
    %123 = vector.load %arg3[%c0_38, %c0_39, %c0_40] : memref<2x32x32xf32, #tpu.memory_space<vmem>>, vector<1x32x32xf32>
    %124 = vector.shape_cast %123 : vector<1x32x32xf32> to vector<32x32xf32>
    %cst_41 = arith.constant dense<0.000000e+00> : vector<6x32xf32>
    %125 = tpu.matmul %122, %124, %cst_41 {dimension_numbers = #tpu.dot_dimension_numbers<[1], [0], [0], [1], [0, 0, 1, 1], [], []>} : vector<6x32xf32>, vector<32x32xf32>, vector<6x32xf32> -> vector<6x32xf32>
    %c0_42 = arith.constant 0 : index
    %c0_43 = arith.constant 0 : index
    %c0_44 = arith.constant 0 : index
    %126 = vector.load %arg4[%c0_42, %c0_43, %c0_44] : memref<2x1x32xf32, #tpu.memory_space<vmem>>, vector<1x1x32xf32>
    %127 = vector.shape_cast %126 : vector<1x1x32xf32> to vector<1x32xf32>
    %128 = vector.broadcast %127 : vector<1x32xf32> to vector<6x32xf32>
    %129 = arith.addf %125, %128 : vector<6x32xf32>
    %c0_45 = arith.constant 0 : index
    %c0_46 = arith.constant 0 : index
    %c0_47 = arith.constant 0 : index
    %c0_48 = arith.constant 0 : index
    %130 = vector.load %arg5[%c0_45, %c0_46, %c0_47, %c0_48] : memref<2x2x1x32xf32, #tpu.memory_space<vmem>>, vector<1x2x1x32xf32>
    %131 = vector.shape_cast %130 : vector<1x2x1x32xf32> to vector<2x1x32xf32>
    %132 = arith.addf %0, %129 : vector<6x32xf32>
    %133 = vector.extract_strided_slice %131 {offsets = [0, 0, 0], sizes = [1, 1, 32], strides = [1, 1, 1]} : vector<2x1x32xf32> to vector<1x1x32xf32>
    %134 = vector.shape_cast %133 : vector<1x1x32xf32> to vector<1x32xf32>
    %135 = vector.extract_strided_slice %131 {offsets = [1, 0, 0], sizes = [1, 1, 32], strides = [1, 1, 1]} : vector<2x1x32xf32> to vector<1x1x32xf32>
    %136 = vector.shape_cast %135 : vector<1x1x32xf32> to vector<1x32xf32>
    %cst_49 = arith.constant dense<0.000000e+00> : vector<6xf32>
    %137 = vector.multi_reduction <add>, %132, %cst_49 [1] : vector<6x32xf32> to vector<6xf32>
    %138 = vector.shape_cast %137 : vector<6xf32> to vector<6x1xf32>
    %cst_50 = arith.constant 3.200000e+01 : f32
    %139 = vector.broadcast %cst_50 : f32 to vector<6x1xf32>
    %140 = arith.divf %138, %139 : vector<6x1xf32>
    %141 = vector.broadcast %140 : vector<6x1xf32> to vector<6x32xf32>
    %142 = arith.subf %132, %141 : vector<6x32xf32>
    %143 = arith.mulf %142, %142 : vector<6x32xf32>
    %cst_51 = arith.constant dense<0.000000e+00> : vector<6xf32>
    %144 = vector.multi_reduction <add>, %143, %cst_51 [1] : vector<6x32xf32> to vector<6xf32>
    %145 = vector.shape_cast %144 : vector<6xf32> to vector<6x1xf32>
    %cst_52 = arith.constant 3.200000e+01 : f32
    %146 = vector.broadcast %cst_52 : f32 to vector<6x1xf32>
    %147 = arith.divf %145, %146 : vector<6x1xf32>
    %148 = vector.broadcast %140 : vector<6x1xf32> to vector<6x32xf32>
    %149 = arith.subf %132, %148 : vector<6x32xf32>
    %cst_53 = arith.constant 9.99999974E-6 : f32
    %150 = vector.broadcast %cst_53 : f32 to vector<6x1xf32>
    %151 = arith.addf %147, %150 : vector<6x1xf32>
    %152 = math.rsqrt %151 : vector<6x1xf32>
    %153 = vector.broadcast %152 : vector<6x1xf32> to vector<6x32xf32>
    %154 = arith.mulf %149, %153 : vector<6x32xf32>
    %155 = vector.broadcast %134 : vector<1x32xf32> to vector<6x32xf32>
    %156 = arith.mulf %154, %155 : vector<6x32xf32>
    %157 = vector.broadcast %136 : vector<1x32xf32> to vector<6x32xf32>
    %158 = arith.addf %156, %157 : vector<6x32xf32>
    %c0_54 = arith.constant 0 : index
    %c0_55 = arith.constant 0 : index
    %c0_56 = arith.constant 0 : index
    %159 = vector.load %arg6[%c0_54, %c0_55, %c0_56] : memref<2x32x128xf32, #tpu.memory_space<vmem>>, vector<1x32x128xf32>
    %160 = vector.shape_cast %159 : vector<1x32x128xf32> to vector<32x128xf32>
    %cst_57 = arith.constant dense<0.000000e+00> : vector<6x128xf32>
    %161 = tpu.matmul %158, %160, %cst_57 {dimension_numbers = #tpu.dot_dimension_numbers<[1], [0], [0], [1], [0, 0, 1, 1], [], []>} : vector<6x32xf32>, vector<32x128xf32>, vector<6x128xf32> -> vector<6x128xf32>
    %c0_58 = arith.constant 0 : index
    %c0_59 = arith.constant 0 : index
    %c0_60 = arith.constant 0 : index
    %162 = vector.load %arg7[%c0_58, %c0_59, %c0_60] : memref<2x1x128xf32, #tpu.memory_space<vmem>>, vector<1x1x128xf32>
    %163 = vector.shape_cast %162 : vector<1x1x128xf32> to vector<1x128xf32>
    %164 = vector.broadcast %163 : vector<1x128xf32> to vector<6x128xf32>
    %165 = arith.addf %161, %164 : vector<6x128xf32>
    %cst_61 = arith.constant 0.000000e+00 : f32
    %166 = vector.broadcast %cst_61 : f32 to vector<6x128xf32>
    %167 = arith.maximumf %165, %166 : vector<6x128xf32>
    %c0_62 = arith.constant 0 : index
    %c0_63 = arith.constant 0 : index
    %c0_64 = arith.constant 0 : index
    %168 = vector.load %arg8[%c0_62, %c0_63, %c0_64] : memref<2x128x32xf32, #tpu.memory_space<vmem>>, vector<1x128x32xf32>
    %169 = vector.shape_cast %168 : vector<1x128x32xf32> to vector<128x32xf32>
    %cst_65 = arith.constant dense<0.000000e+00> : vector<6x32xf32>
    %170 = tpu.matmul %167, %169, %cst_65 {dimension_numbers = #tpu.dot_dimension_numbers<[1], [0], [0], [1], [0, 0, 1, 1], [], []>} : vector<6x128xf32>, vector<128x32xf32>, vector<6x32xf32> -> vector<6x32xf32>
    %c0_66 = arith.constant 0 : index
    %c0_67 = arith.constant 0 : index
    %c0_68 = arith.constant 0 : index
    %171 = vector.load %arg9[%c0_66, %c0_67, %c0_68] : memref<2x1x32xf32, #tpu.memory_space<vmem>>, vector<1x1x32xf32>
    %172 = vector.shape_cast %171 : vector<1x1x32xf32> to vector<1x32xf32>
    %173 = vector.broadcast %172 : vector<1x32xf32> to vector<6x32xf32>
    %174 = arith.addf %170, %173 : vector<6x32xf32>
    %c0_69 = arith.constant 0 : index
    %c0_70 = arith.constant 0 : index
    %c0_71 = arith.constant 0 : index
    %c0_72 = arith.constant 0 : index
    %175 = vector.load %arg10[%c0_69, %c0_70, %c0_71, %c0_72] : memref<2x2x1x32xf32, #tpu.memory_space<vmem>>, vector<1x2x1x32xf32>
    %176 = vector.shape_cast %175 : vector<1x2x1x32xf32> to vector<2x1x32xf32>
    %177 = arith.addf %158, %174 : vector<6x32xf32>
    %178 = vector.extract_strided_slice %176 {offsets = [0, 0, 0], sizes = [1, 1, 32], strides = [1, 1, 1]} : vector<2x1x32xf32> to vector<1x1x32xf32>
    %179 = vector.shape_cast %178 : vector<1x1x32xf32> to vector<1x32xf32>
    %180 = vector.extract_strided_slice %176 {offsets = [1, 0, 0], sizes = [1, 1, 32], strides = [1, 1, 1]} : vector<2x1x32xf32> to vector<1x1x32xf32>
    %181 = vector.shape_cast %180 : vector<1x1x32xf32> to vector<1x32xf32>
    %cst_73 = arith.constant dense<0.000000e+00> : vector<6xf32>
    %182 = vector.multi_reduction <add>, %177, %cst_73 [1] : vector<6x32xf32> to vector<6xf32>
    %183 = vector.shape_cast %182 : vector<6xf32> to vector<6x1xf32>
    %cst_74 = arith.constant 3.200000e+01 : f32
    %184 = vector.broadcast %cst_74 : f32 to vector<6x1xf32>
    %185 = arith.divf %183, %184 : vector<6x1xf32>
    %186 = vector.broadcast %185 : vector<6x1xf32> to vector<6x32xf32>
    %187 = arith.subf %177, %186 : vector<6x32xf32>
    %188 = arith.mulf %187, %187 : vector<6x32xf32>
    %cst_75 = arith.constant dense<0.000000e+00> : vector<6xf32>
    %189 = vector.multi_reduction <add>, %188, %cst_75 [1] : vector<6x32xf32> to vector<6xf32>
    %190 = vector.shape_cast %189 : vector<6xf32> to vector<6x1xf32>
    %cst_76 = arith.constant 3.200000e+01 : f32
    %191 = vector.broadcast %cst_76 : f32 to vector<6x1xf32>
    %192 = arith.divf %190, %191 : vector<6x1xf32>
    %193 = vector.broadcast %185 : vector<6x1xf32> to vector<6x32xf32>
    %194 = arith.subf %177, %193 : vector<6x32xf32>
    %cst_77 = arith.constant 9.99999974E-6 : f32
    %195 = vector.broadcast %cst_77 : f32 to vector<6x1xf32>
    %196 = arith.addf %192, %195 : vector<6x1xf32>
    %197 = math.rsqrt %196 : vector<6x1xf32>
    %198 = vector.broadcast %197 : vector<6x1xf32> to vector<6x32xf32>
    %199 = arith.mulf %194, %198 : vector<6x32xf32>
    %200 = vector.broadcast %179 : vector<1x32xf32> to vector<6x32xf32>
    %201 = arith.mulf %199, %200 : vector<6x32xf32>
    %202 = vector.broadcast %181 : vector<1x32xf32> to vector<6x32xf32>
    %203 = arith.addf %201, %202 : vector<6x32xf32>
    %c1 = arith.constant 1 : index
    %c0_78 = arith.constant 0 : index
    %c0_79 = arith.constant 0 : index
    %c0_80 = arith.constant 0 : index
    %204 = vector.load %arg1[%c1, %c0_78, %c0_79, %c0_80] : memref<2x3x32x32xf32, #tpu.memory_space<vmem>>, vector<1x3x32x32xf32>
    %205 = vector.shape_cast %204 : vector<1x3x32x32xf32> to vector<3x32x32xf32>
    %c1_81 = arith.constant 1 : index
    %c0_82 = arith.constant 0 : index
    %c0_83 = arith.constant 0 : index
    %c0_84 = arith.constant 0 : index
    %206 = vector.load %arg2[%c1_81, %c0_82, %c0_83, %c0_84] : memref<2x3x1x32xf32, #tpu.memory_space<vmem>>, vector<1x3x1x32xf32>
    %207 = vector.shape_cast %206 : vector<1x3x1x32xf32> to vector<3x1x32xf32>
    %208 = vector.extract_strided_slice %205 {offsets = [0, 0, 0], sizes = [1, 32, 32], strides = [1, 1, 1]} : vector<3x32x32xf32> to vector<1x32x32xf32>
    %209 = vector.shape_cast %208 : vector<1x32x32xf32> to vector<32x32xf32>
    %cst_85 = arith.constant dense<0.000000e+00> : vector<6x32xf32>
    %210 = tpu.matmul %203, %209, %cst_85 {dimension_numbers = #tpu.dot_dimension_numbers<[1], [0], [0], [1], [0, 0, 1, 1], [], []>} : vector<6x32xf32>, vector<32x32xf32>, vector<6x32xf32> -> vector<6x32xf32>
    %211 = vector.extract_strided_slice %207 {offsets = [0, 0, 0], sizes = [1, 1, 32], strides = [1, 1, 1]} : vector<3x1x32xf32> to vector<1x1x32xf32>
    %212 = vector.shape_cast %211 : vector<1x1x32xf32> to vector<1x32xf32>
    %213 = vector.broadcast %212 : vector<1x32xf32> to vector<6x32xf32>
    %214 = arith.addf %210, %213 : vector<6x32xf32>
    %215 = vector.extract_strided_slice %205 {offsets = [1, 0, 0], sizes = [1, 32, 32], strides = [1, 1, 1]} : vector<3x32x32xf32> to vector<1x32x32xf32>
    %216 = vector.shape_cast %215 : vector<1x32x32xf32> to vector<32x32xf32>
    %cst_86 = arith.constant dense<0.000000e+00> : vector<6x32xf32>
    %217 = tpu.matmul %203, %216, %cst_86 {dimension_numbers = #tpu.dot_dimension_numbers<[1], [0], [0], [1], [0, 0, 1, 1], [], []>} : vector<6x32xf32>, vector<32x32xf32>, vector<6x32xf32> -> vector<6x32xf32>
    %218 = vector.extract_strided_slice %207 {offsets = [1, 0, 0], sizes = [1, 1, 32], strides = [1, 1, 1]} : vector<3x1x32xf32> to vector<1x1x32xf32>
    %219 = vector.shape_cast %218 : vector<1x1x32xf32> to vector<1x32xf32>
    %220 = vector.broadcast %219 : vector<1x32xf32> to vector<6x32xf32>
    %221 = arith.addf %217, %220 : vector<6x32xf32>
    %222 = vector.extract_strided_slice %205 {offsets = [2, 0, 0], sizes = [1, 32, 32], strides = [1, 1, 1]} : vector<3x32x32xf32> to vector<1x32x32xf32>
    %223 = vector.shape_cast %222 : vector<1x32x32xf32> to vector<32x32xf32>
    %cst_87 = arith.constant dense<0.000000e+00> : vector<6x32xf32>
    %224 = tpu.matmul %203, %223, %cst_87 {dimension_numbers = #tpu.dot_dimension_numbers<[1], [0], [0], [1], [0, 0, 1, 1], [], []>} : vector<6x32xf32>, vector<32x32xf32>, vector<6x32xf32> -> vector<6x32xf32>
    %225 = vector.extract_strided_slice %207 {offsets = [2, 0, 0], sizes = [1, 1, 32], strides = [1, 1, 1]} : vector<3x1x32xf32> to vector<1x1x32xf32>
    %226 = vector.shape_cast %225 : vector<1x1x32xf32> to vector<1x32xf32>
    %227 = vector.broadcast %226 : vector<1x32xf32> to vector<6x32xf32>
    %228 = arith.addf %224, %227 : vector<6x32xf32>
    %229 = vector.extract_strided_slice %214 {offsets = [0, 0], sizes = [6, 8], strides = [1, 1]} : vector<6x32xf32> to vector<6x8xf32>
    %230 = vector.extract_strided_slice %221 {offsets = [0, 0], sizes = [6, 8], strides = [1, 1]} : vector<6x32xf32> to vector<6x8xf32>
    %231 = vector.extract_strided_slice %228 {offsets = [0, 0], sizes = [6, 8], strides = [1, 1]} : vector<6x32xf32> to vector<6x8xf32>
    %cst_88 = arith.constant dense<0.000000e+00> : vector<6x6xf32>
    %232 = tpu.matmul %229, %230, %cst_88 {dimension_numbers = #tpu.dot_dimension_numbers<[1], [1], [0], [0], [0, 0, 1, 0], [], []>} : vector<6x8xf32>, vector<6x8xf32>, vector<6x6xf32> -> vector<6x6xf32>
    %cst_89 = arith.constant 0.353553385 : f32
    %233 = vector.broadcast %cst_89 : f32 to vector<6x6xf32>
    %234 = arith.mulf %232, %233 : vector<6x6xf32>
    %235 = arith.addf %234, %28 : vector<6x6xf32>
    %cst_90 = arith.constant dense<0xFF800000> : vector<6xf32>
    %236 = vector.multi_reduction <maximumf>, %235, %cst_90 [1] : vector<6x6xf32> to vector<6xf32>
    %237 = vector.shape_cast %236 : vector<6xf32> to vector<6x1xf32>
    %238 = vector.broadcast %237 : vector<6x1xf32> to vector<6x6xf32>
    %239 = arith.subf %235, %238 : vector<6x6xf32>
    %240 = math.exp %239 : vector<6x6xf32>
    %cst_91 = arith.constant dense<0.000000e+00> : vector<6xf32>
    %241 = vector.multi_reduction <add>, %240, %cst_91 [1] : vector<6x6xf32> to vector<6xf32>
    %242 = vector.shape_cast %241 : vector<6xf32> to vector<6x1xf32>
    %243 = vector.broadcast %242 : vector<6x1xf32> to vector<6x6xf32>
    %244 = arith.divf %240, %243 : vector<6x6xf32>
    %cst_92 = arith.constant dense<0.000000e+00> : vector<6x8xf32>
    %245 = tpu.matmul %244, %231, %cst_92 {dimension_numbers = #tpu.dot_dimension_numbers<[1], [0], [0], [1], [0, 0, 1, 1], [], []>} : vector<6x6xf32>, vector<6x8xf32>, vector<6x8xf32> -> vector<6x8xf32>
    %246 = vector.extract_strided_slice %214 {offsets = [0, 8], sizes = [6, 8], strides = [1, 1]} : vector<6x32xf32> to vector<6x8xf32>
    %247 = vector.extract_strided_slice %221 {offsets = [0, 8], sizes = [6, 8], strides = [1, 1]} : vector<6x32xf32> to vector<6x8xf32>
    %248 = vector.extract_strided_slice %228 {offsets = [0, 8], sizes = [6, 8], strides = [1, 1]} : vector<6x32xf32> to vector<6x8xf32>
    %cst_93 = arith.constant dense<0.000000e+00> : vector<6x6xf32>
    %249 = tpu.matmul %246, %247, %cst_93 {dimension_numbers = #tpu.dot_dimension_numbers<[1], [1], [0], [0], [0, 0, 1, 0], [], []>} : vector<6x8xf32>, vector<6x8xf32>, vector<6x6xf32> -> vector<6x6xf32>
    %cst_94 = arith.constant 0.353553385 : f32
    %250 = vector.broadcast %cst_94 : f32 to vector<6x6xf32>
    %251 = arith.mulf %249, %250 : vector<6x6xf32>
    %252 = arith.addf %251, %28 : vector<6x6xf32>
    %cst_95 = arith.constant dense<0xFF800000> : vector<6xf32>
    %253 = vector.multi_reduction <maximumf>, %252, %cst_95 [1] : vector<6x6xf32> to vector<6xf32>
    %254 = vector.shape_cast %253 : vector<6xf32> to vector<6x1xf32>
    %255 = vector.broadcast %254 : vector<6x1xf32> to vector<6x6xf32>
    %256 = arith.subf %252, %255 : vector<6x6xf32>
    %257 = math.exp %256 : vector<6x6xf32>
    %cst_96 = arith.constant dense<0.000000e+00> : vector<6xf32>
    %258 = vector.multi_reduction <add>, %257, %cst_96 [1] : vector<6x6xf32> to vector<6xf32>
    %259 = vector.shape_cast %258 : vector<6xf32> to vector<6x1xf32>
    %260 = vector.broadcast %259 : vector<6x1xf32> to vector<6x6xf32>
    %261 = arith.divf %257, %260 : vector<6x6xf32>
    %cst_97 = arith.constant dense<0.000000e+00> : vector<6x8xf32>
    %262 = tpu.matmul %261, %248, %cst_97 {dimension_numbers = #tpu.dot_dimension_numbers<[1], [0], [0], [1], [0, 0, 1, 1], [], []>} : vector<6x6xf32>, vector<6x8xf32>, vector<6x8xf32> -> vector<6x8xf32>
    %263 = vector.extract_strided_slice %214 {offsets = [0, 16], sizes = [6, 8], strides = [1, 1]} : vector<6x32xf32> to vector<6x8xf32>
    %264 = vector.extract_strided_slice %221 {offsets = [0, 16], sizes = [6, 8], strides = [1, 1]} : vector<6x32xf32> to vector<6x8xf32>
    %265 = vector.extract_strided_slice %228 {offsets = [0, 16], sizes = [6, 8], strides = [1, 1]} : vector<6x32xf32> to vector<6x8xf32>
    %cst_98 = arith.constant dense<0.000000e+00> : vector<6x6xf32>
    %266 = tpu.matmul %263, %264, %cst_98 {dimension_numbers = #tpu.dot_dimension_numbers<[1], [1], [0], [0], [0, 0, 1, 0], [], []>} : vector<6x8xf32>, vector<6x8xf32>, vector<6x6xf32> -> vector<6x6xf32>
    %cst_99 = arith.constant 0.353553385 : f32
    %267 = vector.broadcast %cst_99 : f32 to vector<6x6xf32>
    %268 = arith.mulf %266, %267 : vector<6x6xf32>
    %269 = arith.addf %268, %28 : vector<6x6xf32>
    %cst_100 = arith.constant dense<0xFF800000> : vector<6xf32>
    %270 = vector.multi_reduction <maximumf>, %269, %cst_100 [1] : vector<6x6xf32> to vector<6xf32>
    %271 = vector.shape_cast %270 : vector<6xf32> to vector<6x1xf32>
    %272 = vector.broadcast %271 : vector<6x1xf32> to vector<6x6xf32>
    %273 = arith.subf %269, %272 : vector<6x6xf32>
    %274 = math.exp %273 : vector<6x6xf32>
    %cst_101 = arith.constant dense<0.000000e+00> : vector<6xf32>
    %275 = vector.multi_reduction <add>, %274, %cst_101 [1] : vector<6x6xf32> to vector<6xf32>
    %276 = vector.shape_cast %275 : vector<6xf32> to vector<6x1xf32>
    %277 = vector.broadcast %276 : vector<6x1xf32> to vector<6x6xf32>
    %278 = arith.divf %274, %277 : vector<6x6xf32>
    %cst_102 = arith.constant dense<0.000000e+00> : vector<6x8xf32>
    %279 = tpu.matmul %278, %265, %cst_102 {dimension_numbers = #tpu.dot_dimension_numbers<[1], [0], [0], [1], [0, 0, 1, 1], [], []>} : vector<6x6xf32>, vector<6x8xf32>, vector<6x8xf32> -> vector<6x8xf32>
    %280 = vector.extract_strided_slice %214 {offsets = [0, 24], sizes = [6, 8], strides = [1, 1]} : vector<6x32xf32> to vector<6x8xf32>
    %281 = vector.extract_strided_slice %221 {offsets = [0, 24], sizes = [6, 8], strides = [1, 1]} : vector<6x32xf32> to vector<6x8xf32>
    %282 = vector.extract_strided_slice %228 {offsets = [0, 24], sizes = [6, 8], strides = [1, 1]} : vector<6x32xf32> to vector<6x8xf32>
    %cst_103 = arith.constant dense<0.000000e+00> : vector<6x6xf32>
    %283 = tpu.matmul %280, %281, %cst_103 {dimension_numbers = #tpu.dot_dimension_numbers<[1], [1], [0], [0], [0, 0, 1, 0], [], []>} : vector<6x8xf32>, vector<6x8xf32>, vector<6x6xf32> -> vector<6x6xf32>
    %cst_104 = arith.constant 0.353553385 : f32
    %284 = vector.broadcast %cst_104 : f32 to vector<6x6xf32>
    %285 = arith.mulf %283, %284 : vector<6x6xf32>
    %286 = arith.addf %285, %28 : vector<6x6xf32>
    %cst_105 = arith.constant dense<0xFF800000> : vector<6xf32>
    %287 = vector.multi_reduction <maximumf>, %286, %cst_105 [1] : vector<6x6xf32> to vector<6xf32>
    %288 = vector.shape_cast %287 : vector<6xf32> to vector<6x1xf32>
    %289 = vector.broadcast %288 : vector<6x1xf32> to vector<6x6xf32>
    %290 = arith.subf %286, %289 : vector<6x6xf32>
    %291 = math.exp %290 : vector<6x6xf32>
    %cst_106 = arith.constant dense<0.000000e+00> : vector<6xf32>
    %292 = vector.multi_reduction <add>, %291, %cst_106 [1] : vector<6x6xf32> to vector<6xf32>
    %293 = vector.shape_cast %292 : vector<6xf32> to vector<6x1xf32>
    %294 = vector.broadcast %293 : vector<6x1xf32> to vector<6x6xf32>
    %295 = arith.divf %291, %294 : vector<6x6xf32>
    %cst_107 = arith.constant dense<0.000000e+00> : vector<6x8xf32>
    %296 = tpu.matmul %295, %282, %cst_107 {dimension_numbers = #tpu.dot_dimension_numbers<[1], [0], [0], [1], [0, 0, 1, 1], [], []>} : vector<6x6xf32>, vector<6x8xf32>, vector<6x8xf32> -> vector<6x8xf32>
    %297 = tpu.concatenate %245, %262, %279, %296 in 1 : vector<6x8xf32>, vector<6x8xf32>, vector<6x8xf32>, vector<6x8xf32> -> vector<6x32xf32>
    %c1_108 = arith.constant 1 : index
    %c0_109 = arith.constant 0 : index
    %c0_110 = arith.constant 0 : index
    %298 = vector.load %arg3[%c1_108, %c0_109, %c0_110] : memref<2x32x32xf32, #tpu.memory_space<vmem>>, vector<1x32x32xf32>
    %299 = vector.shape_cast %298 : vector<1x32x32xf32> to vector<32x32xf32>
    %cst_111 = arith.constant dense<0.000000e+00> : vector<6x32xf32>
    %300 = tpu.matmul %297, %299, %cst_111 {dimension_numbers = #tpu.dot_dimension_numbers<[1], [0], [0], [1], [0, 0, 1, 1], [], []>} : vector<6x32xf32>, vector<32x32xf32>, vector<6x32xf32> -> vector<6x32xf32>
    %c1_112 = arith.constant 1 : index
    %c0_113 = arith.constant 0 : index
    %c0_114 = arith.constant 0 : index
    %301 = vector.load %arg4[%c1_112, %c0_113, %c0_114] : memref<2x1x32xf32, #tpu.memory_space<vmem>>, vector<1x1x32xf32>
    %302 = vector.shape_cast %301 : vector<1x1x32xf32> to vector<1x32xf32>
    %303 = vector.broadcast %302 : vector<1x32xf32> to vector<6x32xf32>
    %304 = arith.addf %300, %303 : vector<6x32xf32>
    %c1_115 = arith.constant 1 : index
    %c0_116 = arith.constant 0 : index
    %c0_117 = arith.constant 0 : index
    %c0_118 = arith.constant 0 : index
    %305 = vector.load %arg5[%c1_115, %c0_116, %c0_117, %c0_118] : memref<2x2x1x32xf32, #tpu.memory_space<vmem>>, vector<1x2x1x32xf32>
    %306 = vector.shape_cast %305 : vector<1x2x1x32xf32> to vector<2x1x32xf32>
    %307 = arith.addf %203, %304 : vector<6x32xf32>
    %308 = vector.extract_strided_slice %306 {offsets = [0, 0, 0], sizes = [1, 1, 32], strides = [1, 1, 1]} : vector<2x1x32xf32> to vector<1x1x32xf32>
    %309 = vector.shape_cast %308 : vector<1x1x32xf32> to vector<1x32xf32>
    %310 = vector.extract_strided_slice %306 {offsets = [1, 0, 0], sizes = [1, 1, 32], strides = [1, 1, 1]} : vector<2x1x32xf32> to vector<1x1x32xf32>
    %311 = vector.shape_cast %310 : vector<1x1x32xf32> to vector<1x32xf32>
    %cst_119 = arith.constant dense<0.000000e+00> : vector<6xf32>
    %312 = vector.multi_reduction <add>, %307, %cst_119 [1] : vector<6x32xf32> to vector<6xf32>
    %313 = vector.shape_cast %312 : vector<6xf32> to vector<6x1xf32>
    %cst_120 = arith.constant 3.200000e+01 : f32
    %314 = vector.broadcast %cst_120 : f32 to vector<6x1xf32>
    %315 = arith.divf %313, %314 : vector<6x1xf32>
    %316 = vector.broadcast %315 : vector<6x1xf32> to vector<6x32xf32>
    %317 = arith.subf %307, %316 : vector<6x32xf32>
    %318 = arith.mulf %317, %317 : vector<6x32xf32>
    %cst_121 = arith.constant dense<0.000000e+00> : vector<6xf32>
    %319 = vector.multi_reduction <add>, %318, %cst_121 [1] : vector<6x32xf32> to vector<6xf32>
    %320 = vector.shape_cast %319 : vector<6xf32> to vector<6x1xf32>
    %cst_122 = arith.constant 3.200000e+01 : f32
    %321 = vector.broadcast %cst_122 : f32 to vector<6x1xf32>
    %322 = arith.divf %320, %321 : vector<6x1xf32>
    %323 = vector.broadcast %315 : vector<6x1xf32> to vector<6x32xf32>
    %324 = arith.subf %307, %323 : vector<6x32xf32>
    %cst_123 = arith.constant 9.99999974E-6 : f32
    %325 = vector.broadcast %cst_123 : f32 to vector<6x1xf32>
    %326 = arith.addf %322, %325 : vector<6x1xf32>
    %327 = math.rsqrt %326 : vector<6x1xf32>
    %328 = vector.broadcast %327 : vector<6x1xf32> to vector<6x32xf32>
    %329 = arith.mulf %324, %328 : vector<6x32xf32>
    %330 = vector.broadcast %309 : vector<1x32xf32> to vector<6x32xf32>
    %331 = arith.mulf %329, %330 : vector<6x32xf32>
    %332 = vector.broadcast %311 : vector<1x32xf32> to vector<6x32xf32>
    %333 = arith.addf %331, %332 : vector<6x32xf32>
    %c1_124 = arith.constant 1 : index
    %c0_125 = arith.constant 0 : index
    %c0_126 = arith.constant 0 : index
    %334 = vector.load %arg6[%c1_124, %c0_125, %c0_126] : memref<2x32x128xf32, #tpu.memory_space<vmem>>, vector<1x32x128xf32>
    %335 = vector.shape_cast %334 : vector<1x32x128xf32> to vector<32x128xf32>
    %cst_127 = arith.constant dense<0.000000e+00> : vector<6x128xf32>
    %336 = tpu.matmul %333, %335, %cst_127 {dimension_numbers = #tpu.dot_dimension_numbers<[1], [0], [0], [1], [0, 0, 1, 1], [], []>} : vector<6x32xf32>, vector<32x128xf32>, vector<6x128xf32> -> vector<6x128xf32>
    %c1_128 = arith.constant 1 : index
    %c0_129 = arith.constant 0 : index
    %c0_130 = arith.constant 0 : index
    %337 = vector.load %arg7[%c1_128, %c0_129, %c0_130] : memref<2x1x128xf32, #tpu.memory_space<vmem>>, vector<1x1x128xf32>
    %338 = vector.shape_cast %337 : vector<1x1x128xf32> to vector<1x128xf32>
    %339 = vector.broadcast %338 : vector<1x128xf32> to vector<6x128xf32>
    %340 = arith.addf %336, %339 : vector<6x128xf32>
    %cst_131 = arith.constant 0.000000e+00 : f32
    %341 = vector.broadcast %cst_131 : f32 to vector<6x128xf32>
    %342 = arith.maximumf %340, %341 : vector<6x128xf32>
    %c1_132 = arith.constant 1 : index
    %c0_133 = arith.constant 0 : index
    %c0_134 = arith.constant 0 : index
    %343 = vector.load %arg8[%c1_132, %c0_133, %c0_134] : memref<2x128x32xf32, #tpu.memory_space<vmem>>, vector<1x128x32xf32>
    %344 = vector.shape_cast %343 : vector<1x128x32xf32> to vector<128x32xf32>
    %cst_135 = arith.constant dense<0.000000e+00> : vector<6x32xf32>
    %345 = tpu.matmul %342, %344, %cst_135 {dimension_numbers = #tpu.dot_dimension_numbers<[1], [0], [0], [1], [0, 0, 1, 1], [], []>} : vector<6x128xf32>, vector<128x32xf32>, vector<6x32xf32> -> vector<6x32xf32>
    %c1_136 = arith.constant 1 : index
    %c0_137 = arith.constant 0 : index
    %c0_138 = arith.constant 0 : index
    %346 = vector.load %arg9[%c1_136, %c0_137, %c0_138] : memref<2x1x32xf32, #tpu.memory_space<vmem>>, vector<1x1x32xf32>
    %347 = vector.shape_cast %346 : vector<1x1x32xf32> to vector<1x32xf32>
    %348 = vector.broadcast %347 : vector<1x32xf32> to vector<6x32xf32>
    %349 = arith.addf %345, %348 : vector<6x32xf32>
    %c1_139 = arith.constant 1 : index
    %c0_140 = arith.constant 0 : index
    %c0_141 = arith.constant 0 : index
    %c0_142 = arith.constant 0 : index
    %350 = vector.load %arg10[%c1_139, %c0_140, %c0_141, %c0_142] : memref<2x2x1x32xf32, #tpu.memory_space<vmem>>, vector<1x2x1x32xf32>
    %351 = vector.shape_cast %350 : vector<1x2x1x32xf32> to vector<2x1x32xf32>
    %352 = arith.addf %333, %349 : vector<6x32xf32>
    %353 = vector.extract_strided_slice %351 {offsets = [0, 0, 0], sizes = [1, 1, 32], strides = [1, 1, 1]} : vector<2x1x32xf32> to vector<1x1x32xf32>
    %354 = vector.shape_cast %353 : vector<1x1x32xf32> to vector<1x32xf32>
    %355 = vector.extract_strided_slice %351 {offsets = [1, 0, 0], sizes = [1, 1, 32], strides = [1, 1, 1]} : vector<2x1x32xf32> to vector<1x1x32xf32>
    %356 = vector.shape_cast %355 : vector<1x1x32xf32> to vector<1x32xf32>
    %cst_143 = arith.constant dense<0.000000e+00> : vector<6xf32>
    %357 = vector.multi_reduction <add>, %352, %cst_143 [1] : vector<6x32xf32> to vector<6xf32>
    %358 = vector.shape_cast %357 : vector<6xf32> to vector<6x1xf32>
    %cst_144 = arith.constant 3.200000e+01 : f32
    %359 = vector.broadcast %cst_144 : f32 to vector<6x1xf32>
    %360 = arith.divf %358, %359 : vector<6x1xf32>
    %361 = vector.broadcast %360 : vector<6x1xf32> to vector<6x32xf32>
    %362 = arith.subf %352, %361 : vector<6x32xf32>
    %363 = arith.mulf %362, %362 : vector<6x32xf32>
    %cst_145 = arith.constant dense<0.000000e+00> : vector<6xf32>
    %364 = vector.multi_reduction <add>, %363, %cst_145 [1] : vector<6x32xf32> to vector<6xf32>
    %365 = vector.shape_cast %364 : vector<6xf32> to vector<6x1xf32>
    %cst_146 = arith.constant 3.200000e+01 : f32
    %366 = vector.broadcast %cst_146 : f32 to vector<6x1xf32>
    %367 = arith.divf %365, %366 : vector<6x1xf32>
    %368 = vector.broadcast %360 : vector<6x1xf32> to vector<6x32xf32>
    %369 = arith.subf %352, %368 : vector<6x32xf32>
    %cst_147 = arith.constant 9.99999974E-6 : f32
    %370 = vector.broadcast %cst_147 : f32 to vector<6x1xf32>
    %371 = arith.addf %367, %370 : vector<6x1xf32>
    %372 = math.rsqrt %371 : vector<6x1xf32>
    %373 = vector.broadcast %372 : vector<6x1xf32> to vector<6x32xf32>
    %374 = arith.mulf %369, %373 : vector<6x32xf32>
    %375 = vector.broadcast %354 : vector<1x32xf32> to vector<6x32xf32>
    %376 = arith.mulf %374, %375 : vector<6x32xf32>
    %377 = vector.broadcast %356 : vector<1x32xf32> to vector<6x32xf32>
    %378 = arith.addf %376, %377 : vector<6x32xf32>
    %c0_148 = arith.constant 0 : index
    %c0_149 = arith.constant 0 : index
    %379 = vector.load %arg11[%c0_148, %c0_149] : memref<32x32xf32, #tpu.memory_space<vmem>>, vector<32x32xf32>
    %cst_150 = arith.constant dense<0.000000e+00> : vector<6x32xf32>
    %380 = tpu.matmul %378, %379, %cst_150 {dimension_numbers = #tpu.dot_dimension_numbers<[1], [0], [0], [1], [0, 0, 1, 1], [], []>} : vector<6x32xf32>, vector<32x32xf32>, vector<6x32xf32> -> vector<6x32xf32>
    %c0_151 = arith.constant 0 : index
    %c0_152 = arith.constant 0 : index
    %381 = vector.load %arg12[%c0_151, %c0_152] : memref<1x32xf32, #tpu.memory_space<vmem>>, vector<1x32xf32>
    %382 = vector.broadcast %381 : vector<1x32xf32> to vector<6x32xf32>
    %383 = arith.addf %380, %382 : vector<6x32xf32>
    %c0_153 = arith.constant 0 : index
    %c0_154 = arith.constant 0 : index
    %384 = vector.load %arg13[%c0_153, %c0_154] : memref<6x32xf32, #tpu.memory_space<vmem>>, vector<6x32xf32>
    tpu.vector_store %arg13[%c0_153, %c0_154], %383 {strides = array<i32>} : memref<6x32xf32, #tpu.memory_space<vmem>>, vector<6x32xf32>,
    return
  }
}

module attributes {stable_mosaic.version = 11 : i64} {
  func.func @_decoder_kernel(%arg0: memref<18x32xf32, #tpu.memory_space<vmem>>, %arg1: memref<2x3x32x32xf32, #tpu.memory_space<vmem>>, %arg2: memref<2x3x1x32xf32, #tpu.memory_space<vmem>>, %arg3: memref<2x32x32xf32, #tpu.memory_space<vmem>>, %arg4: memref<2x1x32xf32, #tpu.memory_space<vmem>>, %arg5: memref<2x2x1x32xf32, #tpu.memory_space<vmem>>, %arg6: memref<2x32x128xf32, #tpu.memory_space<vmem>>, %arg7: memref<2x1x128xf32, #tpu.memory_space<vmem>>, %arg8: memref<2x128x32xf32, #tpu.memory_space<vmem>>, %arg9: memref<2x1x32xf32, #tpu.memory_space<vmem>>, %arg10: memref<2x2x1x32xf32, #tpu.memory_space<vmem>>, %arg11: memref<32x64xf32, #tpu.memory_space<vmem>>, %arg12: memref<1x64xf32, #tpu.memory_space<vmem>>, %arg13: memref<16x64xf32, #tpu.memory_space<vmem>>, %arg14: memref<16x1xf32, #tpu.memory_space<vmem>>, %arg15: memref<16x64xf32, #tpu.memory_space<vmem>>, %arg16: memref<1x1xf32, #tpu.memory_space<smem>>) attributes {dimension_semantics = [], scalar_prefetch = 0 : i64, scratch_operands = 0 : i64, tpu.core_type = #tpu.core_type<tc>} {
    %c0 = arith.constant 0 : index
    %c0_0 = arith.constant 0 : index
    %0 = vector.load %arg0[%c0, %c0_0] : memref<18x32xf32, #tpu.memory_space<vmem>>, vector<18x32xf32>
    %1 = tpu.iota {dimensions = array<i32: 0>} : vector<18x18xi32>
    %2 = tpu.iota {dimensions = array<i32: 1>} : vector<18x18xi32>
    %c0_i32 = arith.constant 0 : i32
    %3 = vector.broadcast %c0_i32 : i32 to vector<18x18xi32>
    %4 = arith.cmpi sge, %1, %3 : vector<18x18xi32>
    %c9_i32 = arith.constant 9 : i32
    %5 = vector.broadcast %c9_i32 : i32 to vector<18x18xi32>
    %6 = arith.cmpi slt, %1, %5 : vector<18x18xi32>
    %7 = arith.andi %4, %6 : vector<18x18xi1>
    %c0_i32_1 = arith.constant 0 : i32
    %8 = vector.broadcast %c0_i32_1 : i32 to vector<18x18xi32>
    %9 = arith.cmpi sge, %2, %8 : vector<18x18xi32>
    %10 = arith.andi %7, %9 : vector<18x18xi1>
    %c9_i32_2 = arith.constant 9 : i32
    %11 = vector.broadcast %c9_i32_2 : i32 to vector<18x18xi32>
    %12 = arith.cmpi slt, %2, %11 : vector<18x18xi32>
    %13 = arith.andi %10, %12 : vector<18x18xi1>
    %c9_i32_3 = arith.constant 9 : i32
    %14 = vector.broadcast %c9_i32_3 : i32 to vector<18x18xi32>
    %15 = arith.cmpi sge, %1, %14 : vector<18x18xi32>
    %c18_i32 = arith.constant 18 : i32
    %16 = vector.broadcast %c18_i32 : i32 to vector<18x18xi32>
    %17 = arith.cmpi slt, %1, %16 : vector<18x18xi32>
    %18 = arith.andi %15, %17 : vector<18x18xi1>
    %c9_i32_4 = arith.constant 9 : i32
    %19 = vector.broadcast %c9_i32_4 : i32 to vector<18x18xi32>
    %20 = arith.cmpi sge, %2, %19 : vector<18x18xi32>
    %21 = arith.andi %18, %20 : vector<18x18xi1>
    %c18_i32_5 = arith.constant 18 : i32
    %22 = vector.broadcast %c18_i32_5 : i32 to vector<18x18xi32>
    %23 = arith.cmpi slt, %2, %22 : vector<18x18xi32>
    %24 = arith.andi %21, %23 : vector<18x18xi1>
    %25 = arith.ori %13, %24 : vector<18x18xi1>
    %cst = arith.constant 0.000000e+00 : f32
    %cst_6 = arith.constant -1.000000e+09 : f32
    %26 = vector.broadcast %cst : f32 to vector<18x18xf32>
    %27 = vector.broadcast %cst_6 : f32 to vector<18x18xf32>
    %28 = arith.select %25, %26, %27 : vector<18x18xi1>, vector<18x18xf32>
    %c0_7 = arith.constant 0 : index
    %c0_8 = arith.constant 0 : index
    %c0_9 = arith.constant 0 : index
    %c0_10 = arith.constant 0 : index
    %29 = vector.load %arg1[%c0_7, %c0_8, %c0_9, %c0_10] : memref<2x3x32x32xf32, #tpu.memory_space<vmem>>, vector<1x3x32x32xf32>
    %30 = vector.shape_cast %29 : vector<1x3x32x32xf32> to vector<3x32x32xf32>
    %c0_11 = arith.constant 0 : index
    %c0_12 = arith.constant 0 : index
    %c0_13 = arith.constant 0 : index
    %c0_14 = arith.constant 0 : index
    %31 = vector.load %arg2[%c0_11, %c0_12, %c0_13, %c0_14] : memref<2x3x1x32xf32, #tpu.memory_space<vmem>>, vector<1x3x1x32xf32>
    %32 = vector.shape_cast %31 : vector<1x3x1x32xf32> to vector<3x1x32xf32>
    %33 = vector.extract_strided_slice %30 {offsets = [0, 0, 0], sizes = [1, 32, 32], strides = [1, 1, 1]} : vector<3x32x32xf32> to vector<1x32x32xf32>
    %34 = vector.shape_cast %33 : vector<1x32x32xf32> to vector<32x32xf32>
    %cst_15 = arith.constant dense<0.000000e+00> : vector<18x32xf32>
    %35 = tpu.matmul %0, %34, %cst_15 {dimension_numbers = #tpu.dot_dimension_numbers<[1], [0], [0], [1], [0, 0, 1, 1], [], []>} : vector<18x32xf32>, vector<32x32xf32>, vector<18x32xf32> -> vector<18x32xf32>
    %36 = vector.extract_strided_slice %32 {offsets = [0, 0, 0], sizes = [1, 1, 32], strides = [1, 1, 1]} : vector<3x1x32xf32> to vector<1x1x32xf32>
    %37 = vector.shape_cast %36 : vector<1x1x32xf32> to vector<1x32xf32>
    %38 = vector.broadcast %37 : vector<1x32xf32> to vector<18x32xf32>
    %39 = arith.addf %35, %38 : vector<18x32xf32>
    %40 = vector.extract_strided_slice %30 {offsets = [1, 0, 0], sizes = [1, 32, 32], strides = [1, 1, 1]} : vector<3x32x32xf32> to vector<1x32x32xf32>
    %41 = vector.shape_cast %40 : vector<1x32x32xf32> to vector<32x32xf32>
    %cst_16 = arith.constant dense<0.000000e+00> : vector<18x32xf32>
    %42 = tpu.matmul %0, %41, %cst_16 {dimension_numbers = #tpu.dot_dimension_numbers<[1], [0], [0], [1], [0, 0, 1, 1], [], []>} : vector<18x32xf32>, vector<32x32xf32>, vector<18x32xf32> -> vector<18x32xf32>
    %43 = vector.extract_strided_slice %32 {offsets = [1, 0, 0], sizes = [1, 1, 32], strides = [1, 1, 1]} : vector<3x1x32xf32> to vector<1x1x32xf32>
    %44 = vector.shape_cast %43 : vector<1x1x32xf32> to vector<1x32xf32>
    %45 = vector.broadcast %44 : vector<1x32xf32> to vector<18x32xf32>
    %46 = arith.addf %42, %45 : vector<18x32xf32>
    %47 = vector.extract_strided_slice %30 {offsets = [2, 0, 0], sizes = [1, 32, 32], strides = [1, 1, 1]} : vector<3x32x32xf32> to vector<1x32x32xf32>
    %48 = vector.shape_cast %47 : vector<1x32x32xf32> to vector<32x32xf32>
    %cst_17 = arith.constant dense<0.000000e+00> : vector<18x32xf32>
    %49 = tpu.matmul %0, %48, %cst_17 {dimension_numbers = #tpu.dot_dimension_numbers<[1], [0], [0], [1], [0, 0, 1, 1], [], []>} : vector<18x32xf32>, vector<32x32xf32>, vector<18x32xf32> -> vector<18x32xf32>
    %50 = vector.extract_strided_slice %32 {offsets = [2, 0, 0], sizes = [1, 1, 32], strides = [1, 1, 1]} : vector<3x1x32xf32> to vector<1x1x32xf32>
    %51 = vector.shape_cast %50 : vector<1x1x32xf32> to vector<1x32xf32>
    %52 = vector.broadcast %51 : vector<1x32xf32> to vector<18x32xf32>
    %53 = arith.addf %49, %52 : vector<18x32xf32>
    %54 = vector.extract_strided_slice %39 {offsets = [0, 0], sizes = [18, 8], strides = [1, 1]} : vector<18x32xf32> to vector<18x8xf32>
    %55 = vector.extract_strided_slice %46 {offsets = [0, 0], sizes = [18, 8], strides = [1, 1]} : vector<18x32xf32> to vector<18x8xf32>
    %56 = vector.extract_strided_slice %53 {offsets = [0, 0], sizes = [18, 8], strides = [1, 1]} : vector<18x32xf32> to vector<18x8xf32>
    %cst_18 = arith.constant dense<0.000000e+00> : vector<18x18xf32>
    %57 = tpu.matmul %54, %55, %cst_18 {dimension_numbers = #tpu.dot_dimension_numbers<[1], [1], [0], [0], [0, 0, 1, 0], [], []>} : vector<18x8xf32>, vector<18x8xf32>, vector<18x18xf32> -> vector<18x18xf32>
    %cst_19 = arith.constant 0.353553385 : f32
    %58 = vector.broadcast %cst_19 : f32 to vector<18x18xf32>
    %59 = arith.mulf %57, %58 : vector<18x18xf32>
    %60 = arith.addf %59, %28 : vector<18x18xf32>
    %cst_20 = arith.constant dense<0xFF800000> : vector<18xf32>
    %61 = vector.multi_reduction <maximumf>, %60, %cst_20 [1] : vector<18x18xf32> to vector<18xf32>
    %62 = vector.shape_cast %61 : vector<18xf32> to vector<18x1xf32>
    %63 = vector.broadcast %62 : vector<18x1xf32> to vector<18x18xf32>
    %64 = arith.subf %60, %63 : vector<18x18xf32>
    %65 = math.exp %64 : vector<18x18xf32>
    %cst_21 = arith.constant dense<0.000000e+00> : vector<18xf32>
    %66 = vector.multi_reduction <add>, %65, %cst_21 [1] : vector<18x18xf32> to vector<18xf32>
    %67 = vector.shape_cast %66 : vector<18xf32> to vector<18x1xf32>
    %68 = vector.broadcast %67 : vector<18x1xf32> to vector<18x18xf32>
    %69 = arith.divf %65, %68 : vector<18x18xf32>
    %cst_22 = arith.constant dense<0.000000e+00> : vector<18x8xf32>
    %70 = tpu.matmul %69, %56, %cst_22 {dimension_numbers = #tpu.dot_dimension_numbers<[1], [0], [0], [1], [0, 0, 1, 1], [], []>} : vector<18x18xf32>, vector<18x8xf32>, vector<18x8xf32> -> vector<18x8xf32>
    %71 = vector.extract_strided_slice %39 {offsets = [0, 8], sizes = [18, 8], strides = [1, 1]} : vector<18x32xf32> to vector<18x8xf32>
    %72 = vector.extract_strided_slice %46 {offsets = [0, 8], sizes = [18, 8], strides = [1, 1]} : vector<18x32xf32> to vector<18x8xf32>
    %73 = vector.extract_strided_slice %53 {offsets = [0, 8], sizes = [18, 8], strides = [1, 1]} : vector<18x32xf32> to vector<18x8xf32>
    %cst_23 = arith.constant dense<0.000000e+00> : vector<18x18xf32>
    %74 = tpu.matmul %71, %72, %cst_23 {dimension_numbers = #tpu.dot_dimension_numbers<[1], [1], [0], [0], [0, 0, 1, 0], [], []>} : vector<18x8xf32>, vector<18x8xf32>, vector<18x18xf32> -> vector<18x18xf32>
    %cst_24 = arith.constant 0.353553385 : f32
    %75 = vector.broadcast %cst_24 : f32 to vector<18x18xf32>
    %76 = arith.mulf %74, %75 : vector<18x18xf32>
    %77 = arith.addf %76, %28 : vector<18x18xf32>
    %cst_25 = arith.constant dense<0xFF800000> : vector<18xf32>
    %78 = vector.multi_reduction <maximumf>, %77, %cst_25 [1] : vector<18x18xf32> to vector<18xf32>
    %79 = vector.shape_cast %78 : vector<18xf32> to vector<18x1xf32>
    %80 = vector.broadcast %79 : vector<18x1xf32> to vector<18x18xf32>
    %81 = arith.subf %77, %80 : vector<18x18xf32>
    %82 = math.exp %81 : vector<18x18xf32>
    %cst_26 = arith.constant dense<0.000000e+00> : vector<18xf32>
    %83 = vector.multi_reduction <add>, %82, %cst_26 [1] : vector<18x18xf32> to vector<18xf32>
    %84 = vector.shape_cast %83 : vector<18xf32> to vector<18x1xf32>
    %85 = vector.broadcast %84 : vector<18x1xf32> to vector<18x18xf32>
    %86 = arith.divf %82, %85 : vector<18x18xf32>
    %cst_27 = arith.constant dense<0.000000e+00> : vector<18x8xf32>
    %87 = tpu.matmul %86, %73, %cst_27 {dimension_numbers = #tpu.dot_dimension_numbers<[1], [0], [0], [1], [0, 0, 1, 1], [], []>} : vector<18x18xf32>, vector<18x8xf32>, vector<18x8xf32> -> vector<18x8xf32>
    %88 = vector.extract_strided_slice %39 {offsets = [0, 16], sizes = [18, 8], strides = [1, 1]} : vector<18x32xf32> to vector<18x8xf32>
    %89 = vector.extract_strided_slice %46 {offsets = [0, 16], sizes = [18, 8], strides = [1, 1]} : vector<18x32xf32> to vector<18x8xf32>
    %90 = vector.extract_strided_slice %53 {offsets = [0, 16], sizes = [18, 8], strides = [1, 1]} : vector<18x32xf32> to vector<18x8xf32>
    %cst_28 = arith.constant dense<0.000000e+00> : vector<18x18xf32>
    %91 = tpu.matmul %88, %89, %cst_28 {dimension_numbers = #tpu.dot_dimension_numbers<[1], [1], [0], [0], [0, 0, 1, 0], [], []>} : vector<18x8xf32>, vector<18x8xf32>, vector<18x18xf32> -> vector<18x18xf32>
    %cst_29 = arith.constant 0.353553385 : f32
    %92 = vector.broadcast %cst_29 : f32 to vector<18x18xf32>
    %93 = arith.mulf %91, %92 : vector<18x18xf32>
    %94 = arith.addf %93, %28 : vector<18x18xf32>
    %cst_30 = arith.constant dense<0xFF800000> : vector<18xf32>
    %95 = vector.multi_reduction <maximumf>, %94, %cst_30 [1] : vector<18x18xf32> to vector<18xf32>
    %96 = vector.shape_cast %95 : vector<18xf32> to vector<18x1xf32>
    %97 = vector.broadcast %96 : vector<18x1xf32> to vector<18x18xf32>
    %98 = arith.subf %94, %97 : vector<18x18xf32>
    %99 = math.exp %98 : vector<18x18xf32>
    %cst_31 = arith.constant dense<0.000000e+00> : vector<18xf32>
    %100 = vector.multi_reduction <add>, %99, %cst_31 [1] : vector<18x18xf32> to vector<18xf32>
    %101 = vector.shape_cast %100 : vector<18xf32> to vector<18x1xf32>
    %102 = vector.broadcast %101 : vector<18x1xf32> to vector<18x18xf32>
    %103 = arith.divf %99, %102 : vector<18x18xf32>
    %cst_32 = arith.constant dense<0.000000e+00> : vector<18x8xf32>
    %104 = tpu.matmul %103, %90, %cst_32 {dimension_numbers = #tpu.dot_dimension_numbers<[1], [0], [0], [1], [0, 0, 1, 1], [], []>} : vector<18x18xf32>, vector<18x8xf32>, vector<18x8xf32> -> vector<18x8xf32>
    %105 = vector.extract_strided_slice %39 {offsets = [0, 24], sizes = [18, 8], strides = [1, 1]} : vector<18x32xf32> to vector<18x8xf32>
    %106 = vector.extract_strided_slice %46 {offsets = [0, 24], sizes = [18, 8], strides = [1, 1]} : vector<18x32xf32> to vector<18x8xf32>
    %107 = vector.extract_strided_slice %53 {offsets = [0, 24], sizes = [18, 8], strides = [1, 1]} : vector<18x32xf32> to vector<18x8xf32>
    %cst_33 = arith.constant dense<0.000000e+00> : vector<18x18xf32>
    %108 = tpu.matmul %105, %106, %cst_33 {dimension_numbers = #tpu.dot_dimension_numbers<[1], [1], [0], [0], [0, 0, 1, 0], [], []>} : vector<18x8xf32>, vector<18x8xf32>, vector<18x18xf32> -> vector<18x18xf32>
    %cst_34 = arith.constant 0.353553385 : f32
    %109 = vector.broadcast %cst_34 : f32 to vector<18x18xf32>
    %110 = arith.mulf %108, %109 : vector<18x18xf32>
    %111 = arith.addf %110, %28 : vector<18x18xf32>
    %cst_35 = arith.constant dense<0xFF800000> : vector<18xf32>
    %112 = vector.multi_reduction <maximumf>, %111, %cst_35 [1] : vector<18x18xf32> to vector<18xf32>
    %113 = vector.shape_cast %112 : vector<18xf32> to vector<18x1xf32>
    %114 = vector.broadcast %113 : vector<18x1xf32> to vector<18x18xf32>
    %115 = arith.subf %111, %114 : vector<18x18xf32>
    %116 = math.exp %115 : vector<18x18xf32>
    %cst_36 = arith.constant dense<0.000000e+00> : vector<18xf32>
    %117 = vector.multi_reduction <add>, %116, %cst_36 [1] : vector<18x18xf32> to vector<18xf32>
    %118 = vector.shape_cast %117 : vector<18xf32> to vector<18x1xf32>
    %119 = vector.broadcast %118 : vector<18x1xf32> to vector<18x18xf32>
    %120 = arith.divf %116, %119 : vector<18x18xf32>
    %cst_37 = arith.constant dense<0.000000e+00> : vector<18x8xf32>
    %121 = tpu.matmul %120, %107, %cst_37 {dimension_numbers = #tpu.dot_dimension_numbers<[1], [0], [0], [1], [0, 0, 1, 1], [], []>} : vector<18x18xf32>, vector<18x8xf32>, vector<18x8xf32> -> vector<18x8xf32>
    %122 = tpu.concatenate %70, %87, %104, %121 in 1 : vector<18x8xf32>, vector<18x8xf32>, vector<18x8xf32>, vector<18x8xf32> -> vector<18x32xf32>
    %c0_38 = arith.constant 0 : index
    %c0_39 = arith.constant 0 : index
    %c0_40 = arith.constant 0 : index
    %123 = vector.load %arg3[%c0_38, %c0_39, %c0_40] : memref<2x32x32xf32, #tpu.memory_space<vmem>>, vector<1x32x32xf32>
    %124 = vector.shape_cast %123 : vector<1x32x32xf32> to vector<32x32xf32>
    %cst_41 = arith.constant dense<0.000000e+00> : vector<18x32xf32>
    %125 = tpu.matmul %122, %124, %cst_41 {dimension_numbers = #tpu.dot_dimension_numbers<[1], [0], [0], [1], [0, 0, 1, 1], [], []>} : vector<18x32xf32>, vector<32x32xf32>, vector<18x32xf32> -> vector<18x32xf32>
    %c0_42 = arith.constant 0 : index
    %c0_43 = arith.constant 0 : index
    %c0_44 = arith.constant 0 : index
    %126 = vector.load %arg4[%c0_42, %c0_43, %c0_44] : memref<2x1x32xf32, #tpu.memory_space<vmem>>, vector<1x1x32xf32>
    %127 = vector.shape_cast %126 : vector<1x1x32xf32> to vector<1x32xf32>
    %128 = vector.broadcast %127 : vector<1x32xf32> to vector<18x32xf32>
    %129 = arith.addf %125, %128 : vector<18x32xf32>
    %c0_45 = arith.constant 0 : index
    %c0_46 = arith.constant 0 : index
    %c0_47 = arith.constant 0 : index
    %c0_48 = arith.constant 0 : index
    %130 = vector.load %arg5[%c0_45, %c0_46, %c0_47, %c0_48] : memref<2x2x1x32xf32, #tpu.memory_space<vmem>>, vector<1x2x1x32xf32>
    %131 = vector.shape_cast %130 : vector<1x2x1x32xf32> to vector<2x1x32xf32>
    %132 = arith.addf %0, %129 : vector<18x32xf32>
    %133 = vector.extract_strided_slice %131 {offsets = [0, 0, 0], sizes = [1, 1, 32], strides = [1, 1, 1]} : vector<2x1x32xf32> to vector<1x1x32xf32>
    %134 = vector.shape_cast %133 : vector<1x1x32xf32> to vector<1x32xf32>
    %135 = vector.extract_strided_slice %131 {offsets = [1, 0, 0], sizes = [1, 1, 32], strides = [1, 1, 1]} : vector<2x1x32xf32> to vector<1x1x32xf32>
    %136 = vector.shape_cast %135 : vector<1x1x32xf32> to vector<1x32xf32>
    %cst_49 = arith.constant dense<0.000000e+00> : vector<18xf32>
    %137 = vector.multi_reduction <add>, %132, %cst_49 [1] : vector<18x32xf32> to vector<18xf32>
    %138 = vector.shape_cast %137 : vector<18xf32> to vector<18x1xf32>
    %cst_50 = arith.constant 3.200000e+01 : f32
    %139 = vector.broadcast %cst_50 : f32 to vector<18x1xf32>
    %140 = arith.divf %138, %139 : vector<18x1xf32>
    %141 = vector.broadcast %140 : vector<18x1xf32> to vector<18x32xf32>
    %142 = arith.subf %132, %141 : vector<18x32xf32>
    %143 = arith.mulf %142, %142 : vector<18x32xf32>
    %cst_51 = arith.constant dense<0.000000e+00> : vector<18xf32>
    %144 = vector.multi_reduction <add>, %143, %cst_51 [1] : vector<18x32xf32> to vector<18xf32>
    %145 = vector.shape_cast %144 : vector<18xf32> to vector<18x1xf32>
    %cst_52 = arith.constant 3.200000e+01 : f32
    %146 = vector.broadcast %cst_52 : f32 to vector<18x1xf32>
    %147 = arith.divf %145, %146 : vector<18x1xf32>
    %148 = vector.broadcast %140 : vector<18x1xf32> to vector<18x32xf32>
    %149 = arith.subf %132, %148 : vector<18x32xf32>
    %cst_53 = arith.constant 9.99999974E-6 : f32
    %150 = vector.broadcast %cst_53 : f32 to vector<18x1xf32>
    %151 = arith.addf %147, %150 : vector<18x1xf32>
    %152 = math.rsqrt %151 : vector<18x1xf32>
    %153 = vector.broadcast %152 : vector<18x1xf32> to vector<18x32xf32>
    %154 = arith.mulf %149, %153 : vector<18x32xf32>
    %155 = vector.broadcast %134 : vector<1x32xf32> to vector<18x32xf32>
    %156 = arith.mulf %154, %155 : vector<18x32xf32>
    %157 = vector.broadcast %136 : vector<1x32xf32> to vector<18x32xf32>
    %158 = arith.addf %156, %157 : vector<18x32xf32>
    %c0_54 = arith.constant 0 : index
    %c0_55 = arith.constant 0 : index
    %c0_56 = arith.constant 0 : index
    %159 = vector.load %arg6[%c0_54, %c0_55, %c0_56] : memref<2x32x128xf32, #tpu.memory_space<vmem>>, vector<1x32x128xf32>
    %160 = vector.shape_cast %159 : vector<1x32x128xf32> to vector<32x128xf32>
    %cst_57 = arith.constant dense<0.000000e+00> : vector<18x128xf32>
    %161 = tpu.matmul %158, %160, %cst_57 {dimension_numbers = #tpu.dot_dimension_numbers<[1], [0], [0], [1], [0, 0, 1, 1], [], []>} : vector<18x32xf32>, vector<32x128xf32>, vector<18x128xf32> -> vector<18x128xf32>
    %c0_58 = arith.constant 0 : index
    %c0_59 = arith.constant 0 : index
    %c0_60 = arith.constant 0 : index
    %162 = vector.load %arg7[%c0_58, %c0_59, %c0_60] : memref<2x1x128xf32, #tpu.memory_space<vmem>>, vector<1x1x128xf32>
    %163 = vector.shape_cast %162 : vector<1x1x128xf32> to vector<1x128xf32>
    %164 = vector.broadcast %163 : vector<1x128xf32> to vector<18x128xf32>
    %165 = arith.addf %161, %164 : vector<18x128xf32>
    %cst_61 = arith.constant 0.000000e+00 : f32
    %166 = vector.broadcast %cst_61 : f32 to vector<18x128xf32>
    %167 = arith.maximumf %165, %166 : vector<18x128xf32>
    %c0_62 = arith.constant 0 : index
    %c0_63 = arith.constant 0 : index
    %c0_64 = arith.constant 0 : index
    %168 = vector.load %arg8[%c0_62, %c0_63, %c0_64] : memref<2x128x32xf32, #tpu.memory_space<vmem>>, vector<1x128x32xf32>
    %169 = vector.shape_cast %168 : vector<1x128x32xf32> to vector<128x32xf32>
    %cst_65 = arith.constant dense<0.000000e+00> : vector<18x32xf32>
    %170 = tpu.matmul %167, %169, %cst_65 {dimension_numbers = #tpu.dot_dimension_numbers<[1], [0], [0], [1], [0, 0, 1, 1], [], []>} : vector<18x128xf32>, vector<128x32xf32>, vector<18x32xf32> -> vector<18x32xf32>
    %c0_66 = arith.constant 0 : index
    %c0_67 = arith.constant 0 : index
    %c0_68 = arith.constant 0 : index
    %171 = vector.load %arg9[%c0_66, %c0_67, %c0_68] : memref<2x1x32xf32, #tpu.memory_space<vmem>>, vector<1x1x32xf32>
    %172 = vector.shape_cast %171 : vector<1x1x32xf32> to vector<1x32xf32>
    %173 = vector.broadcast %172 : vector<1x32xf32> to vector<18x32xf32>
    %174 = arith.addf %170, %173 : vector<18x32xf32>
    %c0_69 = arith.constant 0 : index
    %c0_70 = arith.constant 0 : index
    %c0_71 = arith.constant 0 : index
    %c0_72 = arith.constant 0 : index
    %175 = vector.load %arg10[%c0_69, %c0_70, %c0_71, %c0_72] : memref<2x2x1x32xf32, #tpu.memory_space<vmem>>, vector<1x2x1x32xf32>
    %176 = vector.shape_cast %175 : vector<1x2x1x32xf32> to vector<2x1x32xf32>
    %177 = arith.addf %158, %174 : vector<18x32xf32>
    %178 = vector.extract_strided_slice %176 {offsets = [0, 0, 0], sizes = [1, 1, 32], strides = [1, 1, 1]} : vector<2x1x32xf32> to vector<1x1x32xf32>
    %179 = vector.shape_cast %178 : vector<1x1x32xf32> to vector<1x32xf32>
    %180 = vector.extract_strided_slice %176 {offsets = [1, 0, 0], sizes = [1, 1, 32], strides = [1, 1, 1]} : vector<2x1x32xf32> to vector<1x1x32xf32>
    %181 = vector.shape_cast %180 : vector<1x1x32xf32> to vector<1x32xf32>
    %cst_73 = arith.constant dense<0.000000e+00> : vector<18xf32>
    %182 = vector.multi_reduction <add>, %177, %cst_73 [1] : vector<18x32xf32> to vector<18xf32>
    %183 = vector.shape_cast %182 : vector<18xf32> to vector<18x1xf32>
    %cst_74 = arith.constant 3.200000e+01 : f32
    %184 = vector.broadcast %cst_74 : f32 to vector<18x1xf32>
    %185 = arith.divf %183, %184 : vector<18x1xf32>
    %186 = vector.broadcast %185 : vector<18x1xf32> to vector<18x32xf32>
    %187 = arith.subf %177, %186 : vector<18x32xf32>
    %188 = arith.mulf %187, %187 : vector<18x32xf32>
    %cst_75 = arith.constant dense<0.000000e+00> : vector<18xf32>
    %189 = vector.multi_reduction <add>, %188, %cst_75 [1] : vector<18x32xf32> to vector<18xf32>
    %190 = vector.shape_cast %189 : vector<18xf32> to vector<18x1xf32>
    %cst_76 = arith.constant 3.200000e+01 : f32
    %191 = vector.broadcast %cst_76 : f32 to vector<18x1xf32>
    %192 = arith.divf %190, %191 : vector<18x1xf32>
    %193 = vector.broadcast %185 : vector<18x1xf32> to vector<18x32xf32>
    %194 = arith.subf %177, %193 : vector<18x32xf32>
    %cst_77 = arith.constant 9.99999974E-6 : f32
    %195 = vector.broadcast %cst_77 : f32 to vector<18x1xf32>
    %196 = arith.addf %192, %195 : vector<18x1xf32>
    %197 = math.rsqrt %196 : vector<18x1xf32>
    %198 = vector.broadcast %197 : vector<18x1xf32> to vector<18x32xf32>
    %199 = arith.mulf %194, %198 : vector<18x32xf32>
    %200 = vector.broadcast %179 : vector<1x32xf32> to vector<18x32xf32>
    %201 = arith.mulf %199, %200 : vector<18x32xf32>
    %202 = vector.broadcast %181 : vector<1x32xf32> to vector<18x32xf32>
    %203 = arith.addf %201, %202 : vector<18x32xf32>
    %c1 = arith.constant 1 : index
    %c0_78 = arith.constant 0 : index
    %c0_79 = arith.constant 0 : index
    %c0_80 = arith.constant 0 : index
    %204 = vector.load %arg1[%c1, %c0_78, %c0_79, %c0_80] : memref<2x3x32x32xf32, #tpu.memory_space<vmem>>, vector<1x3x32x32xf32>
    %205 = vector.shape_cast %204 : vector<1x3x32x32xf32> to vector<3x32x32xf32>
    %c1_81 = arith.constant 1 : index
    %c0_82 = arith.constant 0 : index
    %c0_83 = arith.constant 0 : index
    %c0_84 = arith.constant 0 : index
    %206 = vector.load %arg2[%c1_81, %c0_82, %c0_83, %c0_84] : memref<2x3x1x32xf32, #tpu.memory_space<vmem>>, vector<1x3x1x32xf32>
    %207 = vector.shape_cast %206 : vector<1x3x1x32xf32> to vector<3x1x32xf32>
    %208 = vector.extract_strided_slice %205 {offsets = [0, 0, 0], sizes = [1, 32, 32], strides = [1, 1, 1]} : vector<3x32x32xf32> to vector<1x32x32xf32>
    %209 = vector.shape_cast %208 : vector<1x32x32xf32> to vector<32x32xf32>
    %cst_85 = arith.constant dense<0.000000e+00> : vector<18x32xf32>
    %210 = tpu.matmul %203, %209, %cst_85 {dimension_numbers = #tpu.dot_dimension_numbers<[1], [0], [0], [1], [0, 0, 1, 1], [], []>} : vector<18x32xf32>, vector<32x32xf32>, vector<18x32xf32> -> vector<18x32xf32>
    %211 = vector.extract_strided_slice %207 {offsets = [0, 0, 0], sizes = [1, 1, 32], strides = [1, 1, 1]} : vector<3x1x32xf32> to vector<1x1x32xf32>
    %212 = vector.shape_cast %211 : vector<1x1x32xf32> to vector<1x32xf32>
    %213 = vector.broadcast %212 : vector<1x32xf32> to vector<18x32xf32>
    %214 = arith.addf %210, %213 : vector<18x32xf32>
    %215 = vector.extract_strided_slice %205 {offsets = [1, 0, 0], sizes = [1, 32, 32], strides = [1, 1, 1]} : vector<3x32x32xf32> to vector<1x32x32xf32>
    %216 = vector.shape_cast %215 : vector<1x32x32xf32> to vector<32x32xf32>
    %cst_86 = arith.constant dense<0.000000e+00> : vector<18x32xf32>
    %217 = tpu.matmul %203, %216, %cst_86 {dimension_numbers = #tpu.dot_dimension_numbers<[1], [0], [0], [1], [0, 0, 1, 1], [], []>} : vector<18x32xf32>, vector<32x32xf32>, vector<18x32xf32> -> vector<18x32xf32>
    %218 = vector.extract_strided_slice %207 {offsets = [1, 0, 0], sizes = [1, 1, 32], strides = [1, 1, 1]} : vector<3x1x32xf32> to vector<1x1x32xf32>
    %219 = vector.shape_cast %218 : vector<1x1x32xf32> to vector<1x32xf32>
    %220 = vector.broadcast %219 : vector<1x32xf32> to vector<18x32xf32>
    %221 = arith.addf %217, %220 : vector<18x32xf32>
    %222 = vector.extract_strided_slice %205 {offsets = [2, 0, 0], sizes = [1, 32, 32], strides = [1, 1, 1]} : vector<3x32x32xf32> to vector<1x32x32xf32>
    %223 = vector.shape_cast %222 : vector<1x32x32xf32> to vector<32x32xf32>
    %cst_87 = arith.constant dense<0.000000e+00> : vector<18x32xf32>
    %224 = tpu.matmul %203, %223, %cst_87 {dimension_numbers = #tpu.dot_dimension_numbers<[1], [0], [0], [1], [0, 0, 1, 1], [], []>} : vector<18x32xf32>, vector<32x32xf32>, vector<18x32xf32> -> vector<18x32xf32>
    %225 = vector.extract_strided_slice %207 {offsets = [2, 0, 0], sizes = [1, 1, 32], strides = [1, 1, 1]} : vector<3x1x32xf32> to vector<1x1x32xf32>
    %226 = vector.shape_cast %225 : vector<1x1x32xf32> to vector<1x32xf32>
    %227 = vector.broadcast %226 : vector<1x32xf32> to vector<18x32xf32>
    %228 = arith.addf %224, %227 : vector<18x32xf32>
    %229 = vector.extract_strided_slice %214 {offsets = [0, 0], sizes = [18, 8], strides = [1, 1]} : vector<18x32xf32> to vector<18x8xf32>
    %230 = vector.extract_strided_slice %221 {offsets = [0, 0], sizes = [18, 8], strides = [1, 1]} : vector<18x32xf32> to vector<18x8xf32>
    %231 = vector.extract_strided_slice %228 {offsets = [0, 0], sizes = [18, 8], strides = [1, 1]} : vector<18x32xf32> to vector<18x8xf32>
    %cst_88 = arith.constant dense<0.000000e+00> : vector<18x18xf32>
    %232 = tpu.matmul %229, %230, %cst_88 {dimension_numbers = #tpu.dot_dimension_numbers<[1], [1], [0], [0], [0, 0, 1, 0], [], []>} : vector<18x8xf32>, vector<18x8xf32>, vector<18x18xf32> -> vector<18x18xf32>
    %cst_89 = arith.constant 0.353553385 : f32
    %233 = vector.broadcast %cst_89 : f32 to vector<18x18xf32>
    %234 = arith.mulf %232, %233 : vector<18x18xf32>
    %235 = arith.addf %234, %28 : vector<18x18xf32>
    %cst_90 = arith.constant dense<0xFF800000> : vector<18xf32>
    %236 = vector.multi_reduction <maximumf>, %235, %cst_90 [1] : vector<18x18xf32> to vector<18xf32>
    %237 = vector.shape_cast %236 : vector<18xf32> to vector<18x1xf32>
    %238 = vector.broadcast %237 : vector<18x1xf32> to vector<18x18xf32>
    %239 = arith.subf %235, %238 : vector<18x18xf32>
    %240 = math.exp %239 : vector<18x18xf32>
    %cst_91 = arith.constant dense<0.000000e+00> : vector<18xf32>
    %241 = vector.multi_reduction <add>, %240, %cst_91 [1] : vector<18x18xf32> to vector<18xf32>
    %242 = vector.shape_cast %241 : vector<18xf32> to vector<18x1xf32>
    %243 = vector.broadcast %242 : vector<18x1xf32> to vector<18x18xf32>
    %244 = arith.divf %240, %243 : vector<18x18xf32>
    %cst_92 = arith.constant dense<0.000000e+00> : vector<18x8xf32>
    %245 = tpu.matmul %244, %231, %cst_92 {dimension_numbers = #tpu.dot_dimension_numbers<[1], [0], [0], [1], [0, 0, 1, 1], [], []>} : vector<18x18xf32>, vector<18x8xf32>, vector<18x8xf32> -> vector<18x8xf32>
    %246 = vector.extract_strided_slice %214 {offsets = [0, 8], sizes = [18, 8], strides = [1, 1]} : vector<18x32xf32> to vector<18x8xf32>
    %247 = vector.extract_strided_slice %221 {offsets = [0, 8], sizes = [18, 8], strides = [1, 1]} : vector<18x32xf32> to vector<18x8xf32>
    %248 = vector.extract_strided_slice %228 {offsets = [0, 8], sizes = [18, 8], strides = [1, 1]} : vector<18x32xf32> to vector<18x8xf32>
    %cst_93 = arith.constant dense<0.000000e+00> : vector<18x18xf32>
    %249 = tpu.matmul %246, %247, %cst_93 {dimension_numbers = #tpu.dot_dimension_numbers<[1], [1], [0], [0], [0, 0, 1, 0], [], []>} : vector<18x8xf32>, vector<18x8xf32>, vector<18x18xf32> -> vector<18x18xf32>
    %cst_94 = arith.constant 0.353553385 : f32
    %250 = vector.broadcast %cst_94 : f32 to vector<18x18xf32>
    %251 = arith.mulf %249, %250 : vector<18x18xf32>
    %252 = arith.addf %251, %28 : vector<18x18xf32>
    %cst_95 = arith.constant dense<0xFF800000> : vector<18xf32>
    %253 = vector.multi_reduction <maximumf>, %252, %cst_95 [1] : vector<18x18xf32> to vector<18xf32>
    %254 = vector.shape_cast %253 : vector<18xf32> to vector<18x1xf32>
    %255 = vector.broadcast %254 : vector<18x1xf32> to vector<18x18xf32>
    %256 = arith.subf %252, %255 : vector<18x18xf32>
    %257 = math.exp %256 : vector<18x18xf32>
    %cst_96 = arith.constant dense<0.000000e+00> : vector<18xf32>
    %258 = vector.multi_reduction <add>, %257, %cst_96 [1] : vector<18x18xf32> to vector<18xf32>
    %259 = vector.shape_cast %258 : vector<18xf32> to vector<18x1xf32>
    %260 = vector.broadcast %259 : vector<18x1xf32> to vector<18x18xf32>
    %261 = arith.divf %257, %260 : vector<18x18xf32>
    %cst_97 = arith.constant dense<0.000000e+00> : vector<18x8xf32>
    %262 = tpu.matmul %261, %248, %cst_97 {dimension_numbers = #tpu.dot_dimension_numbers<[1], [0], [0], [1], [0, 0, 1, 1], [], []>} : vector<18x18xf32>, vector<18x8xf32>, vector<18x8xf32> -> vector<18x8xf32>
    %263 = vector.extract_strided_slice %214 {offsets = [0, 16], sizes = [18, 8], strides = [1, 1]} : vector<18x32xf32> to vector<18x8xf32>
    %264 = vector.extract_strided_slice %221 {offsets = [0, 16], sizes = [18, 8], strides = [1, 1]} : vector<18x32xf32> to vector<18x8xf32>
    %265 = vector.extract_strided_slice %228 {offsets = [0, 16], sizes = [18, 8], strides = [1, 1]} : vector<18x32xf32> to vector<18x8xf32>
    %cst_98 = arith.constant dense<0.000000e+00> : vector<18x18xf32>
    %266 = tpu.matmul %263, %264, %cst_98 {dimension_numbers = #tpu.dot_dimension_numbers<[1], [1], [0], [0], [0, 0, 1, 0], [], []>} : vector<18x8xf32>, vector<18x8xf32>, vector<18x18xf32> -> vector<18x18xf32>
    %cst_99 = arith.constant 0.353553385 : f32
    %267 = vector.broadcast %cst_99 : f32 to vector<18x18xf32>
    %268 = arith.mulf %266, %267 : vector<18x18xf32>
    %269 = arith.addf %268, %28 : vector<18x18xf32>
    %cst_100 = arith.constant dense<0xFF800000> : vector<18xf32>
    %270 = vector.multi_reduction <maximumf>, %269, %cst_100 [1] : vector<18x18xf32> to vector<18xf32>
    %271 = vector.shape_cast %270 : vector<18xf32> to vector<18x1xf32>
    %272 = vector.broadcast %271 : vector<18x1xf32> to vector<18x18xf32>
    %273 = arith.subf %269, %272 : vector<18x18xf32>
    %274 = math.exp %273 : vector<18x18xf32>
    %cst_101 = arith.constant dense<0.000000e+00> : vector<18xf32>
    %275 = vector.multi_reduction <add>, %274, %cst_101 [1] : vector<18x18xf32> to vector<18xf32>
    %276 = vector.shape_cast %275 : vector<18xf32> to vector<18x1xf32>
    %277 = vector.broadcast %276 : vector<18x1xf32> to vector<18x18xf32>
    %278 = arith.divf %274, %277 : vector<18x18xf32>
    %cst_102 = arith.constant dense<0.000000e+00> : vector<18x8xf32>
    %279 = tpu.matmul %278, %265, %cst_102 {dimension_numbers = #tpu.dot_dimension_numbers<[1], [0], [0], [1], [0, 0, 1, 1], [], []>} : vector<18x18xf32>, vector<18x8xf32>, vector<18x8xf32> -> vector<18x8xf32>
    %280 = vector.extract_strided_slice %214 {offsets = [0, 24], sizes = [18, 8], strides = [1, 1]} : vector<18x32xf32> to vector<18x8xf32>
    %281 = vector.extract_strided_slice %221 {offsets = [0, 24], sizes = [18, 8], strides = [1, 1]} : vector<18x32xf32> to vector<18x8xf32>
    %282 = vector.extract_strided_slice %228 {offsets = [0, 24], sizes = [18, 8], strides = [1, 1]} : vector<18x32xf32> to vector<18x8xf32>
    %cst_103 = arith.constant dense<0.000000e+00> : vector<18x18xf32>
    %283 = tpu.matmul %280, %281, %cst_103 {dimension_numbers = #tpu.dot_dimension_numbers<[1], [1], [0], [0], [0, 0, 1, 0], [], []>} : vector<18x8xf32>, vector<18x8xf32>, vector<18x18xf32> -> vector<18x18xf32>
    %cst_104 = arith.constant 0.353553385 : f32
    %284 = vector.broadcast %cst_104 : f32 to vector<18x18xf32>
    %285 = arith.mulf %283, %284 : vector<18x18xf32>
    %286 = arith.addf %285, %28 : vector<18x18xf32>
    %cst_105 = arith.constant dense<0xFF800000> : vector<18xf32>
    %287 = vector.multi_reduction <maximumf>, %286, %cst_105 [1] : vector<18x18xf32> to vector<18xf32>
    %288 = vector.shape_cast %287 : vector<18xf32> to vector<18x1xf32>
    %289 = vector.broadcast %288 : vector<18x1xf32> to vector<18x18xf32>
    %290 = arith.subf %286, %289 : vector<18x18xf32>
    %291 = math.exp %290 : vector<18x18xf32>
    %cst_106 = arith.constant dense<0.000000e+00> : vector<18xf32>
    %292 = vector.multi_reduction <add>, %291, %cst_106 [1] : vector<18x18xf32> to vector<18xf32>
    %293 = vector.shape_cast %292 : vector<18xf32> to vector<18x1xf32>
    %294 = vector.broadcast %293 : vector<18x1xf32> to vector<18x18xf32>
    %295 = arith.divf %291, %294 : vector<18x18xf32>
    %cst_107 = arith.constant dense<0.000000e+00> : vector<18x8xf32>
    %296 = tpu.matmul %295, %282, %cst_107 {dimension_numbers = #tpu.dot_dimension_numbers<[1], [0], [0], [1], [0, 0, 1, 1], [], []>} : vector<18x18xf32>, vector<18x8xf32>, vector<18x8xf32> -> vector<18x8xf32>
    %297 = tpu.concatenate %245, %262, %279, %296 in 1 : vector<18x8xf32>, vector<18x8xf32>, vector<18x8xf32>, vector<18x8xf32> -> vector<18x32xf32>
    %c1_108 = arith.constant 1 : index
    %c0_109 = arith.constant 0 : index
    %c0_110 = arith.constant 0 : index
    %298 = vector.load %arg3[%c1_108, %c0_109, %c0_110] : memref<2x32x32xf32, #tpu.memory_space<vmem>>, vector<1x32x32xf32>
    %299 = vector.shape_cast %298 : vector<1x32x32xf32> to vector<32x32xf32>
    %cst_111 = arith.constant dense<0.000000e+00> : vector<18x32xf32>
    %300 = tpu.matmul %297, %299, %cst_111 {dimension_numbers = #tpu.dot_dimension_numbers<[1], [0], [0], [1], [0, 0, 1, 1], [], []>} : vector<18x32xf32>, vector<32x32xf32>, vector<18x32xf32> -> vector<18x32xf32>
    %c1_112 = arith.constant 1 : index
    %c0_113 = arith.constant 0 : index
    %c0_114 = arith.constant 0 : index
    %301 = vector.load %arg4[%c1_112, %c0_113, %c0_114] : memref<2x1x32xf32, #tpu.memory_space<vmem>>, vector<1x1x32xf32>
    %302 = vector.shape_cast %301 : vector<1x1x32xf32> to vector<1x32xf32>
    %303 = vector.broadcast %302 : vector<1x32xf32> to vector<18x32xf32>
    %304 = arith.addf %300, %303 : vector<18x32xf32>
    %c1_115 = arith.constant 1 : index
    %c0_116 = arith.constant 0 : index
    %c0_117 = arith.constant 0 : index
    %c0_118 = arith.constant 0 : index
    %305 = vector.load %arg5[%c1_115, %c0_116, %c0_117, %c0_118] : memref<2x2x1x32xf32, #tpu.memory_space<vmem>>, vector<1x2x1x32xf32>
    %306 = vector.shape_cast %305 : vector<1x2x1x32xf32> to vector<2x1x32xf32>
    %307 = arith.addf %203, %304 : vector<18x32xf32>
    %308 = vector.extract_strided_slice %306 {offsets = [0, 0, 0], sizes = [1, 1, 32], strides = [1, 1, 1]} : vector<2x1x32xf32> to vector<1x1x32xf32>
    %309 = vector.shape_cast %308 : vector<1x1x32xf32> to vector<1x32xf32>
    %310 = vector.extract_strided_slice %306 {offsets = [1, 0, 0], sizes = [1, 1, 32], strides = [1, 1, 1]} : vector<2x1x32xf32> to vector<1x1x32xf32>
    %311 = vector.shape_cast %310 : vector<1x1x32xf32> to vector<1x32xf32>
    %cst_119 = arith.constant dense<0.000000e+00> : vector<18xf32>
    %312 = vector.multi_reduction <add>, %307, %cst_119 [1] : vector<18x32xf32> to vector<18xf32>
    %313 = vector.shape_cast %312 : vector<18xf32> to vector<18x1xf32>
    %cst_120 = arith.constant 3.200000e+01 : f32
    %314 = vector.broadcast %cst_120 : f32 to vector<18x1xf32>
    %315 = arith.divf %313, %314 : vector<18x1xf32>
    %316 = vector.broadcast %315 : vector<18x1xf32> to vector<18x32xf32>
    %317 = arith.subf %307, %316 : vector<18x32xf32>
    %318 = arith.mulf %317, %317 : vector<18x32xf32>
    %cst_121 = arith.constant dense<0.000000e+00> : vector<18xf32>
    %319 = vector.multi_reduction <add>, %318, %cst_121 [1] : vector<18x32xf32> to vector<18xf32>
    %320 = vector.shape_cast %319 : vector<18xf32> to vector<18x1xf32>
    %cst_122 = arith.constant 3.200000e+01 : f32
    %321 = vector.broadcast %cst_122 : f32 to vector<18x1xf32>
    %322 = arith.divf %320, %321 : vector<18x1xf32>
    %323 = vector.broadcast %315 : vector<18x1xf32> to vector<18x32xf32>
    %324 = arith.subf %307, %323 : vector<18x32xf32>
    %cst_123 = arith.constant 9.99999974E-6 : f32
    %325 = vector.broadcast %cst_123 : f32 to vector<18x1xf32>
    %326 = arith.addf %322, %325 : vector<18x1xf32>
    %327 = math.rsqrt %326 : vector<18x1xf32>
    %328 = vector.broadcast %327 : vector<18x1xf32> to vector<18x32xf32>
    %329 = arith.mulf %324, %328 : vector<18x32xf32>
    %330 = vector.broadcast %309 : vector<1x32xf32> to vector<18x32xf32>
    %331 = arith.mulf %329, %330 : vector<18x32xf32>
    %332 = vector.broadcast %311 : vector<1x32xf32> to vector<18x32xf32>
    %333 = arith.addf %331, %332 : vector<18x32xf32>
    %c1_124 = arith.constant 1 : index
    %c0_125 = arith.constant 0 : index
    %c0_126 = arith.constant 0 : index
    %334 = vector.load %arg6[%c1_124, %c0_125, %c0_126] : memref<2x32x128xf32, #tpu.memory_space<vmem>>, vector<1x32x128xf32>
    %335 = vector.shape_cast %334 : vector<1x32x128xf32> to vector<32x128xf32>
    %cst_127 = arith.constant dense<0.000000e+00> : vector<18x128xf32>
    %336 = tpu.matmul %333, %335, %cst_127 {dimension_numbers = #tpu.dot_dimension_numbers<[1], [0], [0], [1], [0, 0, 1, 1], [], []>} : vector<18x32xf32>, vector<32x128xf32>, vector<18x128xf32> -> vector<18x128xf32>
    %c1_128 = arith.constant 1 : index
    %c0_129 = arith.constant 0 : index
    %c0_130 = arith.constant 0 : index
    %337 = vector.load %arg7[%c1_128, %c0_129, %c0_130] : memref<2x1x128xf32, #tpu.memory_space<vmem>>, vector<1x1x128xf32>
    %338 = vector.shape_cast %337 : vector<1x1x128xf32> to vector<1x128xf32>
    %339 = vector.broadcast %338 : vector<1x128xf32> to vector<18x128xf32>
    %340 = arith.addf %336, %339 : vector<18x128xf32>
    %cst_131 = arith.constant 0.000000e+00 : f32
    %341 = vector.broadcast %cst_131 : f32 to vector<18x128xf32>
    %342 = arith.maximumf %340, %341 : vector<18x128xf32>
    %c1_132 = arith.constant 1 : index
    %c0_133 = arith.constant 0 : index
    %c0_134 = arith.constant 0 : index
    %343 = vector.load %arg8[%c1_132, %c0_133, %c0_134] : memref<2x128x32xf32, #tpu.memory_space<vmem>>, vector<1x128x32xf32>
    %344 = vector.shape_cast %343 : vector<1x128x32xf32> to vector<128x32xf32>
    %cst_135 = arith.constant dense<0.000000e+00> : vector<18x32xf32>
    %345 = tpu.matmul %342, %344, %cst_135 {dimension_numbers = #tpu.dot_dimension_numbers<[1], [0], [0], [1], [0, 0, 1, 1], [], []>} : vector<18x128xf32>, vector<128x32xf32>, vector<18x32xf32> -> vector<18x32xf32>
    %c1_136 = arith.constant 1 : index
    %c0_137 = arith.constant 0 : index
    %c0_138 = arith.constant 0 : index
    %346 = vector.load %arg9[%c1_136, %c0_137, %c0_138] : memref<2x1x32xf32, #tpu.memory_space<vmem>>, vector<1x1x32xf32>
    %347 = vector.shape_cast %346 : vector<1x1x32xf32> to vector<1x32xf32>
    %348 = vector.broadcast %347 : vector<1x32xf32> to vector<18x32xf32>
    %349 = arith.addf %345, %348 : vector<18x32xf32>
    %c1_139 = arith.constant 1 : index
    %c0_140 = arith.constant 0 : index
    %c0_141 = arith.constant 0 : index
    %c0_142 = arith.constant 0 : index
    %350 = vector.load %arg10[%c1_139, %c0_140, %c0_141, %c0_142] : memref<2x2x1x32xf32, #tpu.memory_space<vmem>>, vector<1x2x1x32xf32>
    %351 = vector.shape_cast %350 : vector<1x2x1x32xf32> to vector<2x1x32xf32>
    %352 = arith.addf %333, %349 : vector<18x32xf32>
    %353 = vector.extract_strided_slice %351 {offsets = [0, 0, 0], sizes = [1, 1, 32], strides = [1, 1, 1]} : vector<2x1x32xf32> to vector<1x1x32xf32>
    %354 = vector.shape_cast %353 : vector<1x1x32xf32> to vector<1x32xf32>
    %355 = vector.extract_strided_slice %351 {offsets = [1, 0, 0], sizes = [1, 1, 32], strides = [1, 1, 1]} : vector<2x1x32xf32> to vector<1x1x32xf32>
    %356 = vector.shape_cast %355 : vector<1x1x32xf32> to vector<1x32xf32>
    %cst_143 = arith.constant dense<0.000000e+00> : vector<18xf32>
    %357 = vector.multi_reduction <add>, %352, %cst_143 [1] : vector<18x32xf32> to vector<18xf32>
    %358 = vector.shape_cast %357 : vector<18xf32> to vector<18x1xf32>
    %cst_144 = arith.constant 3.200000e+01 : f32
    %359 = vector.broadcast %cst_144 : f32 to vector<18x1xf32>
    %360 = arith.divf %358, %359 : vector<18x1xf32>
    %361 = vector.broadcast %360 : vector<18x1xf32> to vector<18x32xf32>
    %362 = arith.subf %352, %361 : vector<18x32xf32>
    %363 = arith.mulf %362, %362 : vector<18x32xf32>
    %cst_145 = arith.constant dense<0.000000e+00> : vector<18xf32>
    %364 = vector.multi_reduction <add>, %363, %cst_145 [1] : vector<18x32xf32> to vector<18xf32>
    %365 = vector.shape_cast %364 : vector<18xf32> to vector<18x1xf32>
    %cst_146 = arith.constant 3.200000e+01 : f32
    %366 = vector.broadcast %cst_146 : f32 to vector<18x1xf32>
    %367 = arith.divf %365, %366 : vector<18x1xf32>
    %368 = vector.broadcast %360 : vector<18x1xf32> to vector<18x32xf32>
    %369 = arith.subf %352, %368 : vector<18x32xf32>
    %cst_147 = arith.constant 9.99999974E-6 : f32
    %370 = vector.broadcast %cst_147 : f32 to vector<18x1xf32>
    %371 = arith.addf %367, %370 : vector<18x1xf32>
    %372 = math.rsqrt %371 : vector<18x1xf32>
    %373 = vector.broadcast %372 : vector<18x1xf32> to vector<18x32xf32>
    %374 = arith.mulf %369, %373 : vector<18x32xf32>
    %375 = vector.broadcast %354 : vector<1x32xf32> to vector<18x32xf32>
    %376 = arith.mulf %374, %375 : vector<18x32xf32>
    %377 = vector.broadcast %356 : vector<1x32xf32> to vector<18x32xf32>
    %378 = arith.addf %376, %377 : vector<18x32xf32>
    %379 = arith.addf %378, %0 : vector<18x32xf32>
    %380 = vector.extract_strided_slice %379 {offsets = [1, 0], sizes = [8, 32], strides = [1, 1]} : vector<18x32xf32> to vector<8x32xf32>
    %381 = vector.extract_strided_slice %379 {offsets = [10, 0], sizes = [8, 32], strides = [1, 1]} : vector<18x32xf32> to vector<8x32xf32>
    %382 = tpu.concatenate %380, %381 in 0 : vector<8x32xf32>, vector<8x32xf32> -> vector<16x32xf32>
    %c0_148 = arith.constant 0 : index
    %c0_149 = arith.constant 0 : index
    %383 = vector.load %arg11[%c0_148, %c0_149] : memref<32x64xf32, #tpu.memory_space<vmem>>, vector<32x64xf32>
    %cst_150 = arith.constant dense<0.000000e+00> : vector<16x64xf32>
    %384 = tpu.matmul %382, %383, %cst_150 {dimension_numbers = #tpu.dot_dimension_numbers<[1], [0], [0], [1], [0, 0, 1, 1], [], []>} : vector<16x32xf32>, vector<32x64xf32>, vector<16x64xf32> -> vector<16x64xf32>
    %c0_151 = arith.constant 0 : index
    %c0_152 = arith.constant 0 : index
    %385 = vector.load %arg12[%c0_151, %c0_152] : memref<1x64xf32, #tpu.memory_space<vmem>>, vector<1x64xf32>
    %386 = vector.broadcast %385 : vector<1x64xf32> to vector<16x64xf32>
    %387 = arith.addf %384, %386 : vector<16x64xf32>
    %c0_153 = arith.constant 0 : index
    %c0_154 = arith.constant 0 : index
    %388 = vector.load %arg15[%c0_153, %c0_154] : memref<16x64xf32, #tpu.memory_space<vmem>>, vector<16x64xf32>
    tpu.vector_store %arg15[%c0_153, %c0_154], %387 {strides = array<i32>} : memref<16x64xf32, #tpu.memory_space<vmem>>, vector<16x64xf32>,
    %c0_155 = arith.constant 0 : index
    %c0_156 = arith.constant 0 : index
    %389 = vector.load %arg13[%c0_155, %c0_156] : memref<16x64xf32, #tpu.memory_space<vmem>>, vector<16x64xf32>
    %390 = arith.subf %387, %389 : vector<16x64xf32>
    %c0_157 = arith.constant 0 : index
    %c0_158 = arith.constant 0 : index
    %391 = vector.load %arg14[%c0_157, %c0_158] : memref<16x1xf32, #tpu.memory_space<vmem>>, vector<16x1xf32>
    %392 = arith.mulf %390, %390 : vector<16x64xf32>
    %393 = vector.broadcast %391 : vector<16x1xf32> to vector<16x64xf32>
    %394 = arith.mulf %392, %393 : vector<16x64xf32>
    %395 = vector.shape_cast %394 : vector<16x64xf32> to vector<1x16x64xf32>
    %cst_159 = arith.constant dense<0.000000e+00> : vector<1xf32>
    %396 = vector.multi_reduction <add>, %395, %cst_159 [1, 2] : vector<1x16x64xf32> to vector<1xf32>
    %397 = vector.shape_cast %396 : vector<1xf32> to vector<1x1x1xf32>
    %398 = vector.extract %397[0, 0, 0] : f32 from vector<1x1x1xf32>
    %cst_160 = arith.constant 1.562500e-02 : f32
    %399 = arith.mulf %398, %cst_160 : f32
    %400 = vector.shape_cast %391 : vector<16x1xf32> to vector<1x16x1xf32>
    %cst_161 = arith.constant dense<0.000000e+00> : vector<1xf32>
    %401 = vector.multi_reduction <add>, %400, %cst_161 [1, 2] : vector<1x16x1xf32> to vector<1xf32>
    %402 = vector.shape_cast %401 : vector<1xf32> to vector<1x1x1xf32>
    %403 = vector.extract %402[0, 0, 0] : f32 from vector<1x1x1xf32>
    %404 = arith.divf %399, %403 : f32
    %c0_162 = arith.constant 0 : index
    %c0_163 = arith.constant 0 : index
    %405 = memref.load %arg16[%c0_162, %c0_163] : memref<1x1xf32, #tpu.memory_space<smem>>
    memref.store %404, %arg16[%c0_162, %c0_163] : memref<1x1xf32, #tpu.memory_space<smem>>
    return
  }
}

</mosaic_0001>

<bundles_post_ra>
// kernel: mae_forward.3
= control target key start
LH: loop header
LB: loop body
LE: loop exit
PB: predicated region body
PF: predicated region fallthrough
CT: control target
= control target key end

     0   :  { %vm34_vm0 = vcmask 523264   ;;  %vm119_vm1 = vcmask 261120   ;;  %s243_s1 = inlined_call_operand.vmem [shape: f32[64,32], index: 1, kind: input, shape index: {}]   ;;  %s244_s0 = inlined_call_operand.vmem [shape: f32[16,64], index: 0, kind: input, shape index: {}]   ;;  %s245_s2 = inlined_call_operand.vmem [shape: f32[1,32], index: 2, kind: input, shape index: {}]   ;;  %s246_s3 = inlined_call_operand.vmem [shape: f32[8,32], index: 3, kind: input, shape index: {}]   ;;  %s247_s4 = inlined_call_operand.vmem [shape: f32[16,32], index: 4, kind: output, shape index: {}]  }
   0x1   :  { %v19_v0 = vld [vmem:[%s243_s1] sm:$0xff]  ;;  %v20_v1 = vld [vmem:[%s243_s1 + $0x8] sm:$0xff]  ;;  %v21_v2 = vld [vmem:[%s243_s1 + $0x10] sm:$0xff] }
   0x2   :  { %v158_v3 = vpack.c.bf16 %v20_v1, %v19_v0  ;;  %v22_v4 = vld [vmem:[%s243_s1 + $0x18] sm:$0xff]  ;;  %v23_v6 = vld [vmem:[%s243_s1 + $0x20] sm:$0xff]  ;;  %v24_v7 = vld [vmem:[%s243_s1 + $0x28] sm:$0xff] }
   0x3   :  { %v162_v5 = vpack.c.bf16 %v22_v4, %v21_v2  ;;  %v17_v8 = vld [vmem:[%s244_s0] sm:$0xff]  ;;  %v166_v9 = vpack.c.bf16 %v24_v7, %v23_v6  ;;  %v25_v10 = vld [vmem:[%s243_s1 + $0x30] sm:$0xff]  ;;  %v26_v11 = vld [vmem:[%s243_s1 + $0x38] sm:$0xff] }
   0x4   :  { %159 = vmatprep.subr.bf16.mxu0 %v158_v3  ;;  %155 = vmatprep.mubr.msk.f32.mxu0 %vm34_vm0, %v17_v8  ;;  %v170_v12 = vpack.c.bf16 %v26_v11, %v25_v10  ;;  %v18_v13 = vld [vmem:[%s244_s0 + $0x8] sm:$0xff]  ;;  %v126_v14 = vld [vmem:[%s245_s2] ss:$0 sm:$0xff] }
   0x5   :  { %161 = vmatpush3.bf16.msra.mxu0 %v158_v3  ;;  %v116_v16 = vld [vmem:[%s246_s3] sm:$0xff] }
   0x6   :  { %163 = vmatprep.subr.bf16.mxu0 %v162_v5 }
   0x9   :  { %165 = vmatpush3.bf16.msra.mxu0 %v162_v5 }
   0xa   :  { %167 = vmatprep.subr.bf16.mxu0 %v166_v9 }
   0xd   :  { %169 = vmatpush3.bf16.msra.mxu0 %v166_v9 }
   0xe   :  { %171 = vmatprep.subr.bf16.mxu0 %v170_v12 }
  0x11   :  { %173 = vmatpush3.bf16.msra.mxu0 %v170_v12 }
  0x14   :  { %156 = vmatmul.mubr.msk.f32.vlgmr.msra.gmra.mrb[0].mxu0 %vm34_vm0, %v18_v13 }
  0xe7   :  { %v157_v15 = vpop.f32.mrb[0].mxu0 }
  0xe8   :  { %v113_v17 = vadd.f32 %v157_v15, %v126_v14  ;;  %v107_v18 = vpop.f32.mrb[1].mxu0 }
  0xe9   :  { %v108_v19 = vadd.f32 %v126_v14, %v107_v18 }
  0xea   :  { %v118_v20 = vadd.f32 %v116_v16, %v113_v17 }
  0xeb   :  { %v117_v21 = vadd.f32 %v116_v16, %v108_v19 }
  0xec   :  { %121 = vst.msk [vmem:[%s247_s4 + $0x8] sm:$0xff] %vm119_vm1, %v118_v20 }
  0xed   :  { %120 = vst.msk [vmem:[%s247_s4] sm:$0xff] %vm119_vm1, %v117_v21 }

// kernel: mae_forward.4
= control target key start
LH: loop header
LB: loop body
LE: loop exit
PB: predicated region body
PF: predicated region fallthrough
CT: control target
= control target key end

     0   :  { %v3343_v0 = vmov 0.0|0.0   ;;  %vm3344_vm0 = vmmov 0   ;;  %v3345_v4 = vmov 0.0   ;;  %vm86_vm1 = vcmask 261120   ;;  %s3346_s29 = smov 120   ;;  %s3347_s30 = smov 112   ;;  %s3973_s1 = inlined_call_operand.vmem [shape: f32[2,3,32,32], index: 1, kind: input, shape index: {}]   ;;  %s3974_s0 = inlined_call_operand.vmem [shape: f32[6,32], index: 0, kind: input, shape index: {}]   ;;  %s3975_s2 = inlined_call_operand.vmem [shape: f32[2,3,1,32], index: 2, kind: input, shape index: {}]   ;;  %s3976_s3 = inlined_call_operand.vmem [shape: f32[2,32,32], index: 3, kind: input, shape index: {}]   ;;  %s3977_s4 = inlined_call_operand.vmem [shape: f32[2,1,32], index: 4, kind: input, shape index: {}]   ;;  %s3978_s6 = inlined_call_operand.vmem [shape: f32[2,32,128], index: 6, kind: input, shape index: {}]   ;;  %s3979_s8 = inlined_call_operand.vmem [shape: f32[2,128,32], index: 8, kind: input, shape index: {}]   ;;  %s3980_s5 = inlined_call_operand.vmem [shape: f32[2,2,1,32], index: 5, kind: input, shape index: {}]   ;;  %s3981_s7 = inlined_call_operand.vmem [shape: f32[2,1,128], index: 7, kind: input, shape index: {}]   ;;  %s3982_s9 = inlined_call_operand.vmem [shape: f32[2,1,32], index: 9, kind: input, shape index: {}]   ;;  %s3983_s10 = inlined_call_operand.vmem [shape: f32[2,2,1,32], index: 10, kind: input, shape index: {}]   ;;  %s3984_s11 = inlined_call_operand.vmem [shape: f32[32,32], index: 11, kind: input, shape index: {}]   ;;  %s3985_s12 = inlined_call_operand.vmem [shape: f32[1,32], index: 12, kind: input, shape index: {}]   ;;  %s3986_s13 = inlined_call_operand.vmem [shape: f32[6,32], index: 13, kind: output, shape index: {}]  }
   0x1   :  { %3179 = vmatprep.subr.bf16.mxu1 %v3343_v0  ;;  %v65_v1 = vld [vmem:[%s3973_s1] sm:$0xff]  ;;  %v66_v2 = vld [vmem:[%s3973_s1 + $0x8] sm:$0xff]  ;;  %v67_v3 = vld [vmem:[%s3973_s1 + $0x10] sm:$0xff]  ;;  %2916 = vmatprep.mubr.msk.f32.mxu1 %vm3344_vm0, %v3345_v4  ;;  %vm312_vm2 = vcmask 64512   ;;  %s3348_s14 = smov 104   ;;  %v45_v29 = vlaneseq  ;;  %vm391_vm14 = vcmask 46080  }
   0x2   :  { %v3180_v5 = vpack.c.bf16 %v66_v2, %v65_v1  ;;  %v68_v6 = vld [vmem:[%s3973_s1 + $0x18] sm:$0xff]  ;;  %3191 = vmatprep.subr.bf16.mxu0 %v3343_v0  ;;  %2938 = vmatprep.mubr.msk.f32.mxu0 %vm3344_vm0, %v3345_v4  ;;  %v69_v8 = vld [vmem:[%s3973_s1 + $0x20] sm:$0xff]  ;;  %v70_v9 = vld [vmem:[%s3973_s1 + $0x28] sm:$0xff]  ;;  %v3349_v33 = vmov -1e+09   ;;  %vm407_vm15 = vcmask 1045504  }
   0x3   :  { %v3183_v7 = vpack.c.bf16 %v68_v6, %v67_v3  ;;  %v3451_v10 = vld [vmem:[%s3974_s0] sm:$0x3f]  ;;  %v3186_v11 = vpack.c.bf16 %v70_v9, %v69_v8  ;;  %v71_v12 = vld [vmem:[%s3973_s1 + $0x30] sm:$0xff]  ;;  %v72_v13 = vld [vmem:[%s3973_s1 + $0x38] sm:$0xff]  ;;  %v46_v30 = vshrl.u32 %v45_v29, 7  ;;  %v48_v31 = vand.u32 127, %v45_v29 }
   0x4   :  { %3181 = vmatpush3.bf16.msra.mxu1 %v3180_v5  ;;  %v3189_v14 = vpack.c.bf16 %v72_v13, %v71_v12  ;;  %v2679_v17 = vld [vmem:[%s3975_s2 + $0x1] ss:$0 sm:$0xff]  ;;  %v2677_v19 = vld [vmem:[%s3975_s2] ss:$0 sm:$0xff]  ;;  %v74_v24 = vld [vmem:[%s3973_s1 + $0x48] sm:$0xff]  ;;  %s3350_s18 = smov 8  }
   0x5   :  { %3182 = vmatprep.subr.bf16.mxu1 %v3343_v0  ;;  %v73_v23 = vld [vmem:[%s3973_s1 + $0x40] sm:$0xff]  ;;  %v75_v25 = vld [vmem:[%s3973_s1 + $0x50] sm:$0xff]  ;;  %v76_v27 = vld [vmem:[%s3973_s1 + $0x58] sm:$0xff]  ;;  %vm56_vm3 = vcmp.ge.s32.totalorder %v46_v30, 3  ;;  %vm57_vm4 = vcmp.lt.s32.totalorder %v46_v30, 6  ;;  %vm59_vm6 = vcmp.ge.s32.totalorder %v48_v31, 3 }
   0x6   :  { %v3192_v26 = vpack.c.bf16 %v74_v24, %v73_v23  ;;  %v3195_v28 = vpack.c.bf16 %v76_v27, %v75_v25  ;;  %vm58_vm5 = vmand %vm56_vm3, %vm57_vm4  ;;  %vm50_vm7 = vcmp.lt.s32.totalorder %v46_v30, 3  ;;  %vm54_vm8 = vcmp.lt.s32.totalorder %v48_v31, 3  ;;  %v2681_v44 = vld [vmem:[%s3975_s2 + $0x2] ss:$0 sm:$0xff]  ;;  %s3351_s19 = smov 16   ;;  %s3352_s20 = smov 24  }
   0x7   :  { %vm60_vm9 = vmand %vm58_vm5, %vm59_vm6  ;;  %vm61_vm10 = vcmp.lt.s32.totalorder %v48_v31, 6  ;;  %vm403_vm3 = vcmask 48128   ;;  %vm998_vm4 = vcmask 130048   ;;  %vm1000_vm5 = vcmask 195584  }
   0x8   :  { %3184 = vmatpush3.bf16.msra.mxu1 %v3183_v7  ;;  %3193 = vmatpush3.bf16.msra.mxu0 %v3192_v26  ;;  %vm55_vm11 = vmand %vm50_vm7, %vm54_vm8  ;;  %vm1089_vm6 = vcmask 259072  }
   0x9   :  { %3185 = vmatprep.subr.bf16.mxu1 %v3343_v0  ;;  %3194 = vmatprep.subr.bf16.mxu0 %v3343_v0  ;;  %vm62_vm12 = vmand %vm60_vm9, %vm61_vm10 }
   0xa   :  { %vm63_vm13 = vmor %vm55_vm11, %vm62_vm12 }
   0xb   :  { %2917 = vmatmul.mubr.msk.f32.vlgmr.msra.gmra.mrb[0].mxu1 %vm86_vm1, %v3451_v10  ;;  %v3509_v34 = vsel %vm63_vm13, 0.0, %v3349_v33 }
   0xc   :  { %3187 = vmatpush3.bf16.msra.mxu1 %v3186_v11  ;;  %2927 = vmatprep.mubr.msk.f32.mxu1 %vm3344_vm0, %v3345_v4 }
   0xd   :  { %3188 = vmatprep.subr.bf16.mxu1 %v3343_v0  ;;  %3196 = vmatpush3.bf16.msra.mxu0 %v3195_v28 }
   0xe   :  { %2961 = vmatprep.subr.mxu0 %v3345_v4 }
  0x10   :  { %3190 = vmatpush3.bf16.msra.mxu1 %v3189_v14  ;;  %2939 = vmatmul.mubr.msk.f32.vlgmr.msra.gmra.mrb[0].mxu0 %vm86_vm1, %v3451_v10 }
  0x11   :  { %2941 = vmatprep.subr.mxu1 %v3345_v4  ;;  %2963 = vmatprep.mubr.msk.f32.mxu0 %vm3344_vm0, %v3345_v4 }
  0x13   :  { %2928 = vmatmul.mubr.msk.f32.vlgmr.msra.gmra.mrb[2].mxu1 %vm86_vm1, %v3451_v10 }
  0x14   :  { %2943 = vmatprep.mubr.msk.f32.mxu1 %vm3344_vm0, %v3345_v4 }
  0xde   :  { %v156_v15 = vpop.f32.mrb[0].mxu1 }
  0xdf   :  { %v2918_v16 = vpop.f32.mrb[1].mxu1  ;;  %v157_v22 = vadd.f32 %v2677_v19, %v156_v15 }
  0xe3   :  { %v308_v45 = vpop.f32.mrb[0].mxu0 }
  0xe4   :  { %v3517_v46 = vadd.f32 %v2681_v44, %v308_v45  ;;  %v2940_v47 = vpop.f32.mrb[1].mxu0  ;;  %v1004_v44 = vld [vmem:[%s3976_s3 + $0x10] sm:$0xff]  ;;  %v1005_v45 = vld [vmem:[%s3976_s3 + $0x18] sm:$0xff] }
  0xe6   :  { %v232_v18 = vpop.f32.mrb[2].mxu1 }
  0xe7   :  { %v3476_v20 = vadd.f32 %v2679_v17, %v232_v18  ;;  %v2929_v21 = vpop.f32.mrb[3].mxu1 }
  0xe9   :  { %483 = vrot.lane.b32.xlu1 %v3476_v20, %s3346_s29  ;;  %2942 = vmatpush3.xpose.msk.msra.mxu1 %vm312_vm2, %v3476_v20 }
  0xea   :  { %2946 = vmatprep.subr.mxu1 %v3345_v4 }
  0xec   :  { %2944 = vmatmul.mubr.msk.f32.vlgmr.msra.gmra.mrb[4].mxu1 %vm312_vm2, %v157_v22 }
  0xed   :  { %481 = vrot.lane.b32.xlu1 %v157_v22, %s3346_s29  ;;  %2948 = vmatprep.mubr.msk.f32.mxu1 %vm3344_vm0, %v3345_v4 }
  0xee   :  { %2947 = vmatpush3.msk.msra.mxu1 %vm407_vm15, %v3517_v46 }
  0xef   :  { %2951 = vmatprep.subr.mxu1 %v3345_v4 }
  0xf1   :  { %649 = vrot.lane.b32.xlu1 %v157_v22, %s3347_s30 }
  0xf5   :  { %819 = vrot.lane.b32.xlu1 %v3476_v20, %s3348_s14 }
  0xf9   :  { %817 = vrot.lane.b32.xlu1 %v157_v22, %s3348_s14 }
 0x15b   :  { %v484_v48 = vpop.permute.xlu1 %483 }
 0x15f   :  { %v482_v49 = vpop.permute.xlu1 %481 }
 0x163   :  { %v650_v50 = vpop.permute.xlu1 %649 }
 0x167   :  { %v820_v53 = vpop.permute.xlu1 %819 }
 0x16b   :  { %v818_v55 = vpop.permute.xlu1 %817 }
 0x1bf   :  { %v385_v32 = vpop.f32.mrb[4].mxu1 }
 0x1c0   :  { %v389_v35 = vmul.f32 0.35355338, %v385_v32  ;;  %v2945_v36 = vpop.f32.mrb[5].mxu1 }
 0x1c2   :  { %v390_v37 = vadd.f32 %v389_v35, %v3509_v34 }
 0x1c4   :  { %v392_v38 = vsel %vm391_vm14, %v390_v37, -inf }
 0x1c5   :  { %393 = vmax.xlane.f32.xlu0 %v392_v38 }
 0x252   :  { %v394_v39 = vpop.xlane.xlu0 %393 }
 0x253   :  { %v395_v40 = vsub.f32 %v390_v37, %v394_v39 }
 0x255   :  { %v396_v41 = vmul.f32 1.442695, %v395_v40 }
 0x257   :  { %3303 = vpow2.f32 %v396_v41  ;;  %v1002_v41 = vld [vmem:[%s3976_s3] sm:$0xff] }
 0x261   :  { %v3304_v42 = vpop.eup %3303 }
 0x262   :  { %v398_v43 = vsel %vm391_vm14, %v3304_v42, 0.0 }
 0x263   :  { %399 = vadd.xlane.f32.xlu0 %v398_v43 }
 0x279   :  { %651 = vrot.lane.b32.xlu0 %v3476_v20, %s3347_s30 }
 0x2f0   :  { %v400_v51 = vpop.xlane.xlu0 %399 }
 0x2f1   :  { %3305 = vrcp.f32 %v400_v51 }
 0x2f4   :  { %v652_v52 = vpop.permute.xlu0 %651 }
 0x2f5   :  { %2962 = vmatpush3.xpose.msk.msra.mxu0 %vm312_vm2, %v652_v52 }
 0x2f6   :  { %2971 = vmatprep.subr.mxu0 %v3345_v4 }
 0x2f8   :  { %2964 = vmatmul.mubr.msk.f32.vlgmr.msra.gmra.mrb[2].mxu0 %vm312_vm2, %v650_v50 }
 0x2f9   :  { %2972 = vmatpush3.xpose.msk.msra.mxu0 %vm312_vm2, %v820_v53  ;;  %2973 = vmatprep.mubr.msk.f32.mxu0 %vm3344_vm0, %v3345_v4 }
 0x2fa   :  { %3197 = vmatprep.subr.bf16.mxu0 %v3343_v0 }
 0x2fb   :  { %v3306_v54 = vpop.eup %3305 }
 0x2fc   :  { %v402_v56 = vmul.f32 %v3306_v54, %v3304_v42  ;;  %2974 = vmatmul.mubr.msk.f32.vlgmr.msra.gmra.mrb[4].mxu0 %vm312_vm2, %v818_v55  ;;  %v1003_v42 = vld [vmem:[%s3976_s3 + $0x8] sm:$0xff] }
 0x2fd   :  { %2989 = vmatprep.mubr.msk.f32.mxu0 %vm3344_vm0, %v3345_v4  ;;  %v3198_v43 = vpack.c.bf16 %v1003_v42, %v1002_v41  ;;  %v2702_v42 = vld [vmem:[%s3980_s5 + $0x1] ss:$0 sm:$0xff] }
 0x2fe   :  { %2949 = vmatmul.mubr.msk.f32.vlgmr.msra.gmra.mrb[6].mxu1 %vm403_vm3, %v402_v56 }
 0x2ff   :  { %2952 = vmatpush3.xpose.msk.msra.mxu1 %vm312_vm2, %v484_v48  ;;  %2953 = vmatprep.mubr.msk.f32.mxu1 %vm3344_vm0, %v3345_v4 }
 0x300   :  { %2956 = vmatprep.subr.mxu1 %v3345_v4  ;;  %3199 = vmatpush3.bf16.msra.mxu0 %v3198_v43 }
 0x301   :  { %3200 = vmatprep.subr.bf16.mxu0 %v3343_v0 }
 0x302   :  { %2954 = vmatmul.mubr.msk.f32.vlgmr.msra.gmra.mrb[8].mxu1 %vm312_vm2, %v482_v49 }
 0x303   :  { %2958 = vmatprep.mubr.msk.f32.mxu1 %vm3344_vm0, %v3345_v4 }
 0x3cb   :  { %v723_v57 = vpop.f32.mrb[2].mxu0 }
 0x3cc   :  { %v727_v58 = vmul.f32 0.35355338, %v723_v57  ;;  %v2965_v59 = vpop.f32.mrb[3].mxu0 }
 0x3cd   :  { %v2699_v59 = vld [vmem:[%s3977_s4] ss:$0 sm:$0xff] }
 0x3ce   :  { %v728_v60 = vadd.f32 %v727_v58, %v3509_v34 }
 0x3cf   :  { %v891_v61 = vpop.f32.mrb[4].mxu0 }
 0x3d0   :  { %v2975_v62 = vpop.f32.mrb[5].mxu0  ;;  %v729_v63 = vsel %vm391_vm14, %v728_v60, -inf  ;;  %v895_v5 = vmul.f32 0.35355338, %v891_v61 }
 0x3d1   :  { %730 = vmax.xlane.f32.xlu0 %v729_v63  ;;  %v3544_v1 = vpop.f32.mrb[6].mxu1 }
 0x3d2   :  { %v2950_v2 = vpop.f32.mrb[7].mxu1  ;;  %v896_v11 = vadd.f32 %v895_v5, %v3509_v34 }
 0x3d4   :  { %v897_v12 = vsel %vm391_vm14, %v896_v11, -inf }
 0x3d5   :  { %v555_v3 = vpop.f32.mrb[8].mxu1 }
 0x3d6   :  { %v559_v6 = vmul.f32 0.35355338, %v555_v3  ;;  %v2955_v7 = vpop.f32.mrb[9].mxu1 }
 0x3d8   :  { %v560_v8 = vadd.f32 %v559_v6, %v3509_v34 }
 0x3da   :  { %v561_v9 = vsel %vm391_vm14, %v560_v8, -inf }
 0x3db   :  { %562 = vmax.xlane.f32.xlu1 %v561_v9  ;;  %v1119_v9 = vld [vmem:[%s3978_s6 + $0x8] sm:$0xff] }
 0x3df   :  { %898 = vmax.xlane.f32.xlu1 %v897_v12  ;;  %v1121_v12 = vld [vmem:[%s3978_s6 + $0x18] sm:$0xff] }
 0x45e   :  { %v731_v13 = vpop.xlane.xlu0 %730 }
 0x45f   :  { %v732_v14 = vsub.f32 %v728_v60, %v731_v13 }
 0x461   :  { %v733_v15 = vmul.f32 1.442695, %v732_v14  ;;  %v1203_v14 = vld [vmem:[%s3979_s8] sm:$0xff] }
 0x463   :  { %3307 = vpow2.f32 %v733_v15  ;;  %v1204_v15 = vld [vmem:[%s3979_s8 + $0x8] sm:$0xff] }
 0x468   :  { %v563_v16 = vpop.xlane.xlu1 %562 }
 0x469   :  { %v564_v24 = vsub.f32 %v560_v8, %v563_v16  ;;  %v1118_v8 = vld [vmem:[%s3978_s6] sm:$0xff]  ;;  %v1205_v16 = vld [vmem:[%s3979_s8 + $0x10] sm:$0xff] }
 0x46b   :  { %v565_v25 = vmul.f32 1.442695, %v564_v24  ;;  %v1210_v24 = vld [vmem:[%s3979_s8 + $0x38] sm:$0xff] }
 0x46c   :  { %v899_v17 = vpop.xlane.xlu1 %898 }
 0x46d   :  { %v3308_v18 = vpop.eup %3307  ;;  %v900_v19 = vsub.f32 %v896_v11, %v899_v17  ;;  %v3204_v11 = vpack.c.bf16 %v1119_v9, %v1118_v8  ;;  %v3210_v17 = vpack.c.bf16 %v1204_v15, %v1203_v14  ;;  %v2712_v14 = vld [vmem:[%s3973_s1 + $0x80] sm:$0xff]  ;;  %v2713_v15 = vld [vmem:[%s3973_s1 + $0x88] sm:$0xff] }
 0x46e   :  { %v735_v20 = vsel %vm391_vm14, %v3308_v18, 0.0 }
 0x46f   :  { %v901_v21 = vmul.f32 1.442695, %v900_v19  ;;  %736 = vadd.xlane.f32.xlu0 %v735_v20  ;;  %v1207_v20 = vld [vmem:[%s3979_s8 + $0x20] sm:$0xff] }
 0x471   :  { %3309 = vpow2.f32 %v901_v21  ;;  %v1208_v21 = vld [vmem:[%s3979_s8 + $0x28] sm:$0xff] }
 0x472   :  { %3311 = vpow2.f32 %v565_v25 }
 0x47b   :  { %v3310_v22 = vpop.eup %3309 }
 0x47c   :  { %v903_v23 = vsel %vm391_vm14, %v3310_v22, 0.0  ;;  %v3312_v26 = vpop.eup %3311 }
 0x47d   :  { %904 = vadd.xlane.f32.xlu1 %v903_v23  ;;  %v567_v27 = vsel %vm391_vm14, %v3312_v26, 0.0  ;;  %v1209_v23 = vld [vmem:[%s3979_s8 + $0x30] sm:$0xff] }
 0x47e   :  { %v3219_v25 = vpack.c.bf16 %v1210_v24, %v1209_v23  ;;  %v2716_v23 = vld [vmem:[%s3973_s1 + $0xa0] sm:$0xff]  ;;  %v2717_v24 = vld [vmem:[%s3973_s1 + $0xa8] sm:$0xff] }
 0x485   :  { %572 = vrot.lane.b32.xlu0 %v3517_v46, %s3346_s29 }
 0x48e   :  { %740 = vrot.lane.b32.xlu1 %v3517_v46, %s3347_s30 }
 0x4b2   :  { %568 = vadd.xlane.f32.xlu1 %v567_v27  ;;  %v1212_v27 = vld [vmem:[%s3979_s8 + $0x48] sm:$0xff] }
 0x4c3   :  { %908 = vrot.lane.b32.xlu1 %v3517_v46, %s3348_s14  ;;  %v3201_v46 = vpack.c.bf16 %v1005_v45, %v1004_v44  ;;  %v1217_v45 = vld [vmem:[%s3979_s8 + $0x70] sm:$0xff] }
 0x4c5   :  { %3202 = vmatpush3.bf16.msra.mxu0 %v3201_v46  ;;  %v1218_v46 = vld [vmem:[%s3979_s8 + $0x78] sm:$0xff] }
 0x4c6   :  { %3209 = vmatprep.subr.bf16.mxu0 %v3343_v0 }
 0x4fc   :  { %v737_v28 = vpop.xlane.xlu0 %736 }
 0x500   :  { %v573_v29 = vpop.permute.xlu0 %572 }
 0x501   :  { %2957 = vmatpush3.msk.msra.mxu1 %vm407_vm15, %v573_v29  ;;  %v1213_v29 = vld [vmem:[%s3979_s8 + $0x50] sm:$0xff] }
 0x502   :  { %2966 = vmatprep.subr.mxu1 %v3345_v4 }
 0x50a   :  { %v905_v30 = vpop.xlane.xlu1 %904 }
 0x50e   :  { %v741_v31 = vpop.permute.xlu1 %740 }
 0x53f   :  { %v569_v32 = vpop.xlane.xlu1 %568 }
 0x540   :  { %3313 = vrcp.f32 %v569_v32  ;;  %v1215_v32 = vld [vmem:[%s3979_s8 + $0x60] sm:$0xff] }
 0x541   :  { %3315 = vrcp.f32 %v737_v28 }
 0x542   :  { %3317 = vrcp.f32 %v905_v30  ;;  %v1214_v30 = vld [vmem:[%s3979_s8 + $0x58] sm:$0xff] }
 0x543   :  { %v909_v39 = vpop.permute.xlu1 %908 }
 0x54a   :  { %v3314_v33 = vpop.eup %3313 }
 0x54b   :  { %v571_v35 = vmul.f32 %v3314_v33, %v3312_v26  ;;  %v3316_v36 = vpop.eup %3315  ;;  %v1211_v26 = vld [vmem:[%s3979_s8 + $0x40] sm:$0xff]  ;;  %v1216_v33 = vld [vmem:[%s3979_s8 + $0x68] sm:$0xff] }
 0x54c   :  { %v739_v37 = vmul.f32 %v3316_v36, %v3308_v18  ;;  %v3318_v38 = vpop.eup %3317  ;;  %v1206_v18 = vld [vmem:[%s3979_s8 + $0x18] sm:$0xff]  ;;  %v3222_v28 = vpack.c.bf16 %v1212_v27, %v1211_v26  ;;  %v2718_v26 = vld [vmem:[%s3973_s1 + $0xb0] sm:$0xff] }
 0x54d   :  { %2959 = vmatmul.mubr.msk.f32.vlgmr.msra.gmra.mrb[10].mxu1 %vm403_vm3, %v571_v35  ;;  %v907_v40 = vmul.f32 %v3318_v38, %v3310_v22  ;;  %v3213_v19 = vpack.c.bf16 %v1206_v18, %v1205_v16  ;;  %v3216_v22 = vpack.c.bf16 %v1208_v21, %v1207_v20  ;;  %v3228_v35 = vpack.c.bf16 %v1216_v33, %v1215_v32  ;;  %v2707_v16 = vld [vmem:[%s3983_s10 + $0x1] ss:$0 sm:$0xff]  ;;  %v2714_v20 = vld [vmem:[%s3973_s1 + $0x90] sm:$0xff]  ;;  %v2715_v21 = vld [vmem:[%s3973_s1 + $0x98] sm:$0xff] }
 0x54e   :  { %2967 = vmatpush3.msk.msra.mxu1 %vm407_vm15, %v741_v31  ;;  %2968 = vmatprep.mubr.msk.f32.mxu1 %vm3344_vm0, %v3345_v4  ;;  %v3225_v31 = vpack.c.bf16 %v1214_v30, %v1213_v29  ;;  %v3240_v18 = vpack.c.bf16 %v2713_v15, %v2712_v14  ;;  %v2719_v27 = vld [vmem:[%s3973_s1 + $0xb8] sm:$0xff]  ;;  %v2723_v29 = vld [vmem:[%s3975_s2 + $0x3] ss:$0 sm:$0xff]  ;;  %v2725_v33 = vld [vmem:[%s3975_s2 + $0x4] ss:$0 sm:$0xff] }
 0x54f   :  { %2976 = vmatprep.subr.mxu1 %v3345_v4 }
 0x551   :  { %2969 = vmatmul.mubr.msk.f32.vlgmr.msra.gmra.mrb[12].mxu1 %vm403_vm3, %v739_v37 }
 0x552   :  { %2977 = vmatpush3.msk.msra.mxu1 %vm407_vm15, %v909_v39  ;;  %2978 = vmatprep.mubr.msk.f32.mxu1 %vm3344_vm0, %v3345_v4 }
 0x553   :  { %3203 = vmatprep.subr.bf16.mxu1 %v3343_v0 }
 0x555   :  { %2979 = vmatmul.mubr.msk.f32.vlgmr.msra.gmra.mrb[14].mxu1 %vm403_vm3, %v907_v40  ;;  %v2701_v40 = vld [vmem:[%s3980_s5] ss:$0 sm:$0xff] }
 0x556   :  { %3000 = vmatprep.mubr.msk.f32.mxu1 %vm3344_vm0, %v3345_v4  ;;  %3205 = vmatpush3.bf16.msra.mxu1 %v3204_v11 }
 0x557   :  { %3206 = vmatprep.subr.bf16.mxu1 %v3343_v0 }
 0x620   :  { %v645_v47 = vpop.f32.mrb[10].mxu1 }
 0x621   :  { %986 = vrot.lane.b32.xlu0 %v645_v47, %s3350_s18  ;;  %v2960_v48 = vpop.f32.mrb[11].mxu1  ;;  %v3231_v47 = vpack.c.bf16 %v1218_v46, %v1217_v45 }
 0x622   :  { %v2703_v48 = vld [vmem:[%s3981_s7] ss:$0 sm:$0xff] }
 0x624   :  { %v813_v49 = vpop.f32.mrb[12].mxu1 }
 0x625   :  { %990 = vrot.lane.b32.xlu1 %v813_v49, %s3351_s19  ;;  %v2970_v50 = vpop.f32.mrb[13].mxu1 }
 0x628   :  { %v981_v51 = vpop.f32.mrb[14].mxu1 }
 0x629   :  { %994 = vrot.lane.b32.xlu0 %v981_v51, %s3352_s20  ;;  %v2980_v52 = vpop.f32.mrb[15].mxu1 }
 0x693   :  { %v987_v53 = vpop.permute.xlu0 %986 }
 0x694   :  { %v997_v55 = vsel %vm312_vm2, %v3544_v1, %v987_v53  ;;  %v2705_v53 = vld [vmem:[%s3982_s9] ss:$0 sm:$0xff] }
 0x697   :  { %v991_v54 = vpop.permute.xlu1 %990 }
 0x698   :  { %v999_v56 = vsel %vm998_vm4, %v997_v55, %v991_v54 }
 0x69b   :  { %v995_v57 = vpop.permute.xlu0 %994 }
 0x69c   :  { %v1001_v58 = vsel %vm1000_vm5, %v999_v56, %v995_v57 }
 0x69d   :  { %2990 = vmatmul.mubr.msk.f32.vlgmr.msra.gmra.mrb[6].mxu0 %vm86_vm1, %v1001_v58 }
 0x69e   :  { %3035 = vmatprep.mubr.msk.f32.mxu0 %vm3344_vm0, %v3345_v4  ;;  %3211 = vmatpush3.bf16.msra.mxu0 %v3210_v17 }
 0x69f   :  { %3212 = vmatprep.subr.bf16.mxu0 %v3343_v0 }
 0x6a2   :  { %3214 = vmatpush3.bf16.msra.mxu0 %v3213_v19 }
 0x6a3   :  { %3215 = vmatprep.subr.bf16.mxu0 %v3343_v0 }
 0x6a6   :  { %3217 = vmatpush3.bf16.msra.mxu0 %v3216_v22  ;;  %v3243_v22 = vpack.c.bf16 %v2715_v21, %v2714_v20 }
 0x6a7   :  { %3218 = vmatprep.subr.bf16.mxu0 %v3343_v0 }
 0x6aa   :  { %3220 = vmatpush3.bf16.msra.mxu0 %v3219_v25  ;;  %v3246_v25 = vpack.c.bf16 %v2717_v24, %v2716_v23 }
 0x6ab   :  { %3221 = vmatprep.subr.bf16.mxu0 %v3343_v0 }
 0x6ae   :  { %3223 = vmatpush3.bf16.msra.mxu0 %v3222_v28  ;;  %v3249_v28 = vpack.c.bf16 %v2719_v27, %v2718_v26 }
 0x6af   :  { %3224 = vmatprep.subr.bf16.mxu0 %v3343_v0 }
 0x6b2   :  { %3226 = vmatpush3.bf16.msra.mxu0 %v3225_v31 }
 0x6b3   :  { %3227 = vmatprep.subr.bf16.mxu0 %v3343_v0 }
 0x6b6   :  { %3229 = vmatpush3.bf16.msra.mxu0 %v3228_v35 }
 0x6b7   :  { %3230 = vmatprep.subr.bf16.mxu0 %v3343_v0 }
 0x6ba   :  { %3232 = vmatpush3.bf16.msra.mxu0 %v3231_v47 }
 0x6bb   :  { %3081 = vmatprep.subr.mxu0 %v3345_v4 }
 0x770   :  { %v1082_v60 = vpop.f32.mrb[6].mxu0 }
 0x771   :  { %v1083_v61 = vadd.f32 %v2699_v59, %v1082_v60  ;;  %v2991_v62 = vpop.f32.mrb[7].mxu0 }
 0x773   :  { %v1088_v63 = vadd.f32 %v1083_v61, %v3451_v10  ;;  %v1120_v10 = vld [vmem:[%s3978_s6 + $0x10] sm:$0xff] }
 0x774   :  { %v3207_v13 = vpack.c.bf16 %v1121_v12, %v1120_v10  ;;  %v2706_v12 = vld [vmem:[%s3983_s10] ss:$0 sm:$0xff] }
 0x775   :  { %v1090_v1 = vsel %vm1089_vm6, %v1088_v63, 0.0 }
 0x776   :  { %1091 = vadd.xlane.f32.xlu1 %v1090_v1  ;;  %3208 = vmatpush3.bf16.msra.mxu1 %v3207_v13  ;;  %v2708_v1 = vld [vmem:[%s3973_s1 + $0x60] sm:$0xff] }
 0x777   :  { %3233 = vmatprep.subr.bf16.mxu1 %v3343_v0 }
 0x803   :  { %v1092_v2 = vpop.xlane.xlu1 %1091 }
 0x804   :  { %v1094_v3 = vmul.f32 0.03125, %v1092_v2  ;;  %v2709_v2 = vld [vmem:[%s3973_s1 + $0x68] sm:$0xff] }
 0x806   :  { %v1095_v5 = vsub.f32 %v1088_v63, %v1094_v3  ;;  %v3234_v3 = vpack.c.bf16 %v2709_v2, %v2708_v1 }
 0x808   :  { %v1096_v6 = vmul.f32 %v1095_v5, %v1095_v5 }
 0x80a   :  { %v1097_v7 = vsel %vm1089_vm6, %v1096_v6, 0.0  ;;  %v2711_v6 = vld [vmem:[%s3973_s1 + $0x78] sm:$0xff] }
 0x80b   :  { %1098 = vadd.xlane.f32.xlu0 %v1097_v7 }
 0x898   :  { %v1099_v36 = vpop.xlane.xlu0 %1098 }
 0x899   :  { %v1100_v37 = vmul.f32 0.03125, %v1099_v36 }
 0x89b   :  { %v1101_v38 = vadd.f32 1e-05, %v1100_v37 }
 0x89d   :  { %3319 = vrsqrt.f32 %v1101_v38  ;;  %v2727_v38 = vld [vmem:[%s3975_s2 + $0x5] ss:$0 sm:$0xff] }
 0x8a7   :  { %v3320_v39 = vpop.eup %3319 }
 0x8a8   :  { %v1103_v41 = vmul.f32 %v3320_v39, %v1095_v5  ;;  %v2710_v5 = vld [vmem:[%s3973_s1 + $0x70] sm:$0xff] }
 0x8a9   :  { %v3237_v7 = vpack.c.bf16 %v2711_v6, %v2710_v5 }
 0x8aa   :  { %v1110_v43 = vmul.f32 %v2701_v40, %v1103_v41 }
 0x8ac   :  { %v1117_v44 = vadd.f32 %v2702_v42, %v1110_v43 }
 0x8ae   :  { %3001 = vmatmul.mubr.msk.f32.vlgmr.msra.gmra.mrb[16].mxu1 %vm86_vm1, %v1117_v44 }
 0x8af   :  { %3046 = vmatprep.mubr.msk.f32.mxu1 %vm3344_vm0, %v3345_v4  ;;  %3235 = vmatpush3.bf16.msra.mxu1 %v3234_v3 }
 0x8b0   :  { %3236 = vmatprep.subr.bf16.mxu1 %v3343_v0 }
 0x8b3   :  { %3238 = vmatpush3.bf16.msra.mxu1 %v3237_v7 }
 0x8b4   :  { %3239 = vmatprep.subr.bf16.mxu1 %v3343_v0 }
 0x981   :  { %v1198_v49 = vpop.f32.mrb[16].mxu1 }
 0x982   :  { %v1199_v50 = vadd.f32 %v2703_v48, %v1198_v49  ;;  %v3002_v51 = vpop.f32.mrb[17].mxu1 }
 0x984   :  { %v1202_v52 = vmax.f32 %v1199_v50, 0.0 }
 0x986   :  { %3036 = vmatmul.mubr.f32.vlgmr.msra.gmra.mrb[8].mxu0 %v1202_v52 }
 0x987   :  { %3083 = vmatprep.mubr.msk.f32.mxu0 %vm3344_vm0, %v3345_v4 }
 0xa59   :  { %v1292_v54 = vpop.f32.mrb[8].mxu0 }
 0xa5a   :  { %v1293_v55 = vadd.f32 %v2705_v53, %v1292_v54  ;;  %v3037_v56 = vpop.f32.mrb[9].mxu0 }
 0xa5c   :  { %v1298_v57 = vadd.f32 %v1293_v55, %v1117_v44 }
 0xa5e   :  { %v1299_v58 = vsel %vm1089_vm6, %v1298_v57, 0.0 }
 0xa5f   :  { %1300 = vadd.xlane.f32.xlu0 %v1299_v58 }
 0xaec   :  { %v1301_v59 = vpop.xlane.xlu0 %1300 }
 0xaed   :  { %v1302_v60 = vmul.f32 0.03125, %v1301_v59 }
 0xaef   :  { %v1303_v61 = vsub.f32 %v1298_v57, %v1302_v60 }
 0xaf1   :  { %v1304_v62 = vmul.f32 %v1303_v61, %v1303_v61 }
 0xaf3   :  { %v1305_v63 = vsel %vm1089_vm6, %v1304_v62, 0.0 }
 0xaf4   :  { %1306 = vadd.xlane.f32.xlu1 %v1305_v63 }
 0xb81   :  { %v1307_v8 = vpop.xlane.xlu1 %1306 }
 0xb82   :  { %v1308_v9 = vmul.f32 0.03125, %v1307_v8 }
 0xb84   :  { %v1309_v11 = vadd.f32 1e-05, %v1308_v9 }
 0xb86   :  { %3321 = vrsqrt.f32 %v1309_v11 }
 0xb90   :  { %v3322_v10 = vpop.eup %3321 }
 0xb91   :  { %v1311_v13 = vmul.f32 %v3322_v10, %v1303_v61 }
 0xb93   :  { %v1318_v17 = vmul.f32 %v2706_v12, %v1311_v13 }
 0xb95   :  { %v3719_v19 = vadd.f32 %v2707_v16, %v1318_v17 }
 0xb97   :  { %3047 = vmatmul.mubr.msk.f32.vlgmr.msra.gmra.mrb[18].mxu1 %vm86_vm1, %v3719_v19 }
 0xb98   :  { %3241 = vmatpush3.bf16.msra.mxu1 %v3240_v18  ;;  %3057 = vmatprep.mubr.msk.f32.mxu1 %vm3344_vm0, %v3345_v4 }
 0xb99   :  { %3242 = vmatprep.subr.bf16.mxu1 %v3343_v0 }
 0xb9c   :  { %3244 = vmatpush3.bf16.msra.mxu1 %v3243_v22 }
 0xb9d   :  { %3245 = vmatprep.subr.bf16.mxu1 %v3343_v0 }
 0xb9f   :  { %3058 = vmatmul.mubr.msk.f32.vlgmr.msra.gmra.mrb[20].mxu1 %vm86_vm1, %v3719_v19 }
 0xba0   :  { %3247 = vmatpush3.bf16.msra.mxu1 %v3246_v25  ;;  %3068 = vmatprep.mubr.msk.f32.mxu1 %vm3344_vm0, %v3345_v4 }
 0xba1   :  { %3248 = vmatprep.subr.bf16.mxu1 %v3343_v0 }
 0xba4   :  { %3250 = vmatpush3.bf16.msra.mxu1 %v3249_v28 }
 0xba5   :  { %3071 = vmatprep.subr.mxu1 %v3345_v4 }
 0xba7   :  { %3069 = vmatmul.mubr.msk.f32.vlgmr.msra.gmra.mrb[22].mxu1 %vm86_vm1, %v3719_v19 }
 0xba8   :  { %3073 = vmatprep.mubr.msk.f32.mxu1 %vm3344_vm0, %v3345_v4 }
 0xc6a   :  { %v1418_v30 = vpop.f32.mrb[18].mxu1 }
 0xc6b   :  { %v1419_v31 = vadd.f32 %v2723_v29, %v1418_v30  ;;  %v3048_v32 = vpop.f32.mrb[19].mxu1 }
 0xc6d   :  { %1739 = vrot.lane.b32.xlu1 %v1419_v31, %s3346_s29 }
 0xc72   :  { %v1494_v35 = vpop.f32.mrb[20].mxu1 }
 0xc73   :  { %v1495_v36 = vadd.f32 %v2725_v33, %v1494_v35  ;;  %v3059_v37 = vpop.f32.mrb[21].mxu1 }
 0xc75   :  { %1909 = vrot.lane.b32.xlu1 %v1495_v36, %s3347_s30  ;;  %1741 = vrot.lane.b32.xlu0 %v1495_v36, %s3346_s29 }
 0xc76   :  { %3072 = vmatpush3.xpose.msk.msra.mxu1 %vm312_vm2, %v1495_v36 }
 0xc77   :  { %3076 = vmatprep.subr.mxu1 %v3345_v4 }
 0xc79   :  { %3074 = vmatmul.mubr.msk.f32.vlgmr.msra.gmra.mrb[24].mxu1 %vm312_vm2, %v1419_v31  ;;  %2077 = vrot.lane.b32.xlu1 %v1495_v36, %s3348_s14 }
 0xc7a   :  { %1907 = vrot.lane.b32.xlu0 %v1419_v31, %s3347_s30  ;;  %v1570_v39 = vpop.f32.mrb[22].mxu1  ;;  %3078 = vmatprep.mubr.msk.f32.mxu1 %vm3344_vm0, %v3345_v4 }
 0xc7b   :  { %v3774_v40 = vadd.f32 %v2727_v38, %v1570_v39  ;;  %v3070_v41 = vpop.f32.mrb[23].mxu1 }
 0xc7d   :  { %3077 = vmatpush3.msk.msra.mxu1 %vm407_vm15, %v3774_v40 }
 0xc7e   :  { %2075 = vrot.lane.b32.xlu0 %v1419_v31, %s3348_s14  ;;  %3086 = vmatprep.subr.mxu1 %v3345_v4 }
 0xcdf   :  { %v1740_v42 = vpop.permute.xlu1 %1739 }
 0xce7   :  { %v1742_v43 = vpop.permute.xlu0 %1741  ;;  %v1910_v44 = vpop.permute.xlu1 %1909 }
 0xce8   :  { %3082 = vmatpush3.xpose.msk.msra.mxu0 %vm312_vm2, %v1742_v43 }
 0xce9   :  { %3091 = vmatprep.subr.mxu0 %v3345_v4 }
 0xceb   :  { %3084 = vmatmul.mubr.msk.f32.vlgmr.msra.gmra.mrb[10].mxu0 %vm312_vm2, %v1740_v42  ;;  %v2078_v46 = vpop.permute.xlu1 %2077 }
 0xcec   :  { %v1908_v45 = vpop.permute.xlu0 %1907  ;;  %3092 = vmatpush3.xpose.msk.msra.mxu0 %vm312_vm2, %v1910_v44  ;;  %3093 = vmatprep.mubr.msk.f32.mxu0 %vm3344_vm0, %v3345_v4  ;;  %v2745_v44 = vld [vmem:[%s3976_s3 + $0x20] sm:$0xff] }
 0xced   :  { %3101 = vmatprep.subr.mxu0 %v3345_v4 }
 0xcef   :  { %3094 = vmatmul.mubr.msk.f32.vlgmr.msra.gmra.mrb[12].mxu0 %vm312_vm2, %v1908_v45  ;;  %v2746_v45 = vld [vmem:[%s3976_s3 + $0x28] sm:$0xff] }
 0xcf0   :  { %3102 = vmatpush3.xpose.msk.msra.mxu0 %vm312_vm2, %v2078_v46  ;;  %3103 = vmatprep.mubr.msk.f32.mxu0 %vm3344_vm0, %v3345_v4  ;;  %v2076_v47 = vpop.permute.xlu0 %2075  ;;  %v2747_v46 = vld [vmem:[%s3976_s3 + $0x30] sm:$0xff] }
 0xcf1   :  { %3251 = vmatprep.subr.bf16.mxu0 %v3343_v0 }
 0xcf3   :  { %3104 = vmatmul.mubr.msk.f32.vlgmr.msra.gmra.mrb[14].mxu0 %vm312_vm2, %v2076_v47  ;;  %v3252_v47 = vpack.c.bf16 %v2746_v45, %v2745_v44  ;;  %v2755_v44 = vld [vmem:[%s3980_s5 + $0x3] ss:$0 sm:$0xff] }
 0xcf4   :  { %3119 = vmatprep.mubr.msk.f32.mxu0 %vm3344_vm0, %v3345_v4 }
 0xcf5   :  { %3253 = vmatpush3.bf16.msra.mxu0 %v3252_v47  ;;  %v2777_v47 = vld [vmem:[%s3979_s8 + $0xf0] sm:$0xff] }
 0xcf6   :  { %3254 = vmatprep.subr.bf16.mxu0 %v3343_v0 }
 0xd4c   :  { %v1646_v48 = vpop.f32.mrb[24].mxu1 }
 0xd4d   :  { %v1650_v49 = vmul.f32 0.35355338, %v1646_v48  ;;  %v3075_v50 = vpop.f32.mrb[25].mxu1  ;;  %v2748_v48 = vld [vmem:[%s3976_s3 + $0x38] sm:$0xff] }
 0xd4f   :  { %v1651_v51 = vadd.f32 %v1650_v49, %v3509_v34  ;;  %v3255_v49 = vpack.c.bf16 %v2748_v48, %v2747_v46  ;;  %v2778_v48 = vld [vmem:[%s3979_s8 + $0xf8] sm:$0xff] }
 0xd51   :  { %v1652_v52 = vsel %vm391_vm14, %v1651_v51, -inf  ;;  %3256 = vmatpush3.bf16.msra.mxu0 %v3255_v49  ;;  %v3285_v49 = vpack.c.bf16 %v2778_v48, %v2777_v47 }
 0xd52   :  { %1653 = vmax.xlane.f32.xlu1 %v1652_v52  ;;  %3263 = vmatprep.subr.bf16.mxu0 %v3343_v0 }
 0xdbe   :  { %v1813_v53 = vpop.f32.mrb[10].mxu0 }
 0xdbf   :  { %v1817_v54 = vmul.f32 0.35355338, %v1813_v53  ;;  %v3085_v55 = vpop.f32.mrb[11].mxu0 }
 0xdc1   :  { %v1818_v56 = vadd.f32 %v1817_v54, %v3509_v34 }
 0xdc2   :  { %v1981_v57 = vpop.f32.mrb[12].mxu0 }
 0xdc3   :  { %v1985_v58 = vmul.f32 0.35355338, %v1981_v57  ;;  %v3095_v59 = vpop.f32.mrb[13].mxu0  ;;  %v1819_v60 = vsel %vm391_vm14, %v1818_v56, -inf }
 0xdc4   :  { %1820 = vmax.xlane.f32.xlu0 %v1819_v60 }
 0xdc5   :  { %v1986_v61 = vadd.f32 %v1985_v58, %v3509_v34 }
 0xdc6   :  { %v2149_v62 = vpop.f32.mrb[14].mxu0 }
 0xdc7   :  { %v2153_v63 = vmul.f32 0.35355338, %v2149_v62  ;;  %v3105_v1 = vpop.f32.mrb[15].mxu0  ;;  %v1987_v2 = vsel %vm391_vm14, %v1986_v61, -inf  ;;  %v2750_v62 = vld [vmem:[%s3977_s4 + $0x1] ss:$0 sm:$0xff] }
 0xdc8   :  { %1988 = vmax.xlane.f32.xlu0 %v1987_v2 }
 0xdc9   :  { %v2154_v3 = vadd.f32 %v2153_v63, %v3509_v34 }
 0xdcb   :  { %v2155_v5 = vsel %vm391_vm14, %v2154_v3, -inf }
 0xdcc   :  { %2156 = vmax.xlane.f32.xlu1 %v2155_v5 }
 0xddf   :  { %v1654_v6 = vpop.xlane.xlu1 %1653 }
 0xde0   :  { %v1655_v7 = vsub.f32 %v1651_v51, %v1654_v6 }
 0xde2   :  { %v1656_v8 = vmul.f32 1.442695, %v1655_v7 }
 0xde4   :  { %3323 = vpow2.f32 %v1656_v8 }
 0xdee   :  { %v3324_v9 = vpop.eup %3323 }
 0xdef   :  { %v1658_v11 = vsel %vm391_vm14, %v3324_v9, 0.0 }
 0xdf0   :  { %1659 = vadd.xlane.f32.xlu0 %v1658_v11 }
 0xe51   :  { %v1821_v10 = vpop.xlane.xlu0 %1820 }
 0xe52   :  { %v1822_v12 = vsub.f32 %v1818_v56, %v1821_v10  ;;  %v2756_v10 = vld [vmem:[%s3978_s6 + $0x20] sm:$0xff] }
 0xe54   :  { %v1823_v13 = vmul.f32 1.442695, %v1822_v12  ;;  %v2757_v12 = vld [vmem:[%s3978_s6 + $0x28] sm:$0xff] }
 0xe55   :  { %v1989_v14 = vpop.xlane.xlu0 %1988 }
 0xe56   :  { %3325 = vpow2.f32 %v1823_v13  ;;  %v1990_v15 = vsub.f32 %v1986_v61, %v1989_v14  ;;  %v3258_v13 = vpack.c.bf16 %v2757_v12, %v2756_v10  ;;  %v2759_v14 = vld [vmem:[%s3978_s6 + $0x38] sm:$0xff] }
 0xe58   :  { %v1991_v16 = vmul.f32 1.442695, %v1990_v15 }
 0xe59   :  { %v2157_v22 = vpop.xlane.xlu1 %2156 }
 0xe5a   :  { %3327 = vpow2.f32 %v1991_v16  ;;  %v2158_v23 = vsub.f32 %v2154_v3, %v2157_v22  ;;  %v2763_v16 = vld [vmem:[%s3979_s8 + $0x80] sm:$0xff] }
 0xe5b   :  { %v2767_v22 = vld [vmem:[%s3979_s8 + $0xa0] sm:$0xff] }
 0xe5c   :  { %v2159_v24 = vmul.f32 1.442695, %v2158_v23  ;;  %v2768_v23 = vld [vmem:[%s3979_s8 + $0xa8] sm:$0xff] }
 0xe60   :  { %v3326_v34 = vpop.eup %3325 }
 0xe61   :  { %v1825_v17 = vsel %vm391_vm14, %v3326_v34, 0.0 }
 0xe62   :  { %1826 = vadd.xlane.f32.xlu1 %v1825_v17  ;;  %v2765_v17 = vld [vmem:[%s3979_s8 + $0x90] sm:$0xff] }
 0xe64   :  { %v3328_v18 = vpop.eup %3327 }
 0xe65   :  { %v1993_v20 = vsel %vm391_vm14, %v3328_v18, 0.0 }
 0xe66   :  { %1994 = vadd.xlane.f32.xlu0 %v1993_v20  ;;  %v2766_v20 = vld [vmem:[%s3979_s8 + $0x98] sm:$0xff] }
 0xe73   :  { %1998 = vrot.lane.b32.xlu1 %v3774_v40, %s3347_s30 }
 0xe7c   :  { %1830 = vrot.lane.b32.xlu0 %v3774_v40, %s3346_s29 }
 0xe7d   :  { %v1660_v21 = vpop.xlane.xlu0 %1659 }
 0xe7e   :  { %3329 = vrcp.f32 %v1660_v21  ;;  %v3267_v21 = vpack.c.bf16 %v2766_v20, %v2765_v17 }
 0xe7f   :  { %3331 = vpow2.f32 %v2159_v24  ;;  %v3270_v24 = vpack.c.bf16 %v2768_v23, %v2767_v22 }
 0xe88   :  { %v3330_v25 = vpop.eup %3329 }
 0xe89   :  { %v1662_v26 = vmul.f32 %v3330_v25, %v3324_v9  ;;  %v3332_v27 = vpop.eup %3331  ;;  %v2769_v25 = vld [vmem:[%s3979_s8 + $0xb0] sm:$0xff] }
 0xe8a   :  { %v2161_v28 = vsel %vm391_vm14, %v3332_v27, 0.0 }
 0xe8b   :  { %3079 = vmatmul.mubr.msk.f32.vlgmr.msra.gmra.mrb[26].mxu1 %vm403_vm3, %v1662_v26  ;;  %v2770_v26 = vld [vmem:[%s3979_s8 + $0xb8] sm:$0xff] }
 0xe8c   :  { %3088 = vmatprep.mubr.msk.f32.mxu1 %vm3344_vm0, %v3345_v4 }
 0xe97   :  { %2162 = vadd.xlane.f32.xlu1 %v2161_v28  ;;  %v2771_v28 = vld [vmem:[%s3979_s8 + $0xc0] sm:$0xff] }
 0xea8   :  { %2166 = vrot.lane.b32.xlu1 %v3774_v40, %s3348_s14 }
 0xeef   :  { %v1827_v29 = vpop.xlane.xlu1 %1826 }
 0xef0   :  { %3333 = vrcp.f32 %v1827_v29  ;;  %v2772_v29 = vld [vmem:[%s3979_s8 + $0xc8] sm:$0xff] }
 0xef3   :  { %v1995_v30 = vpop.xlane.xlu0 %1994  ;;  %v1999_v35 = vpop.permute.xlu1 %1998 }
 0xef4   :  { %3335 = vrcp.f32 %v1995_v30  ;;  %v3276_v30 = vpack.c.bf16 %v2772_v29, %v2771_v28 }
 0xef7   :  { %v1831_v31 = vpop.permute.xlu0 %1830 }
 0xef8   :  { %3087 = vmatpush3.msk.msra.mxu1 %vm407_vm15, %v1831_v31  ;;  %v2773_v31 = vld [vmem:[%s3979_s8 + $0xd0] sm:$0xff] }
 0xef9   :  { %3096 = vmatprep.subr.mxu1 %v3345_v4 }
 0xefa   :  { %v3334_v32 = vpop.eup %3333 }
 0xefb   :  { %v1829_v33 = vmul.f32 %v3334_v32, %v3326_v34  ;;  %v2764_v34 = vld [vmem:[%s3979_s8 + $0x88] sm:$0xff]  ;;  %v2774_v32 = vld [vmem:[%s3979_s8 + $0xd8] sm:$0xff] }
 0xefd   :  { %3089 = vmatmul.mubr.msk.f32.vlgmr.msra.gmra.mrb[28].mxu1 %vm403_vm3, %v1829_v33  ;;  %v3279_v33 = vpack.c.bf16 %v2774_v32, %v2773_v31 }
 0xefe   :  { %v3336_v36 = vpop.eup %3335  ;;  %3097 = vmatpush3.msk.msra.mxu1 %vm407_vm15, %v1999_v35  ;;  %3098 = vmatprep.mubr.msk.f32.mxu1 %vm3344_vm0, %v3345_v4  ;;  %v2775_v35 = vld [vmem:[%s3979_s8 + $0xe0] sm:$0xff] }
 0xeff   :  { %v1997_v37 = vmul.f32 %v3336_v36, %v3328_v18  ;;  %3106 = vmatprep.subr.mxu1 %v3345_v4  ;;  %v3264_v18 = vpack.c.bf16 %v2764_v34, %v2763_v16  ;;  %v2776_v36 = vld [vmem:[%s3979_s8 + $0xe8] sm:$0xff]  ;;  %v2785_v16 = vld [vmem:[%s3985_s12] ss:$0 sm:$0xff] }
 0xf01   :  { %3099 = vmatmul.mubr.msk.f32.vlgmr.msra.gmra.mrb[30].mxu1 %vm403_vm3, %v1997_v37  ;;  %v3282_v37 = vpack.c.bf16 %v2776_v36, %v2775_v35 }
 0xf02   :  { %3108 = vmatprep.mubr.msk.f32.mxu1 %vm3344_vm0, %v3345_v4 }
 0xf24   :  { %v2163_v38 = vpop.xlane.xlu1 %2162 }
 0xf25   :  { %3337 = vrcp.f32 %v2163_v38 }
 0xf28   :  { %v2167_v39 = vpop.permute.xlu1 %2166 }
 0xf29   :  { %3107 = vmatpush3.msk.msra.mxu1 %vm407_vm15, %v2167_v39 }
 0xf2a   :  { %3257 = vmatprep.subr.bf16.mxu1 %v3343_v0 }
 0xf2f   :  { %v3338_v40 = vpop.eup %3337 }
 0xf30   :  { %v2165_v41 = vmul.f32 %v3338_v40, %v3332_v27  ;;  %v3273_v27 = vpack.c.bf16 %v2770_v26, %v2769_v25 }
 0xf32   :  { %3109 = vmatmul.mubr.msk.f32.vlgmr.msra.gmra.mrb[32].mxu1 %vm403_vm3, %v2165_v41 }
 0xf33   :  { %3130 = vmatprep.mubr.msk.f32.mxu1 %vm3344_vm0, %v3345_v4  ;;  %3259 = vmatpush3.bf16.msra.mxu1 %v3258_v13  ;;  %v2783_v13 = vld [vmem:[%s3983_s10 + $0x2] ss:$0 sm:$0xff] }
 0xf34   :  { %3260 = vmatprep.subr.bf16.mxu1 %v3343_v0 }
 0xf5e   :  { %v1735_v42 = vpop.f32.mrb[26].mxu1 }
 0xf5f   :  { %v3080_v43 = vpop.f32.mrb[27].mxu1 }
 0xfd0   :  { %v1903_v50 = vpop.f32.mrb[28].mxu1 }
 0xfd1   :  { %2244 = vrot.lane.b32.xlu0 %v1903_v50, %s3350_s18  ;;  %v3090_v51 = vpop.f32.mrb[29].mxu1  ;;  %v2761_v50 = vld [vmem:[%s3981_s7 + $0x1] ss:$0 sm:$0xff] }
 0xfd4   :  { %v2071_v52 = vpop.f32.mrb[30].mxu1 }
 0xfd5   :  { %2248 = vrot.lane.b32.xlu1 %v2071_v52, %s3351_s19  ;;  %v3100_v53 = vpop.f32.mrb[31].mxu1 }
0x1005   :  { %v2239_v54 = vpop.f32.mrb[32].mxu1 }
0x1006   :  { %2252 = vrot.lane.b32.xlu0 %v2239_v54, %s3352_s20  ;;  %v3110_v55 = vpop.f32.mrb[33].mxu1 }
0x1043   :  { %v2245_v56 = vpop.permute.xlu0 %2244 }
0x1044   :  { %v2255_v58 = vsel %vm312_vm2, %v1735_v42, %v2245_v56  ;;  %v2754_v42 = vld [vmem:[%s3980_s5 + $0x2] ss:$0 sm:$0xff] }
0x1047   :  { %v2249_v57 = vpop.permute.xlu1 %2248 }
0x1048   :  { %v2256_v59 = vsel %vm998_vm4, %v2255_v58, %v2249_v57 }
0x1078   :  { %v2253_v60 = vpop.permute.xlu0 %2252 }
0x1079   :  { %v2257_v61 = vsel %vm1000_vm5, %v2256_v59, %v2253_v60 }
0x107a   :  { %3120 = vmatmul.mubr.msk.f32.vlgmr.msra.gmra.mrb[16].mxu0 %vm86_vm1, %v2257_v61 }
0x107b   :  { %3165 = vmatprep.mubr.msk.f32.mxu0 %vm3344_vm0, %v3345_v4  ;;  %3265 = vmatpush3.bf16.msra.mxu0 %v3264_v18 }
0x107c   :  { %3266 = vmatprep.subr.bf16.mxu0 %v3343_v0 }
0x107f   :  { %3268 = vmatpush3.bf16.msra.mxu0 %v3267_v21 }
0x1080   :  { %3269 = vmatprep.subr.bf16.mxu0 %v3343_v0 }
0x1083   :  { %3271 = vmatpush3.bf16.msra.mxu0 %v3270_v24 }
0x1084   :  { %3272 = vmatprep.subr.bf16.mxu0 %v3343_v0 }
0x1087   :  { %3274 = vmatpush3.bf16.msra.mxu0 %v3273_v27 }
0x1088   :  { %3275 = vmatprep.subr.bf16.mxu0 %v3343_v0 }
0x108b   :  { %3277 = vmatpush3.bf16.msra.mxu0 %v3276_v30 }
0x108c   :  { %3278 = vmatprep.subr.bf16.mxu0 %v3343_v0 }
0x108f   :  { %3280 = vmatpush3.bf16.msra.mxu0 %v3279_v33 }
0x1090   :  { %3281 = vmatprep.subr.bf16.mxu0 %v3343_v0 }
0x1093   :  { %3283 = vmatpush3.bf16.msra.mxu0 %v3282_v37 }
0x1094   :  { %3284 = vmatprep.subr.bf16.mxu0 %v3343_v0 }
0x1097   :  { %3286 = vmatpush3.bf16.msra.mxu0 %v3285_v49 }
0x114d   :  { %v2340_v63 = vpop.f32.mrb[16].mxu0 }
0x114e   :  { %v2341_v1 = vadd.f32 %v2750_v62, %v2340_v63  ;;  %v3121_v2 = vpop.f32.mrb[17].mxu0 }
0x114f   :  { %v2588_v2 = vld [vmem:[%s3984_s11] sm:$0xff] }
0x1150   :  { %v2347_v3 = vadd.f32 %v2341_v1, %v3719_v19  ;;  %v2758_v19 = vld [vmem:[%s3978_s6 + $0x30] sm:$0xff] }
0x1151   :  { %v3261_v15 = vpack.c.bf16 %v2759_v14, %v2758_v19  ;;  %v2784_v19 = vld [vmem:[%s3983_s10 + $0x3] ss:$0 sm:$0xff] }
0x1152   :  { %v2348_v5 = vsel %vm1089_vm6, %v2347_v3, 0.0 }
0x1153   :  { %2349 = vadd.xlane.f32.xlu1 %v2348_v5  ;;  %3262 = vmatpush3.bf16.msra.mxu1 %v3261_v15 }
0x1154   :  { %3287 = vmatprep.subr.bf16.mxu1 %v3343_v0 }
0x11e0   :  { %v2350_v6 = vpop.xlane.xlu1 %2349 }
0x11e1   :  { %v2351_v7 = vmul.f32 0.03125, %v2350_v6  ;;  %v2590_v6 = vld [vmem:[%s3984_s11 + $0x10] sm:$0xff] }
0x11e3   :  { %v2352_v8 = vsub.f32 %v2347_v3, %v2351_v7  ;;  %v2589_v3 = vld [vmem:[%s3984_s11 + $0x8] sm:$0xff]  ;;  %v2591_v7 = vld [vmem:[%s3984_s11 + $0x18] sm:$0xff] }
0x11e4   :  { %v3288_v5 = vpack.c.bf16 %v2589_v3, %v2588_v2 }
0x11e5   :  { %v2353_v9 = vmul.f32 %v2352_v8, %v2352_v8 }
0x11e7   :  { %v2354_v11 = vsel %vm1089_vm6, %v2353_v9, 0.0 }
0x11e8   :  { %2355 = vadd.xlane.f32.xlu0 %v2354_v11 }
0x1275   :  { %v2356_v38 = vpop.xlane.xlu0 %2355 }
0x1276   :  { %v2357_v39 = vmul.f32 0.03125, %v2356_v38 }
0x1278   :  { %v2358_v40 = vadd.f32 1e-05, %v2357_v39 }
0x127a   :  { %3339 = vrsqrt.f32 %v2358_v40 }
0x1284   :  { %v3340_v41 = vpop.eup %3339 }
0x1285   :  { %v2360_v43 = vmul.f32 %v3340_v41, %v2352_v8  ;;  %v3291_v8 = vpack.c.bf16 %v2591_v7, %v2590_v6 }
0x1287   :  { %v2367_v45 = vmul.f32 %v2754_v42, %v2360_v43 }
0x1289   :  { %v2374_v46 = vadd.f32 %v2755_v44, %v2367_v45 }
0x128b   :  { %3131 = vmatmul.mubr.msk.f32.vlgmr.msra.gmra.mrb[34].mxu1 %vm86_vm1, %v2374_v46 }
0x128c   :  { %3176 = vmatprep.mubr.msk.f32.mxu1 %vm3344_vm0, %v3345_v4  ;;  %v2780_v4 = vld [vmem:[%s3982_s9 + $0x1] ss:$0 sm:$0xff]  ;;  %3289 = vmatpush3.bf16.msra.mxu1 %v3288_v5 }
0x128d   :  { %3290 = vmatprep.subr.bf16.mxu1 %v3343_v0 }
0x1290   :  { %3292 = vmatpush3.bf16.msra.mxu1 %v3291_v8 }
0x135e   :  { %v2457_v51 = vpop.f32.mrb[34].mxu1 }
0x135f   :  { %v2458_v52 = vadd.f32 %v2761_v50, %v2457_v51  ;;  %v3132_v53 = vpop.f32.mrb[35].mxu1 }
0x1361   :  { %v2461_v54 = vmax.f32 %v2458_v52, 0.0 }
0x1363   :  { %3166 = vmatmul.mubr.f32.vlgmr.msra.gmra.mrb[18].mxu0 %v2461_v54 }
0x1436   :  { %v2553_v55 = vpop.f32.mrb[18].mxu0 }
0x1437   :  { %v2554_v56 = vadd.f32 %v2780_v4, %v2553_v55  ;;  %v3167_v57 = vpop.f32.mrb[19].mxu0 }
0x1439   :  { %v2560_v58 = vadd.f32 %v2554_v56, %v2374_v46 }
0x143b   :  { %v2561_v59 = vsel %vm1089_vm6, %v2560_v58, 0.0 }
0x143c   :  { %2562 = vadd.xlane.f32.xlu0 %v2561_v59 }
0x14c9   :  { %v2563_v60 = vpop.xlane.xlu0 %2562 }
0x14ca   :  { %v2564_v61 = vmul.f32 0.03125, %v2563_v60 }
0x14cc   :  { %v2565_v62 = vsub.f32 %v2560_v58, %v2564_v61 }
0x14ce   :  { %v2566_v63 = vmul.f32 %v2565_v62, %v2565_v62 }
0x14d0   :  { %v2567_v1 = vsel %vm1089_vm6, %v2566_v63, 0.0 }
0x14d1   :  { %2568 = vadd.xlane.f32.xlu1 %v2567_v1 }
0x155e   :  { %v2569_v9 = vpop.xlane.xlu1 %2568 }
0x155f   :  { %v2570_v11 = vmul.f32 0.03125, %v2569_v9 }
0x1561   :  { %v2571_v10 = vadd.f32 1e-05, %v2570_v11 }
0x1563   :  { %3341 = vrsqrt.f32 %v2571_v10 }
0x156d   :  { %v3342_v12 = vpop.eup %3341 }
0x156e   :  { %v2573_v0 = vmul.f32 %v3342_v12, %v2565_v62 }
0x1570   :  { %v2580_v14 = vmul.f32 %v2783_v13, %v2573_v0 }
0x1572   :  { %v2587_v15 = vadd.f32 %v2784_v19, %v2580_v14 }
0x1574   :  { %3177 = vmatmul.mubr.msk.f32.vlgmr.msra.gmra.mrb[36].mxu1 %vm86_vm1, %v2587_v15 }
0x1647   :  { %v2668_v34 = vpop.f32.mrb[36].mxu1 }
0x1648   :  { %v2669_v17 = vadd.f32 %v2785_v16, %v2668_v34  ;;  %v3178_v18 = vpop.f32.mrb[37].mxu1 }
0x164a   :  { %2672 = vst.msk [vmem:[%s3986_s13] sm:$0x3f] %vm1089_vm6, %v2669_v17 }

// kernel: mae_forward.5
= control target key start
LH: loop header
LB: loop body
LE: loop exit
PB: predicated region body
PF: predicated region fallthrough
CT: control target
= control target key end

     0   :  { %s6317_s0 = inlined_call_operand.vmem [shape: f32[18,32], index: 0, kind: input, shape index: {}]   ;;  %s6318_s1 = inlined_call_operand.vmem [shape: f32[2,3,32,32], index: 1, kind: input, shape index: {}]   ;;  %s6319_s2 = inlined_call_operand.vmem [shape: f32[2,3,1,32], index: 2, kind: input, shape index: {}]   ;;  %s6320_s3 = inlined_call_operand.vmem [shape: f32[2,32,32], index: 3, kind: input, shape index: {}]   ;;  %s6321_s4 = inlined_call_operand.vmem [shape: f32[2,1,32], index: 4, kind: input, shape index: {}]   ;;  %s6322_s5 = inlined_call_operand.vmem [shape: f32[2,2,1,32], index: 5, kind: input, shape index: {}]   ;;  %s6323_s6 = inlined_call_operand.vmem [shape: f32[2,32,128], index: 6, kind: input, shape index: {}]   ;;  %s6324_s7 = inlined_call_operand.vmem [shape: f32[2,1,128], index: 7, kind: input, shape index: {}]   ;;  %s6325_s8 = inlined_call_operand.vmem [shape: f32[2,128,32], index: 8, kind: input, shape index: {}]   ;;  %s6326_s9 = inlined_call_operand.vmem [shape: f32[2,1,32], index: 9, kind: input, shape index: {}]   ;;  %s6327_s10 = inlined_call_operand.vmem [shape: f32[2,2,1,32], index: 10, kind: input, shape index: {}]   ;;  %s6328_s11 = inlined_call_operand.vmem [shape: f32[32,64], index: 11, kind: input, shape index: {}]   ;;  %s6329_s12 = inlined_call_operand.vmem [shape: f32[1,64], index: 12, kind: input, shape index: {}]   ;;  %s6330_s13 = inlined_call_operand.vmem [shape: f32[16,64], index: 13, kind: input, shape index: {}]   ;;  %s6331_s14 = inlined_call_operand.vmem [shape: f32[16,1], index: 14, kind: input, shape index: {}]   ;;  %s6332_s15 = inlined_call_operand.hbm [shape: f32[16,64], index: 15, kind: output, shape index: {0}]   ;;  %s6333_s16 = inlined_call_operand.hbm [shape: f32[1,1], index: 16, kind: output, shape index: {1}]  }
   0x1   :  { %6339 = sst [smem:[#allocation8_spill]] %s6317_s0 }
   0x2   :  { %22 = vsyncpa [#allocation3], 0  ;;  %v103_v0 = vld [vmem:[%s6318_s1] sm:$0xff]  ;;  %v104_v1 = vld [vmem:[%s6318_s1 + $0x8] sm:$0xff]  ;;  %v5048_v3 = vmov 0.0|0.0   ;;  %vm5049_vm0 = vmmov 0  }
   0x3   :  { %v105_v2 = vld [vmem:[%s6318_s1 + $0x10] sm:$0xff]  ;;  %4630 = vmatprep.subr.bf16.mxu1 %v5048_v3  ;;  %v4631_v4 = vpack.c.bf16 %v104_v1, %v103_v0  ;;  %v106_v5 = vld [vmem:[%s6318_s1 + $0x18] sm:$0xff]  ;;  %v5050_v6 = vmov 0.0   ;;  %4642 = vmatprep.subr.bf16.mxu0 %v5048_v3  ;;  %v107_v8 = vld [vmem:[%s6318_s1 + $0x20] sm:$0xff] }
   0x4   :  { %4135 = vmatprep.mubr.msk.f32.mxu1 %vm5049_vm0, %v5050_v6  ;;  %4169 = vmatprep.mubr.msk.f32.mxu0 %vm5049_vm0, %v5050_v6  ;;  %v4634_v7 = vpack.c.bf16 %v106_v5, %v105_v2  ;;  %v108_v9 = vld [vmem:[%s6318_s1 + $0x28] sm:$0xff] }
   0x5   :  { %4632 = vmatpush3.bf16.msra.mxu1 %v4631_v4 }
   0x6   :  { %4633 = vmatprep.subr.bf16.mxu1 %v5048_v3 }
   0x7   :  { %23 = vsyncpa [#allocation4], 0  ;;  %s6340_s20 = sld [smem:[#allocation8_spill]]  ;;  %vm124_vm1 = vcmask 261120   ;;  %v4637_v11 = vpack.c.bf16 %v108_v9, %v107_v8  ;;  %v109_v12 = vld [vmem:[%s6318_s1 + $0x30] sm:$0xff]  ;;  %v110_v13 = vld [vmem:[%s6318_s1 + $0x38] sm:$0xff]  ;;  %v57_v8 = vlaneseq }
   0x8   :  { %v4640_v15 = vpack.c.bf16 %v110_v13, %v109_v12  ;;  %v3742_v25 = vld [vmem:[%s6319_s2 + $0x1] ss:$0 sm:$0xff]  ;;  %vm386_vm2 = vcmask 64512   ;;  %v3738_v33 = vld [vmem:[%s6319_s2] ss:$0 sm:$0xff]  ;;  %s5051_s18 = smov 112  }
   0x9   :  { %4635 = vmatpush3.bf16.msra.mxu1 %v4634_v7  ;;  %vm5225_vm3 = vmpackc.low %vm386_vm2, %vm386_vm2  ;;  %s5052_s19 = smov 120   ;;  %s5053_s21 = smov 104   ;;  %v111_v40 = vld [vmem:[%s6318_s1 + $0x40] sm:$0xff]  ;;  %v112_v41 = vld [vmem:[%s6318_s1 + $0x48] sm:$0xff]  ;;  %v58_v9 = vshrl.u32 %v57_v8, 7  ;;  %vm491_vm14 = vcmask 146432  }
   0xa   :  { %4636 = vmatprep.subr.bf16.mxu1 %v5048_v3  ;;  %v4643_v42 = vpack.c.bf16 %v112_v41, %v111_v40  ;;  %v113_v43 = vld [vmem:[%s6318_s1 + $0x50] sm:$0xff]  ;;  %v114_v44 = vld [vmem:[%s6318_s1 + $0x58] sm:$0xff]  ;;  %s5055_s17 = smov 8   ;;  %s6337_s30 = smov 16  }
   0xb   :  { %v4646_v45 = vpack.c.bf16 %v114_v44, %v113_v43  ;;  %v60_v12 = vadd.s32 16, %v58_v9  ;;  %s6335_s0 = smov 24   ;;  %s6343_s27 = smov 16  }
   0xc   :  { %4644 = vmatpush3.bf16.msra.mxu0 %v4643_v42 }
   0xd   :  { %v5175_v10 = vld [vmem:[%s6340_s20] sm:$0xff]  ;;  %v5191_v14 = vld [vmem:[%s6340_s20 + $0x8] sm:$0xff]  ;;  %v5201_v16 = vld [vmem:[%s6340_s20 + $0x10] sm:$0x3]  ;;  %4645 = vmatprep.subr.bf16.mxu0 %v5048_v3  ;;  %vm85_vm12 = vcmp.lt.s32.totalorder %v60_v12, 18 }
   0xe   :  { %4136 = vmatmul.mubr.msk.f32.vlgmr.msra.gmra.mrb[0].mxu1 %vm124_vm1, %v5175_v10 }
   0xf   :  { %4138 = vmatprep.mubr.msk.f32.mxu1 %vm5049_vm0, %v5050_v6  ;;  %4638 = vmatpush3.bf16.msra.mxu1 %v4637_v11  ;;  %v59_v11 = vadd.s32 8, %v58_v9 }
  0x10   :  { %4639 = vmatprep.subr.bf16.mxu1 %v5048_v3  ;;  %4647 = vmatpush3.bf16.msra.mxu0 %v4646_v45 }
  0x11   :  { %4652 = vmatprep.subr.bf16.mxu0 %v5048_v3  ;;  %vm81_vm4 = vcmp.ge.s32.totalorder %v59_v11, 9  ;;  %vm67_vm6 = vcmp.lt.s32.totalorder %v59_v11, 9 }
  0x12   :  { %4139 = vmatmul.mubr.msk.f32.gmra.mrb[2].mxu1 %vm124_vm1, %v5191_v14 }
  0x13   :  { %4141 = vmatprep.mubr.msk.f32.mxu1 %vm5049_vm0, %v5050_v6  ;;  %4641 = vmatpush3.bf16.msra.mxu1 %v4640_v15 }
  0x14   :  { %4648 = vmatprep.subr.bf16.mxu1 %v5048_v3  ;;  %4170 = vmatmul.mubr.msk.f32.vlgmr.msra.gmra.mrb[0].mxu0 %vm124_vm1, %v5175_v10 }
  0x15   :  { %4172 = vmatprep.mubr.msk.f32.mxu0 %vm5049_vm0, %v5050_v6 }
  0x16   :  { %4142 = vmatmul.mubr.msk.f32.gmra.mrb[4].mxu1 %vm124_vm1, %v5201_v16 }
  0x17   :  { %4152 = vmatprep.mubr.msk.f32.mxu1 %vm5049_vm0, %v5050_v6 }
  0x18   :  { %4173 = vmatmul.mubr.msk.f32.gmra.mrb[2].mxu0 %vm124_vm1, %v5191_v14 }
  0x19   :  { %4175 = vmatprep.mubr.msk.f32.mxu0 %vm5049_vm0, %v5050_v6 }
  0x1a   :  { %4153 = vmatmul.mubr.msk.f32.vlgmr.msra.gmra.mrb[6].mxu1 %vm124_vm1, %v5175_v10  ;;  %v62_v10 = vand.u32 127, %v57_v8 }
  0x1b   :  { %4155 = vmatprep.mubr.msk.f32.mxu1 %vm5049_vm0, %v5050_v6 }
  0x1c   :  { %4176 = vmatmul.mubr.msk.f32.gmra.mrb[4].mxu0 %vm124_vm1, %v5201_v16  ;;  %vm89_vm5 = vcmp.ge.s32.totalorder %v62_v10, 9  ;;  %vm93_vm8 = vcmp.lt.s32.totalorder %v62_v10, 18  ;;  %vm76_vm9 = vcmp.lt.s32.totalorder %v62_v10, 9 }
  0x1d   :  { %4199 = vmatprep.mubr.msk.f32.mxu0 %vm5049_vm0, %v5050_v6  ;;  %vm91_vm7 = vmand %vm81_vm4, %vm89_vm5 }
  0x1e   :  { %4156 = vmatmul.mubr.msk.f32.gmra.mrb[8].mxu1 %vm124_vm1, %v5191_v14  ;;  %vm78_vm10 = vmand %vm67_vm6, %vm76_vm9  ;;  %v5054_v14 = vmov -1e+09   ;;  %vm535_vm6 = vcmask 1041408  }
  0x1f   :  { %4158 = vmatprep.mubr.msk.f32.mxu1 %vm5049_vm0, %v5050_v6  ;;  %vm95_vm11 = vmand %vm91_vm7, %vm93_vm8  ;;  %v5331_v15 = vsel %vm76_vm9, 0.0, %v5054_v14  ;;  %vm1386_vm7 = vcmask 130048   ;;  %vm1505_vm9 = vcmask 254976  }
  0x20   :  { %vm98_vm13 = vmor %vm78_vm10, %vm95_vm11  ;;  %vm3654_vm10 = vcmask 523264  }
  0x21   :  { %vm92_vm15 = vmand %vm85_vm12, %vm89_vm5  ;;  %vm498_vm5 = vcmask 140288  }
  0x22   :  { %4159 = vmatmul.mubr.msk.f32.gmra.mrb[10].mxu1 %vm124_vm1, %v5201_v16  ;;  %vm96_vm4 = vmand %vm92_vm15, %vm93_vm8  ;;  %vm1390_vm8 = vcmask 195584  }
  0x23   :  { %4184 = vmatprep.mubr.msk.f32.mxu1 %vm5049_vm0, %v5050_v6 }
  0xe1   :  { %v200_v17 = vpop.f32.mrb[0].mxu1 }
  0xe2   :  { %v4137_v18 = vpop.f32.mrb[1].mxu1  ;;  %v201_v37 = vadd.f32 %v3738_v33, %v200_v17 }
  0xe5   :  { %v205_v19 = vpop.f32.mrb[2].mxu1 }
  0xe6   :  { %v4140_v20 = vpop.f32.mrb[3].mxu1  ;;  %v206_v38 = vadd.f32 %v3738_v33, %v205_v19 }
  0xe7   :  { %v5337_v20 = vsel %vm98_vm13, 0.0, %v5054_v14 }
  0xe9   :  { %v210_v21 = vpop.f32.mrb[4].mxu1 }
  0xea   :  { %v4143_v22 = vpop.f32.mrb[5].mxu1  ;;  %v211_v39 = vadd.f32 %v3738_v33, %v210_v21  ;;  %v372_v33 = vpop.f32.mrb[0].mxu0 }
  0xed   :  { %v286_v23 = vpop.f32.mrb[6].mxu1 }
  0xee   :  { %v4154_v24 = vpop.f32.mrb[7].mxu1  ;;  %v287_v27 = vadd.f32 %v3742_v25, %v286_v23 }
  0xf1   :  { %v291_v26 = vpop.f32.mrb[8].mxu1 }
  0xf2   :  { %v292_v28 = vadd.f32 %v3742_v25, %v291_v26  ;;  %v4157_v29 = vpop.f32.mrb[9].mxu1  ;;  %v5345_v26 = vsel %vm96_vm4, 0.0, %v5054_v14 }
  0xf4   :  { %v4649_v30 = vpack.c.bf16 %v292_v28, %v287_v27  ;;  %v4827_v31 = vpack.i.bf16 %v292_v28, %v287_v27 }
  0xf5   :  { %v296_v34 = vpop.f32.mrb[10].mxu1 }
  0xf6   :  { %4828 = vrot.lane.b32.xlu1 %v4827_v31, %s5051_s18  ;;  %4823 = vrot.lane.b32.xlu0 %v4827_v31, %s5052_s19  ;;  %v297_v35 = vadd.f32 %v3742_v25, %v296_v34  ;;  %v4160_v36 = vpop.f32.mrb[11].mxu1  ;;  %v4171_v34 = vpop.f32.mrb[1].mxu0 }
  0xf7   :  { %4651 = vmatpush3.bf16.xpose.msk.msra.mxu1 %vm5225_vm3, %v4649_v30  ;;  %v377_v36 = vpop.f32.mrb[2].mxu0 }
  0xf8   :  { %4182 = vmatprep.subr.mxu1 %v5050_v6 }
  0xfa   :  { %619 = vrot.lane.b32.xlu1 %v201_v37, %s5052_s19  ;;  %629 = vrot.lane.b32.xlu0 %v297_v35, %s5052_s19 }
  0xfe   :  { %623 = vrot.lane.b32.xlu1 %v211_v39, %s5052_s19  ;;  %621 = vrot.lane.b32.xlu0 %v206_v38, %s5052_s19 }
  0xff   :  { %4183 = vmatpush3.xpose.msk.msra.mxu1 %vm386_vm2, %v297_v35 }
 0x100   :  { %4655 = vmatprep.subr.bf16.mxu1 %v5048_v3 }
 0x102   :  { %4185 = vmatmul.mubr.msk.f32.vlgmr.msra.gmra.mrb[12].mxu1 %vm386_vm2, %v201_v37  ;;  %4833 = vrot.lane.b32.xlu1 %v4827_v31, %s5053_s21 }
 0x103   :  { %873 = vrot.lane.b32.xlu0 %v297_v35, %s5051_s18  ;;  %4187 = vmatprep.mubr.msk.f32.mxu1 %vm5049_vm0, %v5050_v6 }
 0x106   :  { %4188 = vmatmul.mubr.msk.f32.gmra.mrb[14].mxu1 %vm386_vm2, %v206_v38  ;;  %865 = vrot.lane.b32.xlu1 %v206_v38, %s5051_s18 }
 0x107   :  { %863 = vrot.lane.b32.xlu0 %v201_v37, %s5051_s18  ;;  %4190 = vmatprep.mubr.msk.f32.mxu1 %vm5049_vm0, %v5050_v6 }
 0x10a   :  { %4191 = vmatmul.mubr.msk.f32.gmra.mrb[16].mxu1 %vm386_vm2, %v211_v39  ;;  %1115 = vrot.lane.b32.xlu1 %v297_v35, %s5053_s21  ;;  %v3746_v35 = vld [vmem:[%s6319_s2 + $0x2] ss:$0 sm:$0xff] }
 0x10b   :  { %867 = vrot.lane.b32.xlu0 %v211_v39, %s5051_s18  ;;  %4214 = vmatprep.mubr.msk.f32.mxu1 %vm5049_vm0, %v5050_v6 }
 0x10e   :  { %1107 = vrot.lane.b32.xlu1 %v206_v38, %s5053_s21  ;;  %v378_v38 = vadd.f32 %v3746_v35, %v377_v36 }
 0x10f   :  { %1105 = vrot.lane.b32.xlu0 %v201_v37, %s5053_s21  ;;  %v373_v37 = vadd.f32 %v3746_v35, %v372_v33 }
 0x111   :  { %v4653_v40 = vpack.c.bf16 %v378_v38, %v373_v37  ;;  %v5357_v41 = vpack.i.bf16 %v378_v38, %v373_v37 }
 0x113   :  { %1109 = vrot.lane.b32.xlu0 %v211_v39, %s5053_s21  ;;  %v4174_v39 = vpop.f32.mrb[3].mxu0  ;;  %4654 = vmatpush3.bf16.msra.mxu0 %v4653_v40 }
 0x114   :  { %v382_v42 = vpop.f32.mrb[4].mxu0  ;;  %4197 = vmatprep.subr.mxu0 %v5050_v6 }
 0x115   :  { %v5359_v43 = vadd.f32 %v3746_v35, %v382_v42  ;;  %v4177_v44 = vpop.f32.mrb[5].mxu0 }
 0x117   :  { %4198 = vmatpush3.msk.msra.mxu0 %vm535_vm6, %v5359_v43 }
 0x118   :  { %4659 = vmatprep.subr.bf16.mxu0 %v5048_v3 }
 0x168   :  { %v4824_v46 = vpop.permute.xlu0 %4823  ;;  %v4829_v49 = vpop.permute.xlu1 %4828 }
 0x169   :  { %v4826_v47 = vunpack.i.h.bf16 %v4824_v46  ;;  %v4825_v48 = vunpack.i.l.bf16 %v4824_v46  ;;  %v4831_v53 = vunpack.i.h.bf16 %v4829_v49  ;;  %v4830_v54 = vunpack.i.l.bf16 %v4829_v49 }
 0x16b   :  { %v4656_v50 = vpack.c.bf16 %v4826_v47, %v4825_v48  ;;  %v4663_v56 = vpack.c.bf16 %v4831_v53, %v4830_v54 }
 0x16c   :  { %v620_v51 = vpop.permute.xlu1 %619  ;;  %v630_v52 = vpop.permute.xlu0 %629 }
 0x16d   :  { %4658 = vmatpush3.bf16.xpose.msk.msra.mxu1 %vm5225_vm3, %v4656_v50 }
 0x16e   :  { %4212 = vmatprep.subr.mxu1 %v5050_v6 }
 0x170   :  { %v624_v55 = vpop.permute.xlu1 %623  ;;  %v622_v57 = vpop.permute.xlu0 %621 }
 0x174   :  { %v4834_v58 = vpop.permute.xlu1 %4833 }
 0x175   :  { %4213 = vmatpush3.xpose.msk.msra.mxu1 %vm386_vm2, %v630_v52  ;;  %v874_v59 = vpop.permute.xlu0 %873  ;;  %v4836_v60 = vunpack.i.h.bf16 %v4834_v58  ;;  %v4835_v61 = vunpack.i.l.bf16 %v4834_v58 }
 0x176   :  { %4662 = vmatprep.subr.bf16.mxu1 %v5048_v3 }
 0x177   :  { %v4670_v62 = vpack.c.bf16 %v4836_v60, %v4835_v61 }
 0x178   :  { %4215 = vmatmul.mubr.msk.f32.vlgmr.msra.gmra.mrb[18].mxu1 %vm386_vm2, %v620_v51  ;;  %v866_v0 = vpop.permute.xlu1 %865 }
 0x179   :  { %4665 = vmatpush3.bf16.xpose.msk.msra.mxu1 %vm5225_vm3, %v4663_v56  ;;  %4217 = vmatprep.mubr.msk.f32.mxu1 %vm5049_vm0, %v5050_v6  ;;  %v864_v63 = vpop.permute.xlu0 %863 }
 0x17a   :  { %4242 = vmatprep.subr.mxu1 %v5050_v6 }
 0x17c   :  { %4218 = vmatmul.mubr.msk.f32.gmra.mrb[20].mxu1 %vm386_vm2, %v622_v57  ;;  %v1116_v2 = vpop.permute.xlu1 %1115 }
 0x17d   :  { %4220 = vmatprep.mubr.msk.f32.mxu1 %vm5049_vm0, %v5050_v6  ;;  %v868_v1 = vpop.permute.xlu0 %867 }
 0x180   :  { %4221 = vmatmul.mubr.msk.f32.gmra.mrb[22].mxu1 %vm386_vm2, %v624_v55  ;;  %v1108_v5 = vpop.permute.xlu1 %1107 }
 0x181   :  { %4243 = vmatpush3.xpose.msk.msra.mxu1 %vm386_vm2, %v874_v59  ;;  %4244 = vmatprep.mubr.msk.f32.mxu1 %vm5049_vm0, %v5050_v6  ;;  %v1106_v4 = vpop.permute.xlu0 %1105 }
 0x182   :  { %4669 = vmatprep.subr.bf16.mxu1 %v5048_v3 }
 0x184   :  { %4245 = vmatmul.mubr.msk.f32.vlgmr.msra.gmra.mrb[24].mxu1 %vm386_vm2, %v864_v63 }
 0x185   :  { %4672 = vmatpush3.bf16.xpose.msk.msra.mxu1 %vm5225_vm3, %v4670_v62  ;;  %4247 = vmatprep.mubr.msk.f32.mxu1 %vm5049_vm0, %v5050_v6  ;;  %v1110_v7 = vpop.permute.xlu0 %1109 }
 0x186   :  { %4272 = vmatprep.subr.mxu1 %v5050_v6 }
 0x188   :  { %4248 = vmatmul.mubr.msk.f32.gmra.mrb[26].mxu1 %vm386_vm2, %v866_v0 }
 0x189   :  { %4250 = vmatprep.mubr.msk.f32.mxu1 %vm5049_vm0, %v5050_v6 }
 0x18c   :  { %4251 = vmatmul.mubr.msk.f32.gmra.mrb[28].mxu1 %vm386_vm2, %v868_v1 }
 0x18d   :  { %4273 = vmatpush3.xpose.msk.msra.mxu1 %vm386_vm2, %v1116_v2  ;;  %4274 = vmatprep.mubr.msk.f32.mxu1 %vm5049_vm0, %v5050_v6 }
 0x18e   :  { %4676 = vmatprep.subr.bf16.mxu1 %v5048_v3 }
 0x190   :  { %4275 = vmatmul.mubr.msk.f32.vlgmr.msra.gmra.mrb[30].mxu1 %vm386_vm2, %v1106_v4 }
 0x191   :  { %4277 = vmatprep.mubr.msk.f32.mxu1 %vm5049_vm0, %v5050_v6 }
 0x194   :  { %4278 = vmatmul.mubr.msk.f32.gmra.mrb[32].mxu1 %vm386_vm2, %v1108_v5 }
 0x195   :  { %4280 = vmatprep.mubr.msk.f32.mxu1 %vm5049_vm0, %v5050_v6 }
 0x198   :  { %4281 = vmatmul.mubr.msk.f32.gmra.mrb[34].mxu1 %vm386_vm2, %v1110_v7 }
 0x199   :  { %4306 = vmatprep.mubr.msk.f32.mxu1 %vm5049_vm0, %v5050_v6 }
 0x1d5   :  { %v471_v13 = vpop.f32.mrb[12].mxu1 }
 0x1d6   :  { %v485_v16 = vmul.f32 0.35355338, %v471_v13  ;;  %v4186_v17 = vpop.f32.mrb[13].mxu1 }
 0x1d8   :  { %v5335_v18 = vadd.f32 %v485_v16, %v5331_v15 }
 0x1d9   :  { %v476_v19 = vpop.f32.mrb[14].mxu1 }
 0x1da   :  { %v486_v21 = vmul.f32 0.35355338, %v476_v19  ;;  %v4189_v22 = vpop.f32.mrb[15].mxu1  ;;  %v492_v23 = vsel %vm491_vm14, %v5335_v18, -inf }
 0x1db   :  { %493 = vmax.xlane.f32.xlu1 %v492_v23 }
 0x1dc   :  { %v5343_v24 = vadd.f32 %v486_v21, %v5337_v20 }
 0x1dd   :  { %v481_v25 = vpop.f32.mrb[16].mxu1 }
 0x1de   :  { %v487_v27 = vmul.f32 0.35355338, %v481_v25  ;;  %v4192_v28 = vpop.f32.mrb[17].mxu1  ;;  %v495_v29 = vsel %vm491_vm14, %v5343_v24, -inf }
 0x1df   :  { %496 = vmax.xlane.f32.xlu0 %v495_v29 }
 0x1e0   :  { %v5350_v30 = vadd.f32 %v487_v27, %v5345_v26 }
 0x1e2   :  { %v499_v31 = vsel %vm498_vm5, %v5350_v30, -inf }
 0x1e3   :  { %500 = vmax.xlane.f32.xlu0 %v499_v31 }
 0x24b   :  { %v709_v45 = vpop.f32.mrb[18].mxu1 }
 0x24c   :  { %v723_v46 = vmul.f32 0.35355338, %v709_v45  ;;  %v4216_v47 = vpop.f32.mrb[19].mxu1 }
 0x24e   :  { %v5366_v48 = vadd.f32 %v723_v46, %v5331_v15 }
 0x24f   :  { %v714_v49 = vpop.f32.mrb[20].mxu1 }
 0x250   :  { %v724_v50 = vmul.f32 0.35355338, %v714_v49  ;;  %v4219_v51 = vpop.f32.mrb[21].mxu1  ;;  %v729_v52 = vsel %vm491_vm14, %v5366_v48, -inf }
 0x251   :  { %730 = vmax.xlane.f32.xlu1 %v729_v52 }
 0x252   :  { %v5371_v53 = vadd.f32 %v724_v50, %v5337_v20 }
 0x253   :  { %v719_v54 = vpop.f32.mrb[22].mxu1 }
 0x254   :  { %v725_v55 = vmul.f32 0.35355338, %v719_v54  ;;  %v4222_v56 = vpop.f32.mrb[23].mxu1  ;;  %v732_v57 = vsel %vm491_vm14, %v5371_v53, -inf }
 0x255   :  { %733 = vmax.xlane.f32.xlu0 %v732_v57 }
 0x256   :  { %v5376_v58 = vadd.f32 %v725_v55, %v5345_v26 }
 0x257   :  { %v953_v59 = vpop.f32.mrb[24].mxu1 }
 0x258   :  { %v967_v60 = vmul.f32 0.35355338, %v953_v59  ;;  %v4246_v61 = vpop.f32.mrb[25].mxu1  ;;  %v735_v62 = vsel %vm498_vm5, %v5376_v58, -inf }
 0x259   :  { %736 = vmax.xlane.f32.xlu1 %v735_v62 }
 0x25a   :  { %v5381_v63 = vadd.f32 %v967_v60, %v5331_v15 }
 0x25b   :  { %v958_v0 = vpop.f32.mrb[26].mxu1 }
 0x25c   :  { %v968_v1 = vmul.f32 0.35355338, %v958_v0  ;;  %v4249_v2 = vpop.f32.mrb[27].mxu1  ;;  %v973_v4 = vsel %vm491_vm14, %v5381_v63, -inf }
 0x25d   :  { %974 = vmax.xlane.f32.xlu0 %v973_v4 }
 0x25e   :  { %v5386_v5 = vadd.f32 %v968_v1, %v5337_v20 }
 0x25f   :  { %v963_v7 = vpop.f32.mrb[28].mxu1 }
 0x260   :  { %v969_v8 = vmul.f32 0.35355338, %v963_v7  ;;  %v4252_v9 = vpop.f32.mrb[29].mxu1  ;;  %v976_v10 = vsel %vm491_vm14, %v5386_v5, -inf }
 0x261   :  { %977 = vmax.xlane.f32.xlu1 %v976_v10 }
 0x262   :  { %v5391_v11 = vadd.f32 %v969_v8, %v5345_v26 }
 0x263   :  { %v1195_v12 = vpop.f32.mrb[30].mxu1 }
 0x264   :  { %v1209_v13 = vmul.f32 0.35355338, %v1195_v12  ;;  %v4276_v14 = vpop.f32.mrb[31].mxu1  ;;  %v979_v16 = vsel %vm498_vm5, %v5391_v11, -inf }
 0x265   :  { %980 = vmax.xlane.f32.xlu0 %v979_v16 }
 0x266   :  { %v5396_v17 = vadd.f32 %v1209_v13, %v5331_v15 }
 0x267   :  { %v1200_v19 = vpop.f32.mrb[32].mxu1 }
 0x268   :  { %v1210_v21 = vmul.f32 0.35355338, %v1200_v19  ;;  %v4279_v22 = vpop.f32.mrb[33].mxu1  ;;  %v1215_v23 = vsel %vm491_vm14, %v5396_v17, -inf  ;;  %v494_v33 = vpop.xlane.xlu1 %493 }
 0x269   :  { %1216 = vmax.xlane.f32.xlu1 %v1215_v23  ;;  %v502_v34 = vsub.f32 %v5335_v18, %v494_v33 }
 0x26a   :  { %v5401_v25 = vadd.f32 %v1210_v21, %v5337_v20 }
 0x26b   :  { %v1205_v27 = vpop.f32.mrb[34].mxu1  ;;  %v505_v36 = vmul.f32 1.442695, %v502_v34 }
 0x26c   :  { %v4282_v28 = vpop.f32.mrb[35].mxu1  ;;  %v1218_v29 = vsel %vm491_vm14, %v5401_v25, -inf  ;;  %v497_v31 = vpop.xlane.xlu0 %496  ;;  %v1211_v39 = vmul.f32 0.35355338, %v1205_v27 }
 0x26d   :  { %1219 = vmax.xlane.f32.xlu0 %v1218_v29  ;;  %4884 = vpow2.f32 %v505_v36  ;;  %v503_v46 = vsub.f32 %v5343_v24, %v497_v31 }
 0x26e   :  { %v5412_v40 = vadd.f32 %v1211_v39, %v5345_v26 }
 0x26f   :  { %v507_v47 = vmul.f32 1.442695, %v503_v46 }
 0x270   :  { %v501_v35 = vpop.xlane.xlu0 %500  ;;  %v1221_v42 = vsel %vm498_vm5, %v5412_v40, -inf }
 0x271   :  { %v504_v37 = vsub.f32 %v5350_v30, %v501_v35 }
 0x273   :  { %v509_v38 = vmul.f32 1.442695, %v504_v37 }
 0x275   :  { %4886 = vpow2.f32 %v509_v38 }
 0x276   :  { %4888 = vpow2.f32 %v507_v47 }
 0x277   :  { %v5416_v44 = vpop.eup %4884 }
 0x278   :  { %v511_v18 = vsel %vm491_vm14, %v5416_v44, 0.0 }
 0x27a   :  { %768 = vrot.lane.b32.xlu1 %v5359_v43, %s5052_s19 }
 0x27f   :  { %v5420_v45 = vpop.eup %4886 }
 0x280   :  { %v517_v30 = vsel %vm498_vm5, %v5420_v45, 0.0  ;;  %v5427_v49 = vpop.eup %4888 }
 0x281   :  { %v514_v50 = vsel %vm491_vm14, %v5427_v49, 0.0 }
 0x283   :  { %4838 = vrot.lane.b32.xlu0 %v5357_v41, %s5052_s19 }
 0x29e   :  { %1222 = vmax.xlane.f32.xlu1 %v1221_v42 }
 0x2a2   :  { %512 = vadd.xlane.f32.xlu0 %v511_v18 }
 0x2a6   :  { %518 = vadd.xlane.f32.xlu0 %v517_v30 }
 0x2af   :  { %4843 = vrot.lane.b32.xlu1 %v5357_v41, %s5051_s18 }
 0x2d3   :  { %515 = vadd.xlane.f32.xlu1 %v514_v50 }
 0x2de   :  { %v731_v51 = vpop.xlane.xlu1 %730 }
 0x2df   :  { %v738_v52 = vsub.f32 %v5366_v48, %v731_v51 }
 0x2e1   :  { %v741_v54 = vmul.f32 1.442695, %v738_v52 }
 0x2e2   :  { %v734_v55 = vpop.xlane.xlu0 %733 }
 0x2e3   :  { %4890 = vpow2.f32 %v741_v54  ;;  %v739_v56 = vsub.f32 %v5371_v53, %v734_v55 }
 0x2e5   :  { %v743_v57 = vmul.f32 1.442695, %v739_v56 }
 0x2e6   :  { %v737_v59 = vpop.xlane.xlu1 %736 }
 0x2e7   :  { %4892 = vpow2.f32 %v743_v57  ;;  %v740_v24 = vsub.f32 %v5376_v58, %v737_v59 }
 0x2e9   :  { %v745_v60 = vmul.f32 1.442695, %v740_v24 }
 0x2ea   :  { %v975_v61 = vpop.xlane.xlu0 %974 }
 0x2eb   :  { %4894 = vpow2.f32 %v745_v60  ;;  %v982_v62 = vsub.f32 %v5381_v63, %v975_v61 }
 0x2ed   :  { %v5435_v0 = vpop.eup %4890  ;;  %v985_v1 = vmul.f32 1.442695, %v982_v62 }
 0x2ee   :  { %v978_v2 = vpop.xlane.xlu1 %977  ;;  %v747_v48 = vsel %vm491_vm14, %v5435_v0, 0.0 }
 0x2ef   :  { %4896 = vpow2.f32 %v985_v1  ;;  %v983_v53 = vsub.f32 %v5386_v5, %v978_v2  ;;  %748 = vadd.xlane.f32.xlu1 %v747_v48 }
 0x2f1   :  { %v5440_v4 = vpop.eup %4892  ;;  %v987_v7 = vmul.f32 1.442695, %v983_v53 }
 0x2f2   :  { %v981_v58 = vpop.xlane.xlu0 %980  ;;  %v750_v8 = vsel %vm491_vm14, %v5440_v4, 0.0 }
 0x2f3   :  { %4898 = vpow2.f32 %v987_v7  ;;  %v984_v63 = vsub.f32 %v5391_v11, %v981_v58  ;;  %751 = vadd.xlane.f32.xlu0 %v750_v8 }
 0x2f5   :  { %v5445_v9 = vpop.eup %4894  ;;  %v989_v10 = vmul.f32 1.442695, %v984_v63 }
 0x2f6   :  { %v1217_v12 = vpop.xlane.xlu1 %1216  ;;  %v753_v13 = vsel %vm498_vm5, %v5445_v9, 0.0 }
 0x2f7   :  { %4900 = vpow2.f32 %v989_v10  ;;  %v1224_v5 = vsub.f32 %v5396_v17, %v1217_v12  ;;  %754 = vadd.xlane.f32.xlu1 %v753_v13 }
 0x2f9   :  { %v5450_v14 = vpop.eup %4896  ;;  %v1227_v16 = vmul.f32 1.442695, %v1224_v5 }
 0x2fa   :  { %v991_v19 = vsel %vm491_vm14, %v5450_v14, 0.0  ;;  %v1220_v28 = vpop.xlane.xlu0 %1219  ;;  %v769_v33 = vpop.permute.xlu1 %768 }
 0x2fb   :  { %4902 = vpow2.f32 %v1227_v16  ;;  %992 = vadd.xlane.f32.xlu0 %v991_v19  ;;  %v1225_v29 = vsub.f32 %v5401_v25, %v1220_v28 }
 0x2fd   :  { %v5454_v11 = vpop.eup %4898  ;;  %v1229_v31 = vmul.f32 1.442695, %v1225_v29 }
 0x2fe   :  { %v994_v21 = vsel %vm491_vm14, %v5454_v11, 0.0  ;;  %v4839_v34 = vpop.permute.xlu0 %4838 }
 0x2ff   :  { %995 = vadd.xlane.f32.xlu1 %v994_v21  ;;  %4904 = vpow2.f32 %v1229_v31  ;;  %v4841_v18 = vunpack.i.h.bf16 %v4839_v34  ;;  %v4840_v30 = vunpack.i.l.bf16 %v4839_v34 }
 0x301   :  { %v5458_v22 = vpop.eup %4900 }
 0x302   :  { %v997_v17 = vsel %vm498_vm5, %v5458_v22, 0.0 }
 0x303   :  { %998 = vadd.xlane.f32.xlu1 %v997_v17 }
 0x305   :  { %v5462_v23 = vpop.eup %4902 }
 0x306   :  { %v1233_v27 = vsel %vm491_vm14, %v5462_v23, 0.0 }
 0x307   :  { %1234 = vadd.xlane.f32.xlu1 %v1233_v27 }
 0x309   :  { %v5469_v36 = vpop.eup %4904 }
 0x30a   :  { %v1236_v42 = vsel %vm491_vm14, %v5469_v36, 0.0 }
 0x311   :  { %1010 = vrot.lane.b32.xlu0 %v5359_v43, %s5051_s18 }
 0x32b   :  { %v1223_v35 = vpop.xlane.xlu1 %1222 }
 0x32c   :  { %v1226_v37 = vsub.f32 %v5412_v40, %v1223_v35  ;;  %v4660_v40 = vpack.c.bf16 %v4841_v18, %v4840_v30  ;;  %v1394_v30 = vld [vmem:[%s6320_s3] sm:$0xff] }
 0x32e   :  { %v1231_v38 = vmul.f32 1.442695, %v1226_v37 }
 0x32f   :  { %v513_v39 = vpop.xlane.xlu0 %512 }
 0x330   :  { %4906 = vpow2.f32 %v1231_v38  ;;  %1237 = vadd.xlane.f32.xlu0 %v1236_v42 }
 0x331   :  { %4908 = vrcp.f32 %v513_v39 }
 0x333   :  { %v519_v51 = vpop.xlane.xlu0 %518 }
 0x33a   :  { %v5474_v25 = vpop.eup %4906 }
 0x33b   :  { %v4909_v46 = vpop.eup %4908  ;;  %v1239_v47 = vsel %vm498_vm5, %v5474_v25, 0.0 }
 0x33c   :  { %v521_v50 = vmul.f32 %v4909_v46, %v5416_v44  ;;  %1240 = vadd.xlane.f32.xlu1 %v1239_v47  ;;  %v4844_v44 = vpop.permute.xlu1 %4843  ;;  %v1396_v46 = vld [vmem:[%s6320_s3 + $0x10] sm:$0xff] }
 0x33d   :  { %v4846_v24 = vunpack.i.h.bf16 %v4844_v44 }
 0x33e   :  { %4200 = vmatmul.mubr.msk.f32.vlgmr.msra.gmra.mrb[6].mxu0 %vm491_vm14, %v521_v50 }
 0x33f   :  { %4661 = vmatpush3.bf16.msra.mxu0 %v4660_v40  ;;  %4202 = vmatprep.mubr.msk.f32.mxu0 %vm5049_vm0, %v5050_v6  ;;  %v1397_v40 = vld [vmem:[%s6320_s3 + $0x18] sm:$0xff] }
 0x340   :  { %4227 = vmatprep.subr.mxu0 %v5050_v6 }
 0x343   :  { %4228 = vmatpush3.msk.msra.mxu0 %vm535_vm6, %v769_v33 }
 0x344   :  { %4666 = vmatprep.subr.bf16.mxu0 %v5048_v3 }
 0x346   :  { %1252 = vrot.lane.b32.xlu0 %v5359_v43, %s5053_s21 }
 0x34d   :  { %4848 = vrot.lane.b32.xlu1 %v5357_v41, %s5053_s21 }
 0x360   :  { %v516_v52 = vpop.xlane.xlu1 %515 }
 0x361   :  { %4910 = vrcp.f32 %v516_v52 }
 0x362   :  { %4912 = vrcp.f32 %v519_v51 }
 0x36b   :  { %v4911_v54 = vpop.eup %4910 }
 0x36c   :  { %v523_v55 = vmul.f32 %v4911_v54, %v5427_v49  ;;  %v4913_v56 = vpop.eup %4912  ;;  %v4845_v49 = vunpack.i.l.bf16 %v4844_v44  ;;  %v4680_v44 = vpack.c.bf16 %v1397_v40, %v1396_v46 }
 0x36d   :  { %v525_v57 = vmul.f32 %v4913_v56, %v5420_v45 }
 0x36e   :  { %4203 = vmatmul.mubr.msk.f32.gmra.mrb[8].mxu0 %vm491_vm14, %v523_v55  ;;  %v4667_v1 = vpack.c.bf16 %v4846_v24, %v4845_v49 }
 0x36f   :  { %4205 = vmatprep.mubr.msk.f32.mxu0 %vm5049_vm0, %v5050_v6 }
 0x372   :  { %4206 = vmatmul.mubr.msk.f32.gmra.mrb[10].mxu0 %vm491_vm14, %v525_v57 }
 0x373   :  { %4229 = vmatprep.mubr.msk.f32.mxu0 %vm5049_vm0, %v5050_v6 }
 0x37c   :  { %v749_v41 = vpop.xlane.xlu1 %748 }
 0x37d   :  { %4914 = vrcp.f32 %v749_v41 }
 0x380   :  { %v752_v43 = vpop.xlane.xlu0 %751 }
 0x381   :  { %4916 = vrcp.f32 %v752_v43 }
 0x384   :  { %v755_v59 = vpop.xlane.xlu1 %754 }
 0x385   :  { %4918 = vrcp.f32 %v755_v59 }
 0x387   :  { %v4915_v60 = vpop.eup %4914 }
 0x388   :  { %v757_v61 = vmul.f32 %v4915_v60, %v5435_v0  ;;  %v993_v62 = vpop.xlane.xlu0 %992 }
 0x389   :  { %4920 = vrcp.f32 %v993_v62 }
 0x38a   :  { %4230 = vmatmul.mubr.msk.f32.vlgmr.msra.gmra.mrb[12].mxu0 %vm491_vm14, %v757_v61 }
 0x38b   :  { %v4917_v45 = vpop.eup %4916  ;;  %4668 = vmatpush3.bf16.msra.mxu0 %v4667_v1  ;;  %4232 = vmatprep.mubr.msk.f32.mxu0 %vm5049_vm0, %v5050_v6 }
 0x38c   :  { %v1011_v2 = vpop.permute.xlu0 %1010  ;;  %v996_v48 = vpop.xlane.xlu1 %995  ;;  %4257 = vmatprep.subr.mxu0 %v5050_v6  ;;  %v759_v53 = vmul.f32 %v4917_v45, %v5440_v4 }
 0x38d   :  { %4922 = vrcp.f32 %v996_v48 }
 0x38e   :  { %4233 = vmatmul.mubr.msk.f32.gmra.mrb[14].mxu0 %vm491_vm14, %v759_v53 }
 0x38f   :  { %v4919_v0 = vpop.eup %4918  ;;  %4258 = vmatpush3.msk.msra.mxu0 %vm535_vm6, %v1011_v2  ;;  %4235 = vmatprep.mubr.msk.f32.mxu0 %vm5049_vm0, %v5050_v6 }
 0x390   :  { %v999_v7 = vpop.xlane.xlu1 %998  ;;  %v761_v58 = vmul.f32 %v4919_v0, %v5445_v9  ;;  %4673 = vmatprep.subr.bf16.mxu0 %v5048_v3 }
 0x391   :  { %4924 = vrcp.f32 %v999_v7 }
 0x392   :  { %4236 = vmatmul.mubr.msk.f32.gmra.mrb[16].mxu0 %vm491_vm14, %v761_v58 }
 0x393   :  { %v4921_v8 = vpop.eup %4920  ;;  %4259 = vmatprep.mubr.msk.f32.mxu0 %vm5049_vm0, %v5050_v6 }
 0x394   :  { %v1001_v4 = vmul.f32 %v4921_v8, %v5450_v14  ;;  %v1235_v13 = vpop.xlane.xlu1 %1234 }
 0x395   :  { %4926 = vrcp.f32 %v1235_v13 }
 0x396   :  { %4260 = vmatmul.mubr.msk.f32.vlgmr.msra.gmra.mrb[18].mxu0 %vm491_vm14, %v1001_v4 }
 0x397   :  { %v4923_v63 = vpop.eup %4922  ;;  %4262 = vmatprep.mubr.msk.f32.mxu0 %vm5049_vm0, %v5050_v6 }
 0x398   :  { %v1003_v10 = vmul.f32 %v4923_v63, %v5454_v11 }
 0x39a   :  { %4263 = vmatmul.mubr.msk.f32.gmra.mrb[20].mxu0 %vm491_vm14, %v1003_v10 }
 0x39b   :  { %v4925_v9 = vpop.eup %4924  ;;  %4265 = vmatprep.mubr.msk.f32.mxu0 %vm5049_vm0, %v5050_v6 }
 0x39c   :  { %v1005_v12 = vmul.f32 %v4925_v9, %v5458_v22 }
 0x39e   :  { %4266 = vmatmul.mubr.msk.f32.gmra.mrb[22].mxu0 %vm491_vm14, %v1005_v12 }
 0x39f   :  { %4289 = vmatprep.mubr.msk.f32.mxu0 %vm5049_vm0, %v5050_v6  ;;  %v4927_v17 = vpop.eup %4926 }
 0x3a0   :  { %v1243_v22 = vmul.f32 %v4927_v17, %v5462_v23 }
 0x3bd   :  { %v1238_v5 = vpop.xlane.xlu0 %1237 }
 0x3be   :  { %4928 = vrcp.f32 %v1238_v5 }
 0x3c1   :  { %v1253_v27 = vpop.permute.xlu0 %1252 }
 0x3c8   :  { %v4929_v28 = vpop.eup %4928 }
 0x3c9   :  { %v1241_v14 = vpop.xlane.xlu1 %1240  ;;  %v1245_v29 = vmul.f32 %v4929_v28, %v5469_v36 }
 0x3ca   :  { %4930 = vrcp.f32 %v1241_v14 }
 0x3cd   :  { %v4849_v16 = vpop.permute.xlu1 %4848 }
 0x3ce   :  { %v4851_v19 = vunpack.i.h.bf16 %v4849_v16  ;;  %v4850_v11 = vunpack.i.l.bf16 %v4849_v16 }
 0x3d0   :  { %v4674_v21 = vpack.c.bf16 %v4851_v19, %v4850_v11  ;;  %v3790_v19 = vld [vmem:[%s6321_s4] ss:$0 sm:$0xff] }
 0x3d2   :  { %4675 = vmatpush3.bf16.msra.mxu0 %v4674_v21 }
 0x3d3   :  { %4287 = vmatprep.subr.mxu0 %v5050_v6 }
 0x3d4   :  { %v4931_v31 = vpop.eup %4930 }
 0x3d5   :  { %v1247_v23 = vmul.f32 %v4931_v31, %v5474_v25  ;;  %v1395_v25 = vld [vmem:[%s6320_s3 + $0x8] sm:$0xff] }
 0x3d6   :  { %4288 = vmatpush3.msk.msra.mxu0 %vm535_vm6, %v1253_v27  ;;  %v4677_v50 = vpack.c.bf16 %v1395_v25, %v1394_v30 }
 0x3d7   :  { %4290 = vmatmul.mubr.msk.f32.vlgmr.msra.gmra.mrb[24].mxu0 %vm491_vm14, %v1243_v22  ;;  %4682 = vmatprep.subr.bf16.mxu0 %v5048_v3  ;;  %v5006_v22 = vld [vmem:[%s6340_s20] sm:$0xff] }
 0x3d8   :  { %4292 = vmatprep.mubr.msk.f32.mxu0 %vm5049_vm0, %v5050_v6  ;;  %4678 = vmatpush3.bf16.msra.mxu1 %v4677_v50 }
 0x3d9   :  { %4679 = vmatprep.subr.bf16.mxu1 %v5048_v3 }
 0x3db   :  { %4293 = vmatmul.mubr.msk.f32.gmra.mrb[26].mxu0 %vm491_vm14, %v1245_v29 }
 0x3dc   :  { %4295 = vmatprep.mubr.msk.f32.mxu0 %vm5049_vm0, %v5050_v6  ;;  %4681 = vmatpush3.bf16.msra.mxu1 %v4680_v44 }
 0x3dd   :  { %4688 = vmatprep.subr.bf16.mxu1 %v5048_v3 }
 0x3df   :  { %4296 = vmatmul.mubr.msk.f32.gmra.mrb[28].mxu0 %vm491_vm14, %v1247_v23 }
 0x3e0   :  { %4323 = vmatprep.mubr.msk.f32.mxu0 %vm5049_vm0, %v5050_v6 }
 0x411   :  { %v605_v33 = vpop.f32.mrb[6].mxu0 }
 0x412   :  { %v4201_v34 = vpop.f32.mrb[7].mxu0 }
 0x441   :  { %v610_v35 = vpop.f32.mrb[8].mxu0 }
 0x442   :  { %v4204_v37 = vpop.f32.mrb[9].mxu0 }
 0x445   :  { %v615_v38 = vpop.f32.mrb[10].mxu0 }
 0x446   :  { %v4207_v39 = vpop.f32.mrb[11].mxu0 }
 0x45d   :  { %v849_v36 = vpop.f32.mrb[12].mxu0 }
 0x45e   :  { %1350 = vrot.lane.b32.xlu0 %v849_v36, %s5055_s17  ;;  %v4231_v42 = vpop.f32.mrb[13].mxu0  ;;  %v5008_v36 = vld [vmem:[%s6340_s20 + $0x10] sm:$0x3] }
 0x461   :  { %v854_v18 = vpop.f32.mrb[14].mxu0 }
 0x462   :  { %1352 = vrot.lane.b32.xlu0 %v854_v18, %s5055_s17  ;;  %v4234_v47 = vpop.f32.mrb[15].mxu0 }
 0x465   :  { %v859_v51 = vpop.f32.mrb[16].mxu0 }
 0x466   :  { %v4237_v52 = vpop.f32.mrb[17].mxu0 }
 0x469   :  { %v1091_v54 = vpop.f32.mrb[18].mxu0 }
 0x46a   :  { %1362 = vrot.lane.b32.xlu0 %v1091_v54, %s6337_s30  ;;  %v4261_v55 = vpop.f32.mrb[19].mxu0 }
 0x46d   :  { %v1096_v56 = vpop.f32.mrb[20].mxu0 }
 0x46e   :  { %1364 = vrot.lane.b32.xlu1 %v1096_v56, %s6337_s30  ;;  %v4264_v57 = vpop.f32.mrb[21].mxu0 }
 0x471   :  { %v1101_v41 = vpop.f32.mrb[22].mxu0 }
 0x472   :  { %v4267_v43 = vpop.f32.mrb[23].mxu0 }
 0x4aa   :  { %v1333_v59 = vpop.f32.mrb[24].mxu0 }
 0x4ab   :  { %1374 = vrot.lane.b32.xlu1 %v1333_v59, %s6335_s0  ;;  %v4291_v24 = vpop.f32.mrb[25].mxu0  ;;  %v1558_v59 = vld [vmem:[%s6323_s6] sm:$0xff] }
 0x4ac   :  { %v1559_v24 = vld [vmem:[%s6323_s6 + $0x8] sm:$0xff] }
 0x4ae   :  { %v1338_v49 = vpop.f32.mrb[26].mxu0 }
 0x4af   :  { %1354 = vrot.lane.b32.xlu1 %v859_v51, %s5055_s17  ;;  %1376 = vrot.lane.b32.xlu0 %v1338_v49, %s6335_s0  ;;  %v4294_v60 = vpop.f32.mrb[27].mxu0  ;;  %v4683_v49 = vpack.c.bf16 %v1559_v24, %v1558_v59 }
 0x4b0   :  { %v1560_v60 = vld [vmem:[%s6323_s6 + $0x10] sm:$0xff] }
 0x4b1   :  { %4684 = vmatpush3.bf16.msra.mxu0 %v4683_v49 }
 0x4b2   :  { %v1343_v61 = vpop.f32.mrb[28].mxu0  ;;  %4685 = vmatprep.subr.bf16.mxu0 %v5048_v3 }
 0x4b3   :  { %1366 = vrot.lane.b32.xlu0 %v1101_v41, %s6337_s30  ;;  %1378 = vrot.lane.b32.xlu1 %v1343_v61, %s6335_s0  ;;  %v4297_v62 = vpop.f32.mrb[29].mxu0  ;;  %v1561_v61 = vld [vmem:[%s6323_s6 + $0x18] sm:$0xff] }
 0x4b4   :  { %v4686_v62 = vpack.c.bf16 %v1561_v61, %v1560_v60 }
 0x4b6   :  { %4687 = vmatpush3.bf16.msra.mxu0 %v4686_v62 }
 0x4b7   :  { %4712 = vmatprep.subr.bf16.mxu0 %v5048_v3 }
 0x4d0   :  { %v1351_v1 = vpop.permute.xlu0 %1350 }
 0x4d1   :  { %v1383_v53 = vsel %vm386_vm2, %v605_v33, %v1351_v1  ;;  %v5007_v33 = vld [vmem:[%s6340_s20 + $0x8] sm:$0xff]  ;;  %v1661_v1 = vld [vmem:[%s6325_s8] sm:$0xff] }
 0x4d4   :  { %v1353_v45 = vpop.permute.xlu0 %1352 }
 0x4d5   :  { %v1384_v8 = vsel %vm386_vm2, %v610_v35, %v1353_v45  ;;  %v1662_v45 = vld [vmem:[%s6325_s8 + $0x8] sm:$0xff] }
 0x4dc   :  { %v1363_v48 = vpop.permute.xlu0 %1362 }
 0x4dd   :  { %v1387_v0 = vsel %vm1386_vm7, %v1383_v53, %v1363_v48  ;;  %v4689_v48 = vpack.c.bf16 %v1662_v45, %v1661_v1  ;;  %v1664_v53 = vld [vmem:[%s6325_s8 + $0x18] sm:$0xff] }
 0x4e0   :  { %v1365_v2 = vpop.permute.xlu1 %1364 }
 0x4e1   :  { %v1388_v4 = vsel %vm1386_vm7, %v1384_v8, %v1365_v2  ;;  %v1663_v2 = vld [vmem:[%s6325_s8 + $0x10] sm:$0xff] }
 0x51d   :  { %v1375_v7 = vpop.permute.xlu1 %1374 }
 0x51e   :  { %v1391_v58 = vsel %vm1390_vm8, %v1387_v0, %v1375_v7  ;;  %v4692_v0 = vpack.c.bf16 %v1664_v53, %v1663_v2  ;;  %v1665_v7 = vld [vmem:[%s6325_s8 + $0x20] sm:$0xff] }
 0x51f   :  { %4307 = vmatmul.mubr.msk.f32.vlgmr.msra.gmra.mrb[36].mxu1 %vm124_vm1, %v1391_v58  ;;  %v1666_v58 = vld [vmem:[%s6325_s8 + $0x28] sm:$0xff]  ;;  %v3800_v2 = vld [vmem:[%s6326_s9] ss:$0 sm:$0xff] }
 0x520   :  { %4309 = vmatprep.mubr.msk.f32.mxu1 %vm5049_vm0, %v5050_v6  ;;  %4690 = vmatpush3.bf16.msra.mxu1 %v4689_v48  ;;  %v4695_v8 = vpack.c.bf16 %v1666_v58, %v1665_v7 }
 0x521   :  { %v1355_v63 = vpop.permute.xlu1 %1354  ;;  %v1377_v10 = vpop.permute.xlu0 %1376  ;;  %4691 = vmatprep.subr.bf16.mxu1 %v5048_v3 }
 0x522   :  { %v1392_v9 = vsel %vm1390_vm8, %v1388_v4, %v1377_v10  ;;  %v1385_v12 = vsel %vm386_vm2, %v615_v38, %v1355_v63  ;;  %v1667_v4 = vld [vmem:[%s6325_s8 + $0x30] sm:$0xff]  ;;  %v1668_v63 = vld [vmem:[%s6325_s8 + $0x38] sm:$0xff] }
 0x523   :  { %4310 = vmatmul.mubr.msk.f32.gmra.mrb[38].mxu1 %vm124_vm1, %v1392_v9  ;;  %v4698_v10 = vpack.c.bf16 %v1668_v63, %v1667_v4  ;;  %v1669_v9 = vld [vmem:[%s6325_s8 + $0x40] sm:$0xff] }
 0x524   :  { %4312 = vmatprep.mubr.msk.f32.mxu1 %vm5049_vm0, %v5050_v6  ;;  %4693 = vmatpush3.bf16.msra.mxu1 %v4692_v0 }
 0x525   :  { %v1367_v13 = vpop.permute.xlu0 %1366  ;;  %v1379_v5 = vpop.permute.xlu1 %1378  ;;  %4694 = vmatprep.subr.bf16.mxu1 %v5048_v3 }
 0x526   :  { %v1389_v14 = vsel %vm1386_vm7, %v1385_v12, %v1367_v13  ;;  %v1670_v12 = vld [vmem:[%s6325_s8 + $0x48] sm:$0xff] }
 0x527   :  { %v1393_v16 = vsel %vm1390_vm8, %v1389_v14, %v1379_v5  ;;  %v4701_v13 = vpack.c.bf16 %v1670_v12, %v1669_v9  ;;  %v1671_v5 = vld [vmem:[%s6325_s8 + $0x50] sm:$0xff]  ;;  %v1672_v14 = vld [vmem:[%s6325_s8 + $0x58] sm:$0xff] }
 0x528   :  { %4313 = vmatmul.mubr.msk.f32.gmra.mrb[40].mxu1 %vm124_vm1, %v1393_v16  ;;  %v4704_v16 = vpack.c.bf16 %v1672_v14, %v1671_v5 }
 0x529   :  { %4364 = vmatprep.mubr.msk.f32.mxu1 %vm5049_vm0, %v5050_v6  ;;  %4696 = vmatpush3.bf16.msra.mxu1 %v4695_v8 }
 0x52a   :  { %4697 = vmatprep.subr.bf16.mxu1 %v5048_v3 }
 0x52d   :  { %4699 = vmatpush3.bf16.msra.mxu1 %v4698_v10 }
 0x52e   :  { %4700 = vmatprep.subr.bf16.mxu1 %v5048_v3 }
 0x531   :  { %4702 = vmatpush3.bf16.msra.mxu1 %v4701_v13 }
 0x532   :  { %4703 = vmatprep.subr.bf16.mxu1 %v5048_v3 }
 0x535   :  { %4705 = vmatpush3.bf16.msra.mxu1 %v4704_v16 }
 0x536   :  { %4706 = vmatprep.subr.bf16.mxu1 %v5048_v3 }
 0x5f2   :  { %v1480_v11 = vpop.f32.mrb[36].mxu1 }
 0x5f3   :  { %v1481_v21 = vadd.f32 %v3790_v19, %v1480_v11  ;;  %v4308_v17 = vpop.f32.mrb[37].mxu1  ;;  %v1674_v11 = vld [vmem:[%s6325_s8 + $0x68] sm:$0xff] }
 0x5f5   :  { %v1496_v27 = vadd.f32 %v5006_v22, %v1481_v21 }
 0x5f6   :  { %v1485_v28 = vpop.f32.mrb[38].mxu1 }
 0x5f7   :  { %v1486_v29 = vadd.f32 %v3790_v19, %v1485_v28  ;;  %v4311_v31 = vpop.f32.mrb[39].mxu1  ;;  %v1499_v23 = vsel %vm124_vm1, %v1496_v27, 0.0 }
 0x5f8   :  { %1500 = vadd.xlane.f32.xlu0 %v1499_v23 }
 0x5f9   :  { %v1497_v34 = vadd.f32 %v5007_v33, %v1486_v29 }
 0x5fb   :  { %v1490_v35 = vpop.f32.mrb[40].mxu1  ;;  %v1502_v37 = vsel %vm124_vm1, %v1497_v34, 0.0 }
 0x5fc   :  { %v1491_v38 = vadd.f32 %v3790_v19, %v1490_v35  ;;  %1503 = vadd.xlane.f32.xlu1 %v1502_v37  ;;  %v4314_v39 = vpop.f32.mrb[41].mxu1  ;;  %v1673_v19 = vld [vmem:[%s6325_s8 + $0x60] sm:$0xff] }
 0x5fd   :  { %v4707_v21 = vpack.c.bf16 %v1674_v11, %v1673_v19  ;;  %v3794_v37 = vld [vmem:[%s6322_s5] ss:$0 sm:$0xff]  ;;  %v3795_v39 = vld [vmem:[%s6322_s5 + $0x1] ss:$0 sm:$0xff] }
 0x5fe   :  { %v1498_v42 = vadd.f32 %v5008_v36, %v1491_v38 }
 0x5ff   :  { %4708 = vmatpush3.bf16.msra.mxu1 %v4707_v21 }
 0x600   :  { %v1506_v18 = vsel %vm1505_vm9, %v1498_v42, 0.0  ;;  %4709 = vmatprep.subr.bf16.mxu1 %v5048_v3 }
 0x601   :  { %1507 = vadd.xlane.f32.xlu0 %v1506_v18 }
 0x685   :  { %v1501_v30 = vpop.xlane.xlu0 %1500 }
 0x686   :  { %v1510_v25 = vmul.f32 0.03125, %v1501_v30 }
 0x688   :  { %v5595_v46 = vsub.f32 %v1496_v27, %v1510_v25 }
 0x689   :  { %v1504_v47 = vpop.xlane.xlu1 %1503 }
 0x68a   :  { %v1511_v50 = vmul.f32 0.03125, %v1504_v47  ;;  %v1516_v40 = vmul.f32 %v5595_v46, %v5595_v46 }
 0x68c   :  { %v5599_v44 = vsub.f32 %v1497_v34, %v1511_v50  ;;  %v1519_v51 = vsel %vm124_vm1, %v1516_v40, 0.0 }
 0x68d   :  { %1520 = vadd.xlane.f32.xlu0 %v1519_v51 }
 0x68e   :  { %v1508_v52 = vpop.xlane.xlu0 %1507  ;;  %v1517_v54 = vmul.f32 %v5599_v44, %v5599_v44 }
 0x68f   :  { %v1512_v55 = vmul.f32 0.03125, %v1508_v52  ;;  %v1676_v52 = vld [vmem:[%s6325_s8 + $0x78] sm:$0xff] }
 0x690   :  { %v1522_v56 = vsel %vm124_vm1, %v1517_v54, 0.0 }
 0x691   :  { %v5605_v57 = vsub.f32 %v1498_v42, %v1512_v55  ;;  %1523 = vadd.xlane.f32.xlu1 %v1522_v56  ;;  %v3796_v55 = vld [vmem:[%s6324_s7] ss:$0 sm:$0xff] }
 0x693   :  { %v1518_v41 = vmul.f32 %v5605_v57, %v5605_v57 }
 0x695   :  { %v1525_v43 = vsel %vm1505_vm9, %v1518_v41, 0.0 }
 0x696   :  { %1526 = vadd.xlane.f32.xlu0 %v1525_v43 }
 0x71a   :  { %v1521_v17 = vpop.xlane.xlu0 %1520 }
 0x71b   :  { %v1528_v22 = vmul.f32 0.03125, %v1521_v17 }
 0x71d   :  { %v1531_v27 = vadd.f32 1e-05, %v1528_v22 }
 0x71e   :  { %v1524_v28 = vpop.xlane.xlu1 %1523 }
 0x71f   :  { %4932 = vrsqrt.f32 %v1531_v27  ;;  %v1529_v29 = vmul.f32 0.03125, %v1524_v28 }
 0x721   :  { %v1532_v31 = vadd.f32 1e-05, %v1529_v29 }
 0x723   :  { %4934 = vrsqrt.f32 %v1532_v31  ;;  %v1527_v23 = vpop.xlane.xlu0 %1526 }
 0x724   :  { %v1530_v33 = vmul.f32 0.03125, %v1527_v23 }
 0x726   :  { %v1533_v34 = vadd.f32 1e-05, %v1530_v33 }
 0x728   :  { %4936 = vrsqrt.f32 %v1533_v34 }
 0x729   :  { %v4933_v35 = vpop.eup %4932 }
 0x72a   :  { %v1537_v38 = vmul.f32 %v4933_v35, %v5595_v46 }
 0x72c   :  { %v1546_v36 = vmul.f32 %v3794_v37, %v1537_v38 }
 0x72d   :  { %v4935_v42 = vpop.eup %4934 }
 0x72e   :  { %v1555_v18 = vadd.f32 %v3795_v39, %v1546_v36  ;;  %v1538_v30 = vmul.f32 %v4935_v42, %v5599_v44  ;;  %v1675_v44 = vld [vmem:[%s6325_s8 + $0x70] sm:$0xff]  ;;  %v3804_v36 = vld [vmem:[%s6318_s1 + $0x68] sm:$0xff]  ;;  %v3811_v42 = vld [vmem:[%s6318_s1 + $0xa0] sm:$0xff] }
 0x72f   :  { %v4710_v54 = vpack.c.bf16 %v1676_v52, %v1675_v44 }
 0x730   :  { %4324 = vmatmul.mubr.msk.f32.vlgmr.msra.gmra.mrb[30].mxu0 %vm124_vm1, %v1555_v18  ;;  %v1547_v25 = vmul.f32 %v3794_v37, %v1538_v30  ;;  %v3812_v30 = vld [vmem:[%s6318_s1 + $0xa8] sm:$0xff] }
 0x731   :  { %4326 = vmatprep.mubr.msk.f32.mxu0 %vm5049_vm0, %v5050_v6  ;;  %4711 = vmatpush3.bf16.msra.mxu1 %v4710_v54 }
 0x732   :  { %v4937_v47 = vpop.eup %4936  ;;  %v1556_v50 = vadd.f32 %v3795_v39, %v1547_v25  ;;  %4724 = vmatprep.subr.bf16.mxu1 %v5048_v3  ;;  %v4725_v25 = vpack.c.bf16 %v3812_v30, %v3811_v42 }
 0x733   :  { %v1539_v40 = vmul.f32 %v4937_v47, %v5605_v57  ;;  %v3805_v47 = vld [vmem:[%s6318_s1 + $0x70] sm:$0xff] }
 0x734   :  { %4327 = vmatmul.mubr.msk.f32.gmra.mrb[32].mxu0 %vm124_vm1, %v1556_v50 }
 0x735   :  { %4329 = vmatprep.mubr.msk.f32.mxu0 %vm5049_vm0, %v5050_v6  ;;  %v1548_v46 = vmul.f32 %v3794_v37, %v1539_v40  ;;  %v3813_v40 = vld [vmem:[%s6318_s1 + $0xb0] sm:$0xff] }
 0x737   :  { %v1557_v51 = vadd.f32 %v3795_v39, %v1548_v46  ;;  %v3803_v39 = vld [vmem:[%s6318_s1 + $0x60] sm:$0xff] }
 0x739   :  { %4330 = vmatmul.mubr.msk.f32.gmra.mrb[34].mxu0 %vm124_vm1, %v1557_v51 }
 0x73a   :  { %4381 = vmatprep.mubr.msk.f32.mxu0 %vm5049_vm0, %v5050_v6 }
 0x803   :  { %v1644_v56 = vpop.f32.mrb[30].mxu0 }
 0x804   :  { %v1645_v57 = vadd.f32 %v3796_v55, %v1644_v56  ;;  %v4325_v41 = vpop.f32.mrb[31].mxu0 }
 0x806   :  { %v1658_v43 = vmax.f32 %v1645_v57, 0.0 }
 0x807   :  { %v1649_v59 = vpop.f32.mrb[32].mxu0 }
 0x808   :  { %v1650_v24 = vadd.f32 %v3796_v55, %v1649_v59  ;;  %v4328_v49 = vpop.f32.mrb[33].mxu0  ;;  %4365 = vmatmul.mubr.f32.vlgmr.msra.gmra.mrb[42].mxu1 %v1658_v43 }
 0x809   :  { %4367 = vmatprep.mubr.msk.f32.mxu1 %vm5049_vm0, %v5050_v6  ;;  %4726 = vmatpush3.bf16.msra.mxu1 %v4725_v25 }
 0x80a   :  { %v1659_v60 = vmax.f32 %v1650_v24, 0.0  ;;  %4727 = vmatprep.subr.bf16.mxu1 %v5048_v3 }
 0x80c   :  { %v1654_v61 = vpop.f32.mrb[34].mxu0  ;;  %4368 = vmatmul.mubr.f32.gmra.mrb[44].mxu1 %v1659_v60  ;;  %v3801_v60 = vld [vmem:[%s6327_s10] ss:$0 sm:$0xff] }
 0x80d   :  { %v1655_v62 = vadd.f32 %v3796_v55, %v1654_v61  ;;  %v4331_v1 = vpop.f32.mrb[35].mxu0  ;;  %4370 = vmatprep.mubr.msk.f32.mxu1 %vm5049_vm0, %v5050_v6 }
 0x80e   :  { %v3807_v1 = vld [vmem:[%s6318_s1 + $0x80] sm:$0xff] }
 0x80f   :  { %v1660_v45 = vmax.f32 %v1655_v62, 0.0  ;;  %v3802_v62 = vld [vmem:[%s6327_s10 + $0x1] ss:$0 sm:$0xff] }
 0x811   :  { %4371 = vmatmul.mubr.f32.gmra.mrb[46].mxu1 %v1660_v45  ;;  %v3808_v45 = vld [vmem:[%s6318_s1 + $0x88] sm:$0xff] }
 0x812   :  { %4415 = vmatprep.mubr.msk.f32.mxu1 %vm5049_vm0, %v5050_v6 }
 0x8db   :  { %v1750_v48 = vpop.f32.mrb[42].mxu1 }
 0x8dc   :  { %v1751_v53 = vadd.f32 %v3800_v2, %v1750_v48  ;;  %v4366_v0 = vpop.f32.mrb[43].mxu1 }
 0x8de   :  { %v1766_v7 = vadd.f32 %v1751_v53, %v1555_v18  ;;  %v4713_v18 = vpack.c.bf16 %v3804_v36, %v3803_v39 }
 0x8df   :  { %v1755_v58 = vpop.f32.mrb[44].mxu1 }
 0x8e0   :  { %v1756_v8 = vadd.f32 %v3800_v2, %v1755_v58  ;;  %v4369_v4 = vpop.f32.mrb[45].mxu1  ;;  %v1769_v63 = vsel %vm124_vm1, %v1766_v7, 0.0  ;;  %4714 = vmatpush3.bf16.msra.mxu0 %v4713_v18  ;;  %v3809_v58 = vld [vmem:[%s6318_s1 + $0x90] sm:$0xff]  ;;  %v3822_v18 = vld [vmem:[%s6319_s2 + $0x4] ss:$0 sm:$0xff] }
 0x8e1   :  { %1770 = vadd.xlane.f32.xlu1 %v1769_v63  ;;  %4715 = vmatprep.subr.bf16.mxu0 %v5048_v3 }
 0x8e2   :  { %v1767_v10 = vadd.f32 %v1756_v8, %v1556_v50  ;;  %v3806_v50 = vld [vmem:[%s6318_s1 + $0x78] sm:$0xff] }
 0x8e3   :  { %v4716_v46 = vpack.c.bf16 %v3806_v50, %v3805_v47  ;;  %v3810_v8 = vld [vmem:[%s6318_s1 + $0x98] sm:$0xff] }
 0x8e4   :  { %v1760_v9 = vpop.f32.mrb[46].mxu1  ;;  %v1772_v12 = vsel %vm124_vm1, %v1767_v10, 0.0 }
 0x8e5   :  { %v1761_v13 = vadd.f32 %v3800_v2, %v1760_v9  ;;  %1773 = vadd.xlane.f32.xlu0 %v1772_v12  ;;  %v4372_v5 = vpop.f32.mrb[47].mxu1  ;;  %4717 = vmatpush3.bf16.msra.mxu0 %v4716_v46  ;;  %v4722_v9 = vpack.c.bf16 %v3810_v8, %v3809_v58 }
 0x8e6   :  { %4718 = vmatprep.subr.bf16.mxu0 %v5048_v3 }
 0x8e7   :  { %v1768_v14 = vadd.f32 %v1761_v13, %v1557_v51  ;;  %v3814_v51 = vld [vmem:[%s6318_s1 + $0xb8] sm:$0xff] }
 0x8e8   :  { %v4728_v44 = vpack.c.bf16 %v3814_v51, %v3813_v40 }
 0x8e9   :  { %v1775_v16 = vsel %vm1505_vm9, %v1768_v14, 0.0 }
 0x8ea   :  { %1776 = vadd.xlane.f32.xlu1 %v1775_v16  ;;  %4729 = vmatpush3.bf16.msra.mxu1 %v4728_v44 }
 0x8eb   :  { %4734 = vmatprep.subr.bf16.mxu1 %v5048_v3 }
 0x96e   :  { %v1771_v19 = vpop.xlane.xlu1 %1770 }
 0x96f   :  { %v1778_v11 = vmul.f32 0.03125, %v1771_v19 }
 0x971   :  { %v1781_v21 = vsub.f32 %v1766_v7, %v1778_v11  ;;  %v4719_v7 = vpack.c.bf16 %v3808_v45, %v3807_v1 }
 0x972   :  { %v1774_v17 = vpop.xlane.xlu0 %1773 }
 0x973   :  { %v1779_v22 = vmul.f32 0.03125, %v1774_v17  ;;  %v1784_v27 = vmul.f32 %v1781_v21, %v1781_v21 }
 0x975   :  { %v1782_v28 = vsub.f32 %v1767_v10, %v1779_v22  ;;  %v1787_v29 = vsel %vm124_vm1, %v1784_v27, 0.0 }
 0x976   :  { %1788 = vadd.xlane.f32.xlu0 %v1787_v29 }
 0x977   :  { %v1777_v31 = vpop.xlane.xlu1 %1776  ;;  %v1785_v23 = vmul.f32 %v1782_v28, %v1782_v28 }
 0x978   :  { %v1780_v33 = vmul.f32 0.03125, %v1777_v31 }
 0x979   :  { %v1790_v34 = vsel %vm124_vm1, %v1785_v23, 0.0 }
 0x97a   :  { %v1783_v35 = vsub.f32 %v1768_v14, %v1780_v33  ;;  %1791 = vadd.xlane.f32.xlu1 %v1790_v34 }
 0x97c   :  { %v1786_v37 = vmul.f32 %v1783_v35, %v1783_v35 }
 0x97e   :  { %v1793_v38 = vsel %vm1505_vm9, %v1786_v37, 0.0 }
 0x97f   :  { %1794 = vadd.xlane.f32.xlu0 %v1793_v38 }
 0xa03   :  { %v1789_v52 = vpop.xlane.xlu0 %1788 }
 0xa04   :  { %v1796_v54 = vmul.f32 0.03125, %v1789_v52 }
 0xa06   :  { %v1799_v55 = vadd.f32 1e-05, %v1796_v54  ;;  %v3818_v54 = vld [vmem:[%s6319_s2 + $0x3] ss:$0 sm:$0xff] }
 0xa07   :  { %v1792_v56 = vpop.xlane.xlu1 %1791 }
 0xa08   :  { %4938 = vrsqrt.f32 %v1799_v55  ;;  %v1797_v57 = vmul.f32 0.03125, %v1792_v56 }
 0xa0a   :  { %v1800_v41 = vadd.f32 1e-05, %v1797_v57 }
 0xa0c   :  { %4940 = vrsqrt.f32 %v1800_v41  ;;  %v1795_v43 = vpop.xlane.xlu0 %1794 }
 0xa0d   :  { %v1798_v59 = vmul.f32 0.03125, %v1795_v43 }
 0xa0f   :  { %v1801_v24 = vadd.f32 1e-05, %v1798_v59 }
 0xa11   :  { %4942 = vrsqrt.f32 %v1801_v24 }
 0xa12   :  { %v4939_v49 = vpop.eup %4938 }
 0xa13   :  { %v1805_v61 = vmul.f32 %v4939_v49, %v1781_v21  ;;  %v3826_v21 = vld [vmem:[%s6319_s2 + $0x5] ss:$0 sm:$0xff] }
 0xa15   :  { %v1814_v2 = vmul.f32 %v3801_v60, %v1805_v61 }
 0xa16   :  { %v4941_v48 = vpop.eup %4940 }
 0xa17   :  { %v5756_v53 = vadd.f32 %v3802_v62, %v1814_v2  ;;  %v1806_v0 = vmul.f32 %v4941_v48, %v1782_v28 }
 0xa19   :  { %4382 = vmatmul.mubr.msk.f32.vlgmr.msra.gmra.mrb[36].mxu0 %vm124_vm1, %v5756_v53  ;;  %4416 = vmatmul.mubr.msk.f32.vlgmr.msra.gmra.mrb[48].mxu1 %vm124_vm1, %v5756_v53  ;;  %v1815_v4 = vmul.f32 %v3801_v60, %v1806_v0 }
 0xa1a   :  { %4384 = vmatprep.mubr.msk.f32.mxu0 %vm5049_vm0, %v5050_v6  ;;  %4418 = vmatprep.mubr.msk.f32.mxu1 %vm5049_vm0, %v5050_v6 }
 0xa1b   :  { %v4943_v63 = vpop.eup %4942  ;;  %v5772_v10 = vadd.f32 %v3802_v62, %v1815_v4  ;;  %4720 = vmatpush3.bf16.msra.mxu0 %v4719_v7 }
 0xa1c   :  { %v1807_v12 = vmul.f32 %v4943_v63, %v1783_v35  ;;  %4721 = vmatprep.subr.bf16.mxu0 %v5048_v3 }
 0xa1d   :  { %4385 = vmatmul.mubr.msk.f32.gmra.mrb[38].mxu0 %vm124_vm1, %v5772_v10  ;;  %4419 = vmatmul.mubr.msk.f32.gmra.mrb[50].mxu1 %vm124_vm1, %v5772_v10 }
 0xa1e   :  { %4387 = vmatprep.mubr.msk.f32.mxu0 %vm5049_vm0, %v5050_v6  ;;  %4421 = vmatprep.mubr.msk.f32.mxu1 %vm5049_vm0, %v5050_v6  ;;  %v1816_v13 = vmul.f32 %v3801_v60, %v1807_v12 }
 0xa1f   :  { %4723 = vmatpush3.bf16.msra.mxu0 %v4722_v9 }
 0xa20   :  { %v5783_v5 = vadd.f32 %v3802_v62, %v1816_v13  ;;  %4730 = vmatprep.subr.bf16.mxu0 %v5048_v3 }
 0xa22   :  { %4388 = vmatmul.mubr.msk.f32.gmra.mrb[40].mxu0 %vm124_vm1, %v5783_v5  ;;  %4422 = vmatmul.mubr.msk.f32.gmra.mrb[52].mxu1 %vm124_vm1, %v5783_v5 }
 0xa23   :  { %4398 = vmatprep.mubr.msk.f32.mxu0 %vm5049_vm0, %v5050_v6  ;;  %4445 = vmatprep.mubr.msk.f32.mxu1 %vm5049_vm0, %v5050_v6 }
 0xa26   :  { %4399 = vmatmul.mubr.msk.f32.vlgmr.msra.gmra.mrb[42].mxu0 %vm124_vm1, %v5756_v53 }
 0xa27   :  { %4401 = vmatprep.mubr.msk.f32.mxu0 %vm5049_vm0, %v5050_v6 }
 0xa2a   :  { %4402 = vmatmul.mubr.msk.f32.gmra.mrb[44].mxu0 %vm124_vm1, %v5772_v10 }
 0xa2b   :  { %4404 = vmatprep.mubr.msk.f32.mxu0 %vm5049_vm0, %v5050_v6 }
 0xa2e   :  { %4405 = vmatmul.mubr.msk.f32.gmra.mrb[46].mxu0 %vm124_vm1, %v5783_v5 }
 0xa2f   :  { %4430 = vmatprep.mubr.msk.f32.mxu0 %vm5049_vm0, %v5050_v6 }
 0xaec   :  { %v1924_v14 = vpop.f32.mrb[36].mxu0  ;;  %v2096_v16 = vpop.f32.mrb[48].mxu1 }
 0xaed   :  { %v4383_v19 = vpop.f32.mrb[37].mxu0  ;;  %v4417_v11 = vpop.f32.mrb[49].mxu1  ;;  %v2097_v27 = vadd.f32 %v3826_v21, %v2096_v16  ;;  %v1925_v56 = vadd.f32 %v3818_v54, %v1924_v14 }
 0xaf0   :  { %v1929_v17 = vpop.f32.mrb[38].mxu0  ;;  %v2101_v22 = vpop.f32.mrb[50].mxu1 }
 0xaf1   :  { %v2102_v28 = vadd.f32 %v3826_v21, %v2101_v22  ;;  %v4386_v29 = vpop.f32.mrb[39].mxu0  ;;  %v4420_v31 = vpop.f32.mrb[51].mxu1  ;;  %v1930_v55 = vadd.f32 %v3818_v54, %v1929_v17 }
 0xaf3   :  { %v4735_v23 = vpack.c.bf16 %v2102_v28, %v2097_v27  ;;  %v5809_v33 = vpack.i.bf16 %v2102_v28, %v2097_v27 }
 0xaf5   :  { %v1934_v34 = vpop.f32.mrb[40].mxu0  ;;  %v2106_v35 = vpop.f32.mrb[52].mxu1  ;;  %4736 = vmatpush3.bf16.msra.mxu1 %v4735_v23 }
 0xaf6   :  { %v5811_v37 = vadd.f32 %v3826_v21, %v2106_v35  ;;  %v4389_v38 = vpop.f32.mrb[41].mxu0  ;;  %v4423_v39 = vpop.f32.mrb[53].mxu1  ;;  %4443 = vmatprep.subr.mxu1 %v5050_v6  ;;  %v1935_v57 = vadd.f32 %v3818_v54, %v1934_v34 }
 0xaf9   :  { %v2010_v36 = vpop.f32.mrb[42].mxu0  ;;  %4444 = vmatpush3.msk.msra.mxu1 %vm535_vm6, %v5811_v37 }
 0xafa   :  { %v4400_v42 = vpop.f32.mrb[43].mxu0  ;;  %4741 = vmatprep.subr.bf16.mxu1 %v5048_v3  ;;  %v2011_v25 = vadd.f32 %v3822_v18, %v2010_v36 }
 0xafd   :  { %v2015_v30 = vpop.f32.mrb[44].mxu0 }
 0xafe   :  { %v2016_v47 = vadd.f32 %v3822_v18, %v2015_v30  ;;  %v4403_v50 = vpop.f32.mrb[45].mxu0 }
 0xb00   :  { %v4731_v40 = vpack.c.bf16 %v2016_v47, %v2011_v25  ;;  %v4852_v46 = vpack.i.bf16 %v2016_v47, %v2011_v25 }
 0xb01   :  { %v2020_v51 = vpop.f32.mrb[46].mxu0 }
 0xb02   :  { %v2021_v44 = vadd.f32 %v3822_v18, %v2020_v51  ;;  %4853 = vrot.lane.b32.xlu1 %v4852_v46, %s5052_s19  ;;  %v4406_v52 = vpop.f32.mrb[47].mxu0  ;;  %4733 = vmatpush3.bf16.xpose.msk.msra.mxu0 %vm5225_vm3, %v4731_v40 }
 0xb03   :  { %4428 = vmatprep.subr.mxu0 %v5050_v6 }
 0xb04   :  { %2349 = vrot.lane.b32.xlu0 %v2021_v44, %s5052_s19 }
 0xb06   :  { %4858 = vrot.lane.b32.xlu1 %v4852_v46, %s5051_s18 }
 0xb08   :  { %2341 = vrot.lane.b32.xlu0 %v1930_v55, %s5052_s19 }
 0xb0a   :  { %2339 = vrot.lane.b32.xlu1 %v1925_v56, %s5052_s19  ;;  %4429 = vmatpush3.xpose.msk.msra.mxu0 %vm386_vm2, %v2021_v44 }
 0xb0b   :  { %4737 = vmatprep.subr.bf16.mxu0 %v5048_v3 }
 0xb0c   :  { %2593 = vrot.lane.b32.xlu0 %v2021_v44, %s5051_s18 }
 0xb0d   :  { %4431 = vmatmul.mubr.msk.f32.vlgmr.msra.gmra.mrb[48].mxu0 %vm386_vm2, %v1925_v56 }
 0xb0e   :  { %2343 = vrot.lane.b32.xlu1 %v1935_v57, %s5052_s19  ;;  %4433 = vmatprep.mubr.msk.f32.mxu0 %vm5049_vm0, %v5050_v6 }
 0xb10   :  { %2583 = vrot.lane.b32.xlu0 %v1925_v56, %s5051_s18 }
 0xb11   :  { %4434 = vmatmul.mubr.msk.f32.gmra.mrb[50].mxu0 %vm386_vm2, %v1930_v55 }
 0xb12   :  { %4863 = vrot.lane.b32.xlu1 %v4852_v46, %s5053_s21  ;;  %4436 = vmatprep.mubr.msk.f32.mxu0 %vm5049_vm0, %v5050_v6 }
 0xb14   :  { %2587 = vrot.lane.b32.xlu0 %v1935_v57, %s5051_s18 }
 0xb15   :  { %4437 = vmatmul.mubr.msk.f32.gmra.mrb[52].mxu0 %vm386_vm2, %v1935_v57 }
 0xb16   :  { %2585 = vrot.lane.b32.xlu1 %v1930_v55, %s5051_s18  ;;  %4460 = vmatprep.mubr.msk.f32.mxu0 %vm5049_vm0, %v5050_v6 }
 0xb18   :  { %2825 = vrot.lane.b32.xlu0 %v1925_v56, %s5053_s21 }
 0xb1a   :  { %2835 = vrot.lane.b32.xlu1 %v2021_v44, %s5053_s21 }
 0xb1c   :  { %2829 = vrot.lane.b32.xlu0 %v1935_v57, %s5053_s21 }
 0xb1e   :  { %2827 = vrot.lane.b32.xlu1 %v1930_v55, %s5053_s21 }
 0xb74   :  { %v4854_v41 = vpop.permute.xlu1 %4853 }
 0xb75   :  { %v4856_v43 = vunpack.i.h.bf16 %v4854_v41  ;;  %v4855_v59 = vunpack.i.l.bf16 %v4854_v41 }
 0xb76   :  { %v2350_v61 = vpop.permute.xlu0 %2349 }
 0xb77   :  { %v4738_v24 = vpack.c.bf16 %v4856_v43, %v4855_v59 }
 0xb78   :  { %v4859_v49 = vpop.permute.xlu1 %4858 }
 0xb79   :  { %4740 = vmatpush3.bf16.xpose.msk.msra.mxu0 %vm5225_vm3, %v4738_v24  ;;  %v4861_v62 = vunpack.i.h.bf16 %v4859_v49  ;;  %v4860_v1 = vunpack.i.l.bf16 %v4859_v49 }
 0xb7a   :  { %4458 = vmatprep.subr.mxu0 %v5050_v6  ;;  %v2342_v48 = vpop.permute.xlu0 %2341 }
 0xb7b   :  { %v4745_v2 = vpack.c.bf16 %v4861_v62, %v4860_v1 }
 0xb7c   :  { %v2340_v60 = vpop.permute.xlu1 %2339 }
 0xb7e   :  { %v2594_v7 = vpop.permute.xlu0 %2593 }
 0xb80   :  { %v2344_v45 = vpop.permute.xlu1 %2343 }
 0xb81   :  { %4459 = vmatpush3.xpose.msk.msra.mxu0 %vm386_vm2, %v2350_v61 }
 0xb82   :  { %4744 = vmatprep.subr.bf16.mxu0 %v5048_v3  ;;  %v2584_v4 = vpop.permute.xlu0 %2583 }
 0xb84   :  { %4461 = vmatmul.mubr.msk.f32.vlgmr.msra.gmra.mrb[54].mxu0 %vm386_vm2, %v2340_v60  ;;  %v4864_v0 = vpop.permute.xlu1 %4863 }
 0xb85   :  { %4747 = vmatpush3.bf16.xpose.msk.msra.mxu0 %vm5225_vm3, %v4745_v2  ;;  %4463 = vmatprep.mubr.msk.f32.mxu0 %vm5049_vm0, %v5050_v6  ;;  %v4866_v58 = vunpack.i.h.bf16 %v4864_v0  ;;  %v4865_v8 = vunpack.i.l.bf16 %v4864_v0 }
 0xb86   :  { %4488 = vmatprep.subr.mxu0 %v5050_v6  ;;  %v2588_v12 = vpop.permute.xlu0 %2587 }
 0xb87   :  { %v4752_v63 = vpack.c.bf16 %v4866_v58, %v4865_v8 }
 0xb88   :  { %4464 = vmatmul.mubr.msk.f32.gmra.mrb[56].mxu0 %vm386_vm2, %v2342_v48  ;;  %v2586_v9 = vpop.permute.xlu1 %2585 }
 0xb89   :  { %4466 = vmatprep.mubr.msk.f32.mxu0 %vm5049_vm0, %v5050_v6 }
 0xb8a   :  { %v2826_v32 = vpop.permute.xlu0 %2825 }
 0xb8c   :  { %4467 = vmatmul.mubr.msk.f32.gmra.mrb[58].mxu0 %vm386_vm2, %v2344_v45  ;;  %v2836_v13 = vpop.permute.xlu1 %2835 }
 0xb8d   :  { %4489 = vmatpush3.xpose.msk.msra.mxu0 %vm386_vm2, %v2594_v7  ;;  %4490 = vmatprep.mubr.msk.f32.mxu0 %vm5049_vm0, %v5050_v6 }
 0xb8e   :  { %4751 = vmatprep.subr.bf16.mxu0 %v5048_v3  ;;  %v2830_v16 = vpop.permute.xlu0 %2829 }
 0xb90   :  { %4491 = vmatmul.mubr.msk.f32.vlgmr.msra.gmra.mrb[60].mxu0 %vm386_vm2, %v2584_v4  ;;  %v2828_v14 = vpop.permute.xlu1 %2827 }
 0xb91   :  { %4754 = vmatpush3.bf16.xpose.msk.msra.mxu0 %vm5225_vm3, %v4752_v63  ;;  %4493 = vmatprep.mubr.msk.f32.mxu0 %vm5049_vm0, %v5050_v6  ;;  %vm3690_vm3 = vcmask 7168  }
 0xb92   :  { %4518 = vmatprep.subr.mxu0 %v5050_v6 }
 0xb94   :  { %4494 = vmatmul.mubr.msk.f32.gmra.mrb[62].mxu0 %vm386_vm2, %v2586_v9 }
 0xb95   :  { %4496 = vmatprep.mubr.msk.f32.mxu0 %vm5049_vm0, %v5050_v6 }
 0xb98   :  { %4497 = vmatmul.mubr.msk.f32.gmra.mrb[64].mxu0 %vm386_vm2, %v2588_v12 }
 0xb99   :  { %4519 = vmatpush3.xpose.msk.msra.mxu0 %vm386_vm2, %v2836_v13  ;;  %4520 = vmatprep.mubr.msk.f32.mxu0 %vm5049_vm0, %v5050_v6 }
 0xb9a   :  { %4758 = vmatprep.subr.bf16.mxu0 %v5048_v3 }
 0xb9c   :  { %4521 = vmatmul.mubr.msk.f32.vlgmr.msra.gmra.mrb[66].mxu0 %vm386_vm2, %v2826_v32 }
 0xb9d   :  { %4523 = vmatprep.mubr.msk.f32.mxu0 %vm5049_vm0, %v5050_v6 }
 0xba0   :  { %4524 = vmatmul.mubr.msk.f32.gmra.mrb[68].mxu0 %vm386_vm2, %v2828_v14 }
 0xba1   :  { %4526 = vmatprep.mubr.msk.f32.mxu0 %vm5049_vm0, %v5050_v6 }
 0xba4   :  { %4527 = vmatmul.mubr.msk.f32.gmra.mrb[70].mxu0 %vm386_vm2, %v2830_v16 }
 0xba5   :  { %4552 = vmatprep.mubr.msk.f32.mxu0 %vm5049_vm0, %v5050_v6 }
 0xbe0   :  { %v2194_v19 = vpop.f32.mrb[48].mxu0 }
 0xbe1   :  { %v2208_v11 = vmul.f32 0.35355338, %v2194_v19  ;;  %v4432_v21 = vpop.f32.mrb[49].mxu0 }
 0xbe3   :  { %v5895_v17 = vadd.f32 %v2208_v11, %v5331_v15 }
 0xbe4   :  { %v2199_v22 = vpop.f32.mrb[50].mxu0 }
 0xbe5   :  { %v2209_v27 = vmul.f32 0.35355338, %v2199_v22  ;;  %v4435_v28 = vpop.f32.mrb[51].mxu0  ;;  %v2214_v29 = vsel %vm491_vm14, %v5895_v17, -inf }
 0xbe6   :  { %2215 = vmax.xlane.f32.xlu1 %v2214_v29 }
 0xbe7   :  { %v5900_v31 = vadd.f32 %v2209_v27, %v5337_v20 }
 0xbe8   :  { %v2204_v23 = vpop.f32.mrb[52].mxu0 }
 0xbe9   :  { %v2210_v34 = vmul.f32 0.35355338, %v2204_v23  ;;  %v4438_v35 = vpop.f32.mrb[53].mxu0  ;;  %v2217_v38 = vsel %vm491_vm14, %v5900_v31, -inf }
 0xbea   :  { %2218 = vmax.xlane.f32.xlu0 %v2217_v38 }
 0xbeb   :  { %v2213_v39 = vadd.f32 %v2210_v34, %v5345_v26 }
 0xbed   :  { %v2220_v36 = vsel %vm498_vm5, %v2213_v39, -inf }
 0xbee   :  { %2221 = vmax.xlane.f32.xlu0 %v2220_v36 }
 0xc57   :  { %v2429_v42 = vpop.f32.mrb[54].mxu0 }
 0xc58   :  { %v2443_v18 = vmul.f32 0.35355338, %v2429_v42  ;;  %v4462_v30 = vpop.f32.mrb[55].mxu0 }
 0xc5a   :  { %v5907_v25 = vadd.f32 %v2443_v18, %v5331_v15 }
 0xc5b   :  { %v2434_v47 = vpop.f32.mrb[56].mxu0 }
 0xc5c   :  { %v2444_v50 = vmul.f32 0.35355338, %v2434_v47  ;;  %v4465_v40 = vpop.f32.mrb[57].mxu0  ;;  %v2449_v46 = vsel %vm491_vm14, %v5907_v25, -inf }
 0xc5d   :  { %2450 = vmax.xlane.f32.xlu1 %v2449_v46 }
 0xc5e   :  { %v5912_v51 = vadd.f32 %v2444_v50, %v5337_v20 }
 0xc5f   :  { %v2439_v44 = vpop.f32.mrb[58].mxu0 }
 0xc60   :  { %v2445_v52 = vmul.f32 0.35355338, %v2439_v44  ;;  %v4468_v54 = vpop.f32.mrb[59].mxu0  ;;  %v2452_v55 = vsel %vm491_vm14, %v5912_v51, -inf }
 0xc61   :  { %2453 = vmax.xlane.f32.xlu0 %v2452_v55 }
 0xc62   :  { %v5917_v56 = vadd.f32 %v2445_v52, %v5345_v26 }
 0xc63   :  { %v2673_v57 = vpop.f32.mrb[60].mxu0 }
 0xc64   :  { %v2687_v41 = vmul.f32 0.35355338, %v2673_v57  ;;  %v4492_v43 = vpop.f32.mrb[61].mxu0  ;;  %v2455_v59 = vsel %vm498_vm5, %v5917_v56, -inf }
 0xc65   :  { %2456 = vmax.xlane.f32.xlu1 %v2455_v59 }
 0xc66   :  { %v5922_v24 = vadd.f32 %v2687_v41, %v5331_v15 }
 0xc67   :  { %v2678_v49 = vpop.f32.mrb[62].mxu0 }
 0xc68   :  { %v2688_v60 = vmul.f32 0.35355338, %v2678_v49  ;;  %v4495_v61 = vpop.f32.mrb[63].mxu0  ;;  %v2693_v62 = vsel %vm491_vm14, %v5922_v24, -inf }
 0xc69   :  { %2694 = vmax.xlane.f32.xlu0 %v2693_v62 }
 0xc6a   :  { %v5927_v1 = vadd.f32 %v2688_v60, %v5337_v20 }
 0xc6b   :  { %v2683_v45 = vpop.f32.mrb[64].mxu0 }
 0xc6c   :  { %v2689_v2 = vmul.f32 0.35355338, %v2683_v45  ;;  %v4498_v48 = vpop.f32.mrb[65].mxu0  ;;  %v2696_v0 = vsel %vm491_vm14, %v5927_v1, -inf }
 0xc6d   :  { %2697 = vmax.xlane.f32.xlu1 %v2696_v0 }
 0xc6e   :  { %v5932_v7 = vadd.f32 %v2689_v2, %v5345_v26 }
 0xc6f   :  { %v2915_v58 = vpop.f32.mrb[66].mxu0 }
 0xc70   :  { %v2929_v8 = vmul.f32 0.35355338, %v2915_v58  ;;  %v4522_v4 = vpop.f32.mrb[67].mxu0  ;;  %v2699_v63 = vsel %vm498_vm5, %v5932_v7, -inf }
 0xc71   :  { %2700 = vmax.xlane.f32.xlu0 %v2699_v63 }
 0xc72   :  { %v5937_v9 = vadd.f32 %v2929_v8, %v5331_v15 }
 0xc73   :  { %v2920_v12 = vpop.f32.mrb[68].mxu0  ;;  %v2216_v22 = vpop.xlane.xlu1 %2215 }
 0xc74   :  { %v2930_v13 = vmul.f32 0.35355338, %v2920_v12  ;;  %v4525_v32 = vpop.f32.mrb[69].mxu0  ;;  %v2935_v14 = vsel %vm491_vm14, %v5937_v9, -inf  ;;  %v2223_v27 = vsub.f32 %v5895_v17, %v2216_v22 }
 0xc75   :  { %2936 = vmax.xlane.f32.xlu1 %v2935_v14 }
 0xc76   :  { %v5942_v16 = vadd.f32 %v2930_v13, %v5337_v20  ;;  %v2226_v29 = vmul.f32 1.442695, %v2223_v27 }
 0xc77   :  { %v2925_v19 = vpop.f32.mrb[70].mxu0  ;;  %v2219_v15 = vpop.xlane.xlu0 %2218 }
 0xc78   :  { %v4528_v11 = vpop.f32.mrb[71].mxu0  ;;  %v2938_v21 = vsel %vm491_vm14, %v5942_v16, -inf  ;;  %4944 = vpow2.f32 %v2226_v29  ;;  %v2931_v34 = vmul.f32 0.35355338, %v2925_v19 }
 0xc79   :  { %2939 = vmax.xlane.f32.xlu0 %v2938_v21 }
 0xc7a   :  { %v5952_v35 = vadd.f32 %v2931_v34, %v5345_v26  ;;  %v2224_v26 = vsub.f32 %v5900_v31, %v2219_v15 }
 0xc7b   :  { %v2222_v28 = vpop.xlane.xlu0 %2221 }
 0xc7c   :  { %v2225_v20 = vsub.f32 %v2213_v39, %v2222_v28  ;;  %v2941_v38 = vsel %vm498_vm5, %v5952_v35, -inf  ;;  %v2228_v18 = vmul.f32 1.442695, %v2224_v26 }
 0xc7e   :  { %v2230_v23 = vmul.f32 1.442695, %v2225_v20 }
 0xc80   :  { %4946 = vpow2.f32 %v2230_v23 }
 0xc81   :  { %4948 = vpow2.f32 %v2228_v18 }
 0xc82   :  { %v5956_v36 = vpop.eup %4944 }
 0xc83   :  { %v2232_v42 = vsel %vm491_vm14, %v5956_v36, 0.0 }
 0xc86   :  { %2488 = vrot.lane.b32.xlu1 %v5811_v37, %s5052_s19 }
 0xc8a   :  { %v5960_v17 = vpop.eup %4946 }
 0xc8b   :  { %v2238_v39 = vsel %vm498_vm5, %v5960_v17, 0.0  ;;  %v5967_v30 = vpop.eup %4948 }
 0xc8c   :  { %v2235_v47 = vsel %vm491_vm14, %v5967_v30, 0.0 }
 0xc8f   :  { %4868 = vrot.lane.b32.xlu0 %v5809_v33, %s5052_s19 }
 0xcaa   :  { %2942 = vmax.xlane.f32.xlu1 %v2941_v38 }
 0xcae   :  { %2233 = vadd.xlane.f32.xlu0 %v2232_v42 }
 0xcb2   :  { %2239 = vadd.xlane.f32.xlu0 %v2238_v39 }
 0xcbb   :  { %4873 = vrot.lane.b32.xlu1 %v5809_v33, %s5051_s18 }
 0xcdf   :  { %2236 = vadd.xlane.f32.xlu1 %v2235_v47 }
 0xcea   :  { %v2451_v50 = vpop.xlane.xlu1 %2450 }
 0xceb   :  { %v2458_v40 = vsub.f32 %v5907_v25, %v2451_v50 }
 0xced   :  { %v2461_v46 = vmul.f32 1.442695, %v2458_v40 }
 0xcee   :  { %v2454_v44 = vpop.xlane.xlu0 %2453 }
 0xcef   :  { %4950 = vpow2.f32 %v2461_v46  ;;  %v2459_v52 = vsub.f32 %v5912_v51, %v2454_v44 }
 0xcf1   :  { %v2463_v54 = vmul.f32 1.442695, %v2459_v52 }
 0xcf2   :  { %v2457_v55 = vpop.xlane.xlu1 %2456 }
 0xcf3   :  { %4952 = vpow2.f32 %v2463_v54  ;;  %v2460_v31 = vsub.f32 %v5917_v56, %v2457_v55 }
 0xcf5   :  { %v2465_v57 = vmul.f32 1.442695, %v2460_v31 }
 0xcf6   :  { %v2695_v41 = vpop.xlane.xlu0 %2694 }
 0xcf7   :  { %4954 = vpow2.f32 %v2465_v57  ;;  %v2702_v43 = vsub.f32 %v5922_v24, %v2695_v41 }
 0xcf9   :  { %v5975_v59 = vpop.eup %4950  ;;  %v2705_v49 = vmul.f32 1.442695, %v2702_v43 }
 0xcfa   :  { %v2698_v60 = vpop.xlane.xlu1 %2697  ;;  %v2467_v25 = vsel %vm491_vm14, %v5975_v59, 0.0 }
 0xcfb   :  { %4956 = vpow2.f32 %v2705_v49  ;;  %v2703_v51 = vsub.f32 %v5927_v1, %v2698_v60  ;;  %2468 = vadd.xlane.f32.xlu1 %v2467_v25 }
 0xcfd   :  { %v5980_v61 = vpop.eup %4952  ;;  %v2707_v62 = vmul.f32 1.442695, %v2703_v51 }
 0xcfe   :  { %v2701_v56 = vpop.xlane.xlu0 %2700  ;;  %v2470_v45 = vsel %vm491_vm14, %v5980_v61, 0.0 }
 0xcff   :  { %4958 = vpow2.f32 %v2707_v62  ;;  %v2704_v24 = vsub.f32 %v5932_v7, %v2701_v56  ;;  %2471 = vadd.xlane.f32.xlu0 %v2470_v45 }
 0xd01   :  { %v5985_v2 = vpop.eup %4954  ;;  %v2709_v48 = vmul.f32 1.442695, %v2704_v24 }
 0xd02   :  { %v2937_v0 = vpop.xlane.xlu1 %2936  ;;  %v2473_v58 = vsel %vm498_vm5, %v5985_v2, 0.0 }
 0xd03   :  { %4960 = vpow2.f32 %v2709_v48  ;;  %v2944_v1 = vsub.f32 %v5937_v9, %v2937_v0  ;;  %2474 = vadd.xlane.f32.xlu1 %v2473_v58 }
 0xd05   :  { %v5990_v8 = vpop.eup %4956  ;;  %v2947_v4 = vmul.f32 1.442695, %v2944_v1 }
 0xd06   :  { %v2711_v63 = vsel %vm491_vm14, %v5990_v8, 0.0  ;;  %v2940_v19 = vpop.xlane.xlu0 %2939  ;;  %v2489_v15 = vpop.permute.xlu1 %2488 }
 0xd07   :  { %4962 = vpow2.f32 %v2947_v4  ;;  %2712 = vadd.xlane.f32.xlu0 %v2711_v63  ;;  %v2945_v11 = vsub.f32 %v5942_v16, %v2940_v19 }
 0xd09   :  { %v5994_v7 = vpop.eup %4958  ;;  %v2949_v21 = vmul.f32 1.442695, %v2945_v11 }
 0xd0a   :  { %v2714_v12 = vsel %vm491_vm14, %v5994_v7, 0.0  ;;  %v4869_v22 = vpop.permute.xlu0 %4868 }
 0xd0b   :  { %2715 = vadd.xlane.f32.xlu1 %v2714_v12  ;;  %4964 = vpow2.f32 %v2949_v21  ;;  %v4871_v38 = vunpack.i.h.bf16 %v4869_v22  ;;  %v4870_v42 = vunpack.i.l.bf16 %v4869_v22 }
 0xd0d   :  { %v5998_v13 = vpop.eup %4960 }
 0xd0e   :  { %v2717_v9 = vsel %vm498_vm5, %v5998_v13, 0.0 }
 0xd0f   :  { %2718 = vadd.xlane.f32.xlu1 %v2717_v9 }
 0xd11   :  { %v6002_v32 = vpop.eup %4962 }
 0xd12   :  { %v2953_v14 = vsel %vm491_vm14, %v6002_v32, 0.0 }
 0xd13   :  { %2954 = vadd.xlane.f32.xlu1 %v2953_v14 }
 0xd15   :  { %v6009_v28 = vpop.eup %4964 }
 0xd16   :  { %v2956_v34 = vsel %vm491_vm14, %v6009_v28, 0.0 }
 0xd1d   :  { %2730 = vrot.lane.b32.xlu0 %v5811_v37, %s5051_s18 }
 0xd37   :  { %v2943_v27 = vpop.xlane.xlu1 %2942 }
 0xd38   :  { %v2946_v29 = vsub.f32 %v5952_v35, %v2943_v27  ;;  %v4742_v35 = vpack.c.bf16 %v4871_v38, %v4870_v42  ;;  %v3870_v38 = vld [vmem:[%s6320_s3 + $0x20] sm:$0xff]  ;;  %v3871_v42 = vld [vmem:[%s6320_s3 + $0x28] sm:$0xff] }
 0xd3a   :  { %v2951_v20 = vmul.f32 1.442695, %v2946_v29 }
 0xd3b   :  { %v2234_v23 = vpop.xlane.xlu0 %2233 }
 0xd3c   :  { %4966 = vpow2.f32 %v2951_v20  ;;  %2957 = vadd.xlane.f32.xlu0 %v2956_v34 }
 0xd3d   :  { %4968 = vrcp.f32 %v2234_v23 }
 0xd3f   :  { %v2240_v47 = vpop.xlane.xlu0 %2239 }
 0xd46   :  { %v6014_v16 = vpop.eup %4966 }
 0xd47   :  { %v4969_v39 = vpop.eup %4968  ;;  %v2959_v26 = vsel %vm498_vm5, %v6014_v16, 0.0 }
 0xd48   :  { %v2242_v18 = vmul.f32 %v4969_v39, %v5956_v36  ;;  %2960 = vadd.xlane.f32.xlu1 %v2959_v26  ;;  %v4874_v36 = vpop.permute.xlu1 %4873  ;;  %v4759_v26 = vpack.c.bf16 %v3871_v42, %v3870_v38 }
 0xd49   :  { %v4876_v55 = vunpack.i.h.bf16 %v4874_v36 }
 0xd4a   :  { %4446 = vmatmul.mubr.msk.f32.vlgmr.msra.gmra.mrb[54].mxu1 %vm491_vm14, %v2242_v18  ;;  %v3873_v18 = vld [vmem:[%s6320_s3 + $0x38] sm:$0xff]  ;;  %4760 = vmatpush3.bf16.msra.mxu0 %v4759_v26 }
 0xd4b   :  { %4743 = vmatpush3.bf16.msra.mxu1 %v4742_v35  ;;  %4448 = vmatprep.mubr.msk.f32.mxu1 %vm5049_vm0, %v5050_v6 }
 0xd4c   :  { %4473 = vmatprep.subr.mxu1 %v5050_v6  ;;  %4761 = vmatprep.subr.bf16.mxu0 %v5048_v3 }
 0xd4f   :  { %4474 = vmatpush3.msk.msra.mxu1 %vm535_vm6, %v2489_v15 }
 0xd50   :  { %4748 = vmatprep.subr.bf16.mxu1 %v5048_v3 }
 0xd52   :  { %2972 = vrot.lane.b32.xlu0 %v5811_v37, %s5053_s21 }
 0xd59   :  { %4878 = vrot.lane.b32.xlu1 %v5809_v33, %s5053_s21 }
 0xd6c   :  { %v2237_v50 = vpop.xlane.xlu1 %2236 }
 0xd6d   :  { %4970 = vrcp.f32 %v2237_v50 }
 0xd6e   :  { %4972 = vrcp.f32 %v2240_v47 }
 0xd77   :  { %v4971_v40 = vpop.eup %4970 }
 0xd78   :  { %v2244_v46 = vmul.f32 %v4971_v40, %v5967_v30  ;;  %v4973_v44 = vpop.eup %4972  ;;  %v4875_v30 = vunpack.i.l.bf16 %v4874_v36 }
 0xd79   :  { %v2246_v52 = vmul.f32 %v4973_v44, %v5960_v17 }
 0xd7a   :  { %4449 = vmatmul.mubr.msk.f32.gmra.mrb[56].mxu1 %vm491_vm14, %v2244_v46  ;;  %v4749_v43 = vpack.c.bf16 %v4876_v55, %v4875_v30 }
 0xd7b   :  { %4451 = vmatprep.mubr.msk.f32.mxu1 %vm5049_vm0, %v5050_v6 }
 0xd7e   :  { %4452 = vmatmul.mubr.msk.f32.gmra.mrb[58].mxu1 %vm491_vm14, %v2246_v52 }
 0xd7f   :  { %4475 = vmatprep.mubr.msk.f32.mxu1 %vm5049_vm0, %v5050_v6 }
 0xd88   :  { %v2469_v33 = vpop.xlane.xlu1 %2468 }
 0xd89   :  { %4974 = vrcp.f32 %v2469_v33 }
 0xd8c   :  { %v2472_v37 = vpop.xlane.xlu0 %2471 }
 0xd8d   :  { %4976 = vrcp.f32 %v2472_v37 }
 0xd90   :  { %v2475_v54 = vpop.xlane.xlu1 %2474 }
 0xd91   :  { %4978 = vrcp.f32 %v2475_v54 }
 0xd93   :  { %v4975_v31 = vpop.eup %4974 }
 0xd94   :  { %v2477_v57 = vmul.f32 %v4975_v31, %v5975_v59  ;;  %v2713_v41 = vpop.xlane.xlu0 %2712 }
 0xd95   :  { %4980 = vrcp.f32 %v2713_v41 }
 0xd96   :  { %4476 = vmatmul.mubr.msk.f32.vlgmr.msra.gmra.mrb[60].mxu1 %vm491_vm14, %v2477_v57 }
 0xd97   :  { %v4977_v17 = vpop.eup %4976  ;;  %4750 = vmatpush3.bf16.msra.mxu1 %v4749_v43  ;;  %4478 = vmatprep.mubr.msk.f32.mxu1 %vm5049_vm0, %v5050_v6 }
 0xd98   :  { %v2731_v49 = vpop.permute.xlu0 %2730  ;;  %v2716_v60 = vpop.xlane.xlu1 %2715  ;;  %4503 = vmatprep.subr.mxu1 %v5050_v6  ;;  %v2479_v25 = vmul.f32 %v4977_v17, %v5980_v61 }
 0xd99   :  { %4982 = vrcp.f32 %v2716_v60 }
 0xd9a   :  { %4479 = vmatmul.mubr.msk.f32.gmra.mrb[62].mxu1 %vm491_vm14, %v2479_v25 }
 0xd9b   :  { %v4979_v59 = vpop.eup %4978  ;;  %4504 = vmatpush3.msk.msra.mxu1 %vm535_vm6, %v2731_v49  ;;  %4481 = vmatprep.mubr.msk.f32.mxu1 %vm5049_vm0, %v5050_v6 }
 0xd9c   :  { %v2719_v51 = vpop.xlane.xlu1 %2718  ;;  %v2481_v62 = vmul.f32 %v4979_v59, %v5985_v2  ;;  %4755 = vmatprep.subr.bf16.mxu1 %v5048_v3 }
 0xd9d   :  { %4984 = vrcp.f32 %v2719_v51 }
 0xd9e   :  { %4482 = vmatmul.mubr.msk.f32.gmra.mrb[64].mxu1 %vm491_vm14, %v2481_v62 }
 0xd9f   :  { %v4981_v56 = vpop.eup %4980  ;;  %4505 = vmatprep.mubr.msk.f32.mxu1 %vm5049_vm0, %v5050_v6 }
 0xda0   :  { %v2721_v61 = vmul.f32 %v4981_v56, %v5990_v8  ;;  %v2955_v0 = vpop.xlane.xlu1 %2954 }
 0xda1   :  { %4986 = vrcp.f32 %v2955_v0 }
 0xda2   :  { %4506 = vmatmul.mubr.msk.f32.vlgmr.msra.gmra.mrb[66].mxu1 %vm491_vm14, %v2721_v61 }
 0xda3   :  { %v4983_v45 = vpop.eup %4982  ;;  %4508 = vmatprep.mubr.msk.f32.mxu1 %vm5049_vm0, %v5050_v6 }
 0xda4   :  { %v2723_v24 = vmul.f32 %v4983_v45, %v5994_v7 }
 0xda6   :  { %4509 = vmatmul.mubr.msk.f32.gmra.mrb[68].mxu1 %vm491_vm14, %v2723_v24 }
 0xda7   :  { %v4985_v2 = vpop.eup %4984  ;;  %4511 = vmatprep.mubr.msk.f32.mxu1 %vm5049_vm0, %v5050_v6 }
 0xda8   :  { %v2725_v48 = vmul.f32 %v4985_v2, %v5998_v13 }
 0xdaa   :  { %4512 = vmatmul.mubr.msk.f32.gmra.mrb[70].mxu1 %vm491_vm14, %v2725_v48 }
 0xdab   :  { %4535 = vmatprep.mubr.msk.f32.mxu1 %vm5049_vm0, %v5050_v6  ;;  %v4987_v12 = vpop.eup %4986 }
 0xdac   :  { %v2963_v13 = vmul.f32 %v4987_v12, %v6002_v32 }
 0xdc9   :  { %v2958_v58 = vpop.xlane.xlu0 %2957 }
 0xdca   :  { %4988 = vrcp.f32 %v2958_v58 }
 0xdcd   :  { %v2973_v9 = vpop.permute.xlu0 %2972 }
 0xdd4   :  { %v4989_v14 = vpop.eup %4988 }
 0xdd5   :  { %v2961_v1 = vpop.xlane.xlu1 %2960  ;;  %v2965_v19 = vmul.f32 %v4989_v14, %v6009_v28 }
 0xdd6   :  { %4990 = vrcp.f32 %v2961_v1 }
 0xdd9   :  { %v4879_v8 = vpop.permute.xlu1 %4878 }
 0xdda   :  { %v4881_v4 = vunpack.i.h.bf16 %v4879_v8  ;;  %v4880_v63 = vunpack.i.l.bf16 %v4879_v8  ;;  %v3875_v8 = vld [vmem:[%s6321_s4 + $0x1] ss:$0 sm:$0xff] }
 0xddc   :  { %v4756_v7 = vpack.c.bf16 %v4881_v4, %v4880_v63 }
 0xdde   :  { %4757 = vmatpush3.bf16.msra.mxu1 %v4756_v7 }
 0xddf   :  { %4533 = vmatprep.subr.mxu1 %v5050_v6 }
 0xde0   :  { %v4991_v11 = vpop.eup %4990 }
 0xde1   :  { %v2967_v32 = vmul.f32 %v4991_v11, %v6014_v16  ;;  %v3872_v16 = vld [vmem:[%s6320_s3 + $0x30] sm:$0xff]  ;;  %s6344_s3 = smov 24  }
 0xde2   :  { %4534 = vmatpush3.msk.msra.mxu1 %vm535_vm6, %v2973_v9  ;;  %v4762_v35 = vpack.c.bf16 %v3873_v18, %v3872_v16 }
 0xde3   :  { %4536 = vmatmul.mubr.msk.f32.vlgmr.msra.gmra.mrb[72].mxu1 %vm491_vm14, %v2963_v13  ;;  %4764 = vmatprep.subr.bf16.mxu1 %v5048_v3 }
 0xde4   :  { %4538 = vmatprep.mubr.msk.f32.mxu1 %vm5049_vm0, %v5050_v6  ;;  %4763 = vmatpush3.bf16.msra.mxu0 %v4762_v35 }
 0xde5   :  { %4770 = vmatprep.subr.bf16.mxu0 %v5048_v3 }
 0xde7   :  { %4539 = vmatmul.mubr.msk.f32.gmra.mrb[74].mxu1 %vm491_vm14, %v2965_v19 }
 0xde8   :  { %4541 = vmatprep.mubr.msk.f32.mxu1 %vm5049_vm0, %v5050_v6 }
 0xdeb   :  { %4542 = vmatmul.mubr.msk.f32.gmra.mrb[76].mxu1 %vm491_vm14, %v2967_v32 }
 0xdec   :  { %4569 = vmatprep.mubr.msk.f32.mxu1 %vm5049_vm0, %v5050_v6 }
 0xe1d   :  { %v2325_v21 = vpop.f32.mrb[54].mxu1 }
 0xe1e   :  { %v4447_v15 = vpop.f32.mrb[55].mxu1 }
 0xe4d   :  { %v2330_v22 = vpop.f32.mrb[56].mxu1 }
 0xe4e   :  { %v4450_v27 = vpop.f32.mrb[57].mxu1 }
 0xe51   :  { %v2335_v29 = vpop.f32.mrb[58].mxu1 }
 0xe52   :  { %v4453_v20 = vpop.f32.mrb[59].mxu1 }
 0xe69   :  { %v2569_v28 = vpop.f32.mrb[60].mxu1 }
 0xe6a   :  { %3070 = vrot.lane.b32.xlu0 %v2569_v28, %s5055_s17  ;;  %v4477_v23 = vpop.f32.mrb[61].mxu1 }
 0xe6d   :  { %v2574_v34 = vpop.f32.mrb[62].mxu1 }
 0xe6e   :  { %3072 = vrot.lane.b32.xlu0 %v2574_v34, %s5055_s17  ;;  %v4480_v39 = vpop.f32.mrb[63].mxu1 }
 0xe71   :  { %v2579_v36 = vpop.f32.mrb[64].mxu1 }
 0xe72   :  { %v4483_v47 = vpop.f32.mrb[65].mxu1 }
 0xe73   :  { %v3883_v47 = vld [vmem:[%s6323_s6 + $0x20] sm:$0xff] }
 0xe75   :  { %v2811_v50 = vpop.f32.mrb[66].mxu1 }
 0xe76   :  { %3082 = vrot.lane.b32.xlu0 %v2811_v50, %s6343_s27  ;;  %v4507_v40 = vpop.f32.mrb[67].mxu1  ;;  %v3884_v50 = vld [vmem:[%s6323_s6 + $0x28] sm:$0xff] }
 0xe77   :  { %v4765_v40 = vpack.c.bf16 %v3884_v50, %v3883_v47 }
 0xe79   :  { %v2816_v46 = vpop.f32.mrb[68].mxu1  ;;  %4766 = vmatpush3.bf16.msra.mxu1 %v4765_v40 }
 0xe7a   :  { %3084 = vrot.lane.b32.xlu1 %v2816_v46, %s6343_s27  ;;  %v4510_v44 = vpop.f32.mrb[69].mxu1  ;;  %4767 = vmatprep.subr.bf16.mxu1 %v5048_v3  ;;  %v3885_v46 = vld [vmem:[%s6323_s6 + $0x30] sm:$0xff] }
 0xe7b   :  { %v3886_v44 = vld [vmem:[%s6323_s6 + $0x38] sm:$0xff] }
 0xe7d   :  { %v2821_v52 = vpop.f32.mrb[70].mxu1 }
 0xe7e   :  { %v4513_v33 = vpop.f32.mrb[71].mxu1 }
 0xe7f   :  { %v3892_v33 = vld [vmem:[%s6325_s8 + $0x80] sm:$0xff] }
 0xeb6   :  { %v3053_v37 = vpop.f32.mrb[72].mxu1 }
 0xeb7   :  { %3094 = vrot.lane.b32.xlu1 %v3053_v37, %s6344_s3  ;;  %v4537_v54 = vpop.f32.mrb[73].mxu1  ;;  %v3893_v37 = vld [vmem:[%s6325_s8 + $0x88] sm:$0xff] }
 0xeb8   :  { %v3894_v54 = vld [vmem:[%s6325_s8 + $0x90] sm:$0xff] }
 0xeba   :  { %v3058_v55 = vpop.f32.mrb[74].mxu1 }
 0xebb   :  { %3074 = vrot.lane.b32.xlu1 %v2579_v36, %s5055_s17  ;;  %3096 = vrot.lane.b32.xlu0 %v3058_v55, %s6344_s3  ;;  %v4540_v30 = vpop.f32.mrb[75].mxu1  ;;  %v4771_v55 = vpack.c.bf16 %v3893_v37, %v3892_v33 }
 0xebc   :  { %v3895_v30 = vld [vmem:[%s6325_s8 + $0x98] sm:$0xff] }
 0xebe   :  { %v3063_v31 = vpop.f32.mrb[76].mxu1 }
 0xebf   :  { %3086 = vrot.lane.b32.xlu0 %v2821_v52, %s6343_s27  ;;  %3098 = vrot.lane.b32.xlu1 %v3063_v31, %s6344_s3  ;;  %v4543_v57 = vpop.f32.mrb[77].mxu1  ;;  %v4768_v52 = vpack.c.bf16 %v3886_v44, %v3885_v46  ;;  %v4774_v31 = vpack.c.bf16 %v3895_v30, %v3894_v54  ;;  %v3909_v46 = vld [vmem:[%s6326_s9 + $0x1] ss:$0 sm:$0xff] }
 0xec0   :  { %v3896_v57 = vld [vmem:[%s6325_s8 + $0xa0] sm:$0xff] }
 0xec1   :  { %4769 = vmatpush3.bf16.msra.mxu1 %v4768_v52 }
 0xedc   :  { %v3071_v41 = vpop.permute.xlu0 %3070 }
 0xedd   :  { %v3103_v60 = vsel %vm386_vm2, %v2325_v21, %v3071_v41  ;;  %v3897_v41 = vld [vmem:[%s6325_s8 + $0xa8] sm:$0xff] }
 0xee0   :  { %v3073_v43 = vpop.permute.xlu0 %3072 }
 0xee1   :  { %v3104_v62 = vsel %vm386_vm2, %v2330_v22, %v3073_v43  ;;  %v4777_v43 = vpack.c.bf16 %v3897_v41, %v3896_v57 }
 0xee8   :  { %v3083_v49 = vpop.permute.xlu0 %3082 }
 0xee9   :  { %v3106_v25 = vsel %vm1386_vm7, %v3103_v60, %v3083_v49  ;;  %v3899_v49 = vld [vmem:[%s6325_s8 + $0xb8] sm:$0xff] }
 0xeec   :  { %v3085_v17 = vpop.permute.xlu1 %3084 }
 0xeed   :  { %v3107_v56 = vsel %vm1386_vm7, %v3104_v62, %v3085_v17  ;;  %v3898_v17 = vld [vmem:[%s6325_s8 + $0xb0] sm:$0xff] }
 0xeee   :  { %v4780_v60 = vpack.c.bf16 %v3899_v49, %v3898_v17  ;;  %v3902_v62 = vld [vmem:[%s6325_s8 + $0xd0] sm:$0xff] }
 0xf29   :  { %v3095_v59 = vpop.permute.xlu1 %3094 }
 0xf2a   :  { %v3109_v51 = vsel %vm1390_vm8, %v3106_v25, %v3095_v59  ;;  %v3900_v25 = vld [vmem:[%s6325_s8 + $0xc0] sm:$0xff]  ;;  %v3901_v59 = vld [vmem:[%s6325_s8 + $0xc8] sm:$0xff] }
 0xf2b   :  { %4553 = vmatmul.mubr.msk.f32.vlgmr.msra.gmra.mrb[72].mxu0 %vm124_vm1, %v3109_v51  ;;  %v4783_v51 = vpack.c.bf16 %v3901_v59, %v3900_v25 }
 0xf2c   :  { %4555 = vmatprep.mubr.msk.f32.mxu0 %vm5049_vm0, %v5050_v6  ;;  %4772 = vmatpush3.bf16.msra.mxu0 %v4771_v55 }
 0xf2d   :  { %v3075_v61 = vpop.permute.xlu1 %3074  ;;  %v3097_v45 = vpop.permute.xlu0 %3096  ;;  %4773 = vmatprep.subr.bf16.mxu0 %v5048_v3 }
 0xf2e   :  { %v3110_v24 = vsel %vm1390_vm8, %v3107_v56, %v3097_v45  ;;  %v3105_v2 = vsel %vm386_vm2, %v2335_v29, %v3075_v61  ;;  %v3903_v56 = vld [vmem:[%s6325_s8 + $0xd8] sm:$0xff]  ;;  %v3904_v45 = vld [vmem:[%s6325_s8 + $0xe0] sm:$0xff]  ;;  %vm3560_vm2 = vcmask 1045504  }
 0xf2f   :  { %4556 = vmatmul.mubr.msk.f32.gmra.mrb[74].mxu0 %vm124_vm1, %v3110_v24  ;;  %v4786_v61 = vpack.c.bf16 %v3903_v56, %v3902_v62  ;;  %v3905_v24 = vld [vmem:[%s6325_s8 + $0xe8] sm:$0xff] }
 0xf30   :  { %4558 = vmatprep.mubr.msk.f32.mxu0 %vm5049_vm0, %v5050_v6  ;;  %4775 = vmatpush3.bf16.msra.mxu0 %v4774_v31 }
 0xf31   :  { %v3087_v48 = vpop.permute.xlu0 %3086  ;;  %v3099_v0 = vpop.permute.xlu1 %3098  ;;  %4776 = vmatprep.subr.bf16.mxu0 %v5048_v3 }
 0xf32   :  { %v3108_v58 = vsel %vm1386_vm7, %v3105_v2, %v3087_v48  ;;  %v4789_v2 = vpack.c.bf16 %v3905_v24, %v3904_v45 }
 0xf33   :  { %v3111_v1 = vsel %vm1390_vm8, %v3108_v58, %v3099_v0 }
 0xf34   :  { %4559 = vmatmul.mubr.msk.f32.gmra.mrb[76].mxu0 %vm124_vm1, %v3111_v1 }
 0xf35   :  { %4610 = vmatprep.mubr.msk.f32.mxu0 %vm5049_vm0, %v5050_v6  ;;  %4778 = vmatpush3.bf16.msra.mxu0 %v4777_v43 }
 0xf36   :  { %4779 = vmatprep.subr.bf16.mxu0 %v5048_v3 }
 0xf39   :  { %4781 = vmatpush3.bf16.msra.mxu0 %v4780_v60 }
 0xf3a   :  { %4782 = vmatprep.subr.bf16.mxu0 %v5048_v3 }
 0xf3d   :  { %4784 = vmatpush3.bf16.msra.mxu0 %v4783_v51 }
 0xf3e   :  { %4785 = vmatprep.subr.bf16.mxu0 %v5048_v3 }
 0xf41   :  { %4787 = vmatpush3.bf16.msra.mxu0 %v4786_v61 }
 0xf42   :  { %4788 = vmatprep.subr.bf16.mxu0 %v5048_v3 }
 0xf45   :  { %4790 = vmatpush3.bf16.msra.mxu0 %v4789_v2 }
 0xf46   :  { %4791 = vmatprep.subr.bf16.mxu0 %v5048_v3  ;;  %v3882_v3 = vld [vmem:[%s6322_s5 + $0x3] ss:$0 sm:$0xff] }
 0xffe   :  { %v3200_v4 = vpop.f32.mrb[72].mxu0 }
 0xfff   :  { %v3201_v63 = vadd.f32 %v3875_v8, %v3200_v4  ;;  %v4554_v7 = vpop.f32.mrb[73].mxu0 }
0x1001   :  { %v3217_v12 = vadd.f32 %v3201_v63, %v5756_v53 }
0x1002   :  { %v3205_v13 = vpop.f32.mrb[74].mxu0 }
0x1003   :  { %v3206_v9 = vadd.f32 %v3875_v8, %v3205_v13  ;;  %v4557_v14 = vpop.f32.mrb[75].mxu0  ;;  %v3220_v19 = vsel %vm124_vm1, %v3217_v12, 0.0 }
0x1004   :  { %3221 = vadd.xlane.f32.xlu0 %v3220_v19 }
0x1005   :  { %v3218_v11 = vadd.f32 %v3206_v9, %v5772_v10  ;;  %v3881_v9 = vld [vmem:[%s6322_s5 + $0x2] ss:$0 sm:$0xff] }
0x1007   :  { %v3210_v32 = vpop.f32.mrb[76].mxu0  ;;  %v3223_v21 = vsel %vm124_vm1, %v3218_v11, 0.0 }
0x1008   :  { %v3211_v15 = vadd.f32 %v3875_v8, %v3210_v32  ;;  %3224 = vadd.xlane.f32.xlu1 %v3223_v21  ;;  %v4560_v22 = vpop.f32.mrb[77].mxu0 }
0x100a   :  { %v3219_v27 = vadd.f32 %v3211_v15, %v5783_v5 }
0x100c   :  { %v3226_v29 = vsel %vm1505_vm9, %v3219_v27, 0.0 }
0x100d   :  { %3227 = vadd.xlane.f32.xlu0 %v3226_v29 }
0x1091   :  { %v3222_v53 = vpop.xlane.xlu0 %3221 }
0x1092   :  { %v3229_v20 = vmul.f32 0.03125, %v3222_v53 }
0x1094   :  { %v6129_v28 = vsub.f32 %v3217_v12, %v3229_v20 }
0x1095   :  { %v3225_v23 = vpop.xlane.xlu1 %3224 }
0x1096   :  { %v3230_v34 = vmul.f32 0.03125, %v3225_v23  ;;  %v3235_v10 = vmul.f32 %v6129_v28, %v6129_v28  ;;  %v3907_v23 = vld [vmem:[%s6325_s8 + $0xf8] sm:$0xff] }
0x1098   :  { %v6133_v38 = vsub.f32 %v3218_v11, %v3230_v34  ;;  %v3238_v42 = vsel %vm124_vm1, %v3235_v10, 0.0  ;;  %v3888_v10 = vld [vmem:[%s6324_s7 + $0x1] ss:$0 sm:$0xff] }
0x1099   :  { %3239 = vadd.xlane.f32.xlu0 %v3238_v42 }
0x109a   :  { %v3228_v16 = vpop.xlane.xlu0 %3227  ;;  %v3236_v5 = vmul.f32 %v6133_v38, %v6133_v38 }
0x109b   :  { %v3231_v39 = vmul.f32 0.03125, %v3228_v16 }
0x109c   :  { %v3241_v26 = vsel %vm124_vm1, %v3236_v5, 0.0 }
0x109d   :  { %v6139_v18 = vsub.f32 %v3219_v27, %v3231_v39  ;;  %3242 = vadd.xlane.f32.xlu1 %v3241_v26 }
0x109f   :  { %v3237_v35 = vmul.f32 %v6139_v18, %v6139_v18 }
0x10a1   :  { %v3244_v36 = vsel %vm1505_vm9, %v3237_v35, 0.0 }
0x10a2   :  { %3245 = vadd.xlane.f32.xlu0 %v3244_v36 }
0x1126   :  { %v3240_v48 = vpop.xlane.xlu0 %3239 }
0x1127   :  { %v3247_v0 = vmul.f32 0.03125, %v3240_v48 }
0x1129   :  { %v3250_v58 = vadd.f32 1e-05, %v3247_v0 }
0x112a   :  { %v3243_v1 = vpop.xlane.xlu1 %3242 }
0x112b   :  { %4992 = vrsqrt.f32 %v3250_v58  ;;  %v3248_v8 = vmul.f32 0.03125, %v3243_v1 }
0x112d   :  { %v3251_v4 = vadd.f32 1e-05, %v3248_v8 }
0x112f   :  { %4994 = vrsqrt.f32 %v3251_v4  ;;  %v3246_v63 = vpop.xlane.xlu0 %3245 }
0x1130   :  { %v3249_v7 = vmul.f32 0.03125, %v3246_v63  ;;  %v3564_v63 = vld [vmem:[%s6328_s11] sm:$0xff] }
0x1132   :  { %v3252_v12 = vadd.f32 1e-05, %v3249_v7  ;;  %v3565_v7 = vld [vmem:[%s6328_s11 + $0x8] sm:$0xff] }
0x1134   :  { %4996 = vrsqrt.f32 %v3252_v12  ;;  %v4794_v12 = vpack.c.bf16 %v3565_v7, %v3564_v63 }
0x1135   :  { %v4993_v13 = vpop.eup %4992 }
0x1136   :  { %v3256_v14 = vmul.f32 %v4993_v13, %v6129_v28  ;;  %v3906_v28 = vld [vmem:[%s6325_s8 + $0xf0] sm:$0xff]  ;;  %4795 = vmatprep.subr.bf16.mxu1 %v4794_v12 }
0x1137   :  { %v4792_v34 = vpack.c.bf16 %v3907_v23, %v3906_v28  ;;  %v3566_v13 = vld [vmem:[%s6328_s11 + $0x10] sm:$0xff] }
0x1138   :  { %v3265_v19 = vmul.f32 %v3881_v9, %v3256_v14 }
0x1139   :  { %v4995_v11 = vpop.eup %4994  ;;  %4793 = vmatpush3.bf16.msra.mxu0 %v4792_v34  ;;  %v3912_v34 = vld [vmem:[%s6327_s10 + $0x2] ss:$0 sm:$0xff] }
0x113a   :  { %v3274_v32 = vadd.f32 %v3882_v3, %v3265_v19  ;;  %v3257_v21 = vmul.f32 %v4995_v11, %v6133_v38  ;;  %v3661_v19 = vld [vmem:[%s6331_s14] sm:$0xff]  ;;  %v5058_v11 = vmov 0  }
0x113b   :  { %4883 = vset.pattern.permute.xlu0 %v5058_v11  ;;  %4882 = vset.pattern.permute.xlu1 %v5058_v11 }
0x113c   :  { %4570 = vmatmul.mubr.msk.f32.vlgmr.msra.gmra.mrb[78].mxu1 %vm124_vm1, %v3274_v32  ;;  %v3266_v15 = vmul.f32 %v3881_v9, %v3257_v21 }
0x113d   :  { %4572 = vmatprep.mubr.msk.f32.mxu1 %vm5049_vm0, %v5050_v6  ;;  %4797 = vmatpush3.bf16.msra.mxu1 %v4794_v12 }
0x113e   :  { %v4997_v22 = vpop.eup %4996  ;;  %v3275_v27 = vadd.f32 %v3882_v3, %v3266_v15 }
0x113f   :  { %v3258_v29 = vmul.f32 %v4997_v22, %v6139_v18 }
0x1140   :  { %4573 = vmatmul.mubr.msk.f32.gmra.mrb[80].mxu1 %vm124_vm1, %v3275_v27 }
0x1141   :  { %4575 = vmatprep.mubr.msk.f32.mxu1 %vm5049_vm0, %v5050_v6  ;;  %v3267_v53 = vmul.f32 %v3881_v9, %v3258_v29  ;;  %v3567_v9 = vld [vmem:[%s6328_s11 + $0x18] sm:$0xff] }
0x1142   :  { %v4798_v14 = vpack.c.bf16 %v3567_v9, %v3566_v13 }
0x1143   :  { %v3276_v20 = vadd.f32 %v3882_v3, %v3267_v53  ;;  %v3662_v3 = vld [vmem:[%s6331_s14 + $0x8] sm:$0xff] }
0x1144   :  { %4799 = vmatprep.subr.bf16.mxu1 %v4798_v14 }
0x1145   :  { %4576 = vmatmul.mubr.msk.f32.gmra.mrb[82].mxu1 %vm124_vm1, %v3276_v20 }
0x1146   :  { %4801 = vmatpush3.bf16.msra.mxu1 %v4798_v14 }
0x120f   :  { %v3365_v38 = vpop.f32.mrb[78].mxu1 }
0x1210   :  { %v3366_v42 = vadd.f32 %v3888_v10, %v3365_v38  ;;  %v4571_v16 = vpop.f32.mrb[79].mxu1  ;;  %v3913_v38 = vld [vmem:[%s6327_s10 + $0x3] ss:$0 sm:$0xff] }
0x1212   :  { %v3379_v5 = vmax.f32 %v3366_v42, 0.0 }
0x1213   :  { %v3370_v39 = vpop.f32.mrb[80].mxu1 }
0x1214   :  { %v3371_v26 = vadd.f32 %v3888_v10, %v3370_v39  ;;  %v4574_v18 = vpop.f32.mrb[81].mxu1  ;;  %4611 = vmatmul.mubr.f32.vlgmr.msra.gmra.mrb[78].mxu0 %v3379_v5 }
0x1215   :  { %4613 = vmatprep.mubr.msk.f32.mxu0 %vm5049_vm0, %v5050_v6 }
0x1216   :  { %v3380_v35 = vmax.f32 %v3371_v26, 0.0 }
0x1218   :  { %v3375_v36 = vpop.f32.mrb[82].mxu1  ;;  %4614 = vmatmul.mubr.f32.gmra.mrb[80].mxu0 %v3380_v35 }
0x1219   :  { %v3376_v47 = vadd.f32 %v3888_v10, %v3375_v36  ;;  %v4577_v50 = vpop.f32.mrb[83].mxu1  ;;  %4616 = vmatprep.mubr.msk.f32.mxu0 %vm5049_vm0, %v5050_v6  ;;  %v5009_v36 = vld [vmem:[%s6340_s20] sm:$0xff]  ;;  %vm3555_vm0 = vcmask 1046528  }
0x121b   :  { %v3381_v40 = vmax.f32 %v3376_v47, 0.0 }
0x121d   :  { %4617 = vmatmul.mubr.f32.gmra.mrb[82].mxu0 %v3381_v40  ;;  %v5010_v40 = vld [vmem:[%s6340_s20 + $0x8] sm:$0xff] }
0x12e7   :  { %v3473_v44 = vpop.f32.mrb[78].mxu0 }
0x12e8   :  { %v3474_v52 = vadd.f32 %v3909_v46, %v3473_v44  ;;  %v4612_v33 = vpop.f32.mrb[79].mxu0 }
0x12ea   :  { %v3490_v37 = vadd.f32 %v3474_v52, %v3274_v32 }
0x12eb   :  { %v3478_v54 = vpop.f32.mrb[80].mxu0 }
0x12ec   :  { %v3479_v55 = vadd.f32 %v3909_v46, %v3478_v54  ;;  %v4615_v30 = vpop.f32.mrb[81].mxu0  ;;  %v3493_v31 = vsel %vm124_vm1, %v3490_v37, 0.0 }
0x12ed   :  { %3494 = vadd.xlane.f32.xlu1 %v3493_v31 }
0x12ee   :  { %v3491_v57 = vadd.f32 %v3479_v55, %v3275_v27  ;;  %v5011_v55 = vld [vmem:[%s6340_s20 + $0x10] sm:$0x3] }
0x12f0   :  { %v3483_v41 = vpop.f32.mrb[82].mxu0  ;;  %v3496_v6 = vsel %vm124_vm1, %v3491_v57, 0.0 }
0x12f1   :  { %v3484_v43 = vadd.f32 %v3909_v46, %v3483_v41  ;;  %3497 = vadd.xlane.f32.xlu0 %v3496_v6  ;;  %v4618_v17 = vpop.f32.mrb[83].mxu0  ;;  %v3692_v6 = vsel %vm3690_vm3, %v3662_v3, 0.0 }
0x12f3   :  { %v3492_v49 = vadd.f32 %v3484_v43, %v3276_v20  ;;  %v3691_v43 = vsel %vm3690_vm3, %v3661_v19, 0.0 }
0x12f4   :  { %v3693_v17 = vadd.f32 %v3692_v6, %v3691_v43 }
0x12f5   :  { %v3499_v60 = vsel %vm1505_vm9, %v3492_v49, 0.0 }
0x12f6   :  { %3500 = vadd.xlane.f32.xlu1 %v3499_v60 }
0x137a   :  { %v3495_v25 = vpop.xlane.xlu1 %3494 }
0x137b   :  { %v3502_v59 = vmul.f32 0.03125, %v3495_v25  ;;  %v3658_v25 = vld [vmem:[%s6330_s13 + $0x8] sm:$0xff] }
0x137d   :  { %v3505_v51 = vsub.f32 %v3490_v37, %v3502_v59 }
0x137e   :  { %v3498_v62 = vpop.xlane.xlu0 %3497 }
0x137f   :  { %v3503_v56 = vmul.f32 0.03125, %v3498_v62  ;;  %v3508_v61 = vmul.f32 %v3505_v51, %v3505_v51  ;;  %v3657_v62 = vld [vmem:[%s6330_s13] sm:$0xff] }
0x1381   :  { %v3506_v45 = vsub.f32 %v3491_v57, %v3503_v56  ;;  %v3511_v24 = vsel %vm124_vm1, %v3508_v61, 0.0 }
0x1382   :  { %3512 = vadd.xlane.f32.xlu0 %v3511_v24 }
0x1383   :  { %v3501_v2 = vpop.xlane.xlu1 %3500  ;;  %v3509_v48 = vmul.f32 %v3506_v45, %v3506_v45 }
0x1384   :  { %v3504_v0 = vmul.f32 0.03125, %v3501_v2 }
0x1385   :  { %v3514_v58 = vsel %vm124_vm1, %v3509_v48, 0.0 }
0x1386   :  { %v3507_v1 = vsub.f32 %v3492_v49, %v3504_v0  ;;  %3515 = vadd.xlane.f32.xlu1 %v3514_v58  ;;  %v3914_v49 = vld [vmem:[%s6329_s12] ss:$0 sm:$0xff]  ;;  %s5059_s12 = smov [#allocation2]  }
0x1387   :  { %s3714_s13 = sshll.u32 %s5059_s12, 4  ;;  %s3715_s13 = int_to_ptr.vmem [resolvable:$true] %s3714_s13 }
0x1388   :  { %v3510_v8 = vmul.f32 %v3507_v1, %v3507_v1  ;;  %s5012_s24 = scalar_lea.vmem %s3715_s13, 256  ;;  %p5017_p1 = scmp.lt.s32.totalorder %s3715_s13, %s3715_s13 }
0x1389   :  { %p5013_p0 = scmp.ne.s32.totalorder %s3715_s13, %s5012_s24  ;;  %p5018_p2 = scmp.lt.s32.totalorder %s5012_s24, %s5012_s24 }
0x138a   :  { %v3517_v4 = vsel %vm1505_vm9, %v3510_v8, 0.0 }
0x138b   :  { %3518 = vadd.xlane.f32.xlu0 %v3517_v4  ;;  %p5019_p3 = por %p5018_p2, %p5017_p1 }
0x138d   :  { %p5020_p4 = pnand %p5019_p3, %p5013_p0 }
0x1397   :  { %3667 = vperm.xlu1 %4882, %v3661_v19  }
0x13a1   :  { %3672 = vperm.xlu0 %4883, %v3662_v3  }
0x13c0   :  { %3694 = vadd.xlane.f32.xlu0 %v3693_v17 }
0x140f   :  { %v3513_v32 = vpop.xlane.xlu0 %3512 }
0x1410   :  { %v3520_v21 = vmul.f32 0.03125, %v3513_v32 }
0x1412   :  { %v3523_v15 = vadd.f32 1e-05, %v3520_v21 }
0x1413   :  { %v3516_v22 = vpop.xlane.xlu1 %3515 }
0x1414   :  { %4998 = vrsqrt.f32 %v3523_v15  ;;  %v3521_v27 = vmul.f32 0.03125, %v3516_v22 }
0x1416   :  { %v3524_v29 = vadd.f32 1e-05, %v3521_v27 }
0x1417   :  { %v3668_v48 = vpop.permute.xlu1 %3667 }
0x1418   :  { %5000 = vrsqrt.f32 %v3524_v29  ;;  %v3519_v53 = vpop.xlane.xlu0 %3518 }
0x1419   :  { %v3522_v20 = vmul.f32 0.03125, %v3519_v53 }
0x141b   :  { %v3525_v28 = vadd.f32 1e-05, %v3522_v20 }
0x141d   :  { %5002 = vrsqrt.f32 %v3525_v28 }
0x141e   :  { %v4999_v23 = vpop.eup %4998 }
0x141f   :  { %v3529_v10 = vmul.f32 %v4999_v23, %v3505_v51 }
0x1420   :  { %v3673_v24 = vpop.permute.xlu0 %3672 }
0x1421   :  { %v3538_v42 = vmul.f32 %v3912_v34, %v3529_v10 }
0x1422   :  { %v5001_v16 = vpop.eup %5000 }
0x1423   :  { %v3530_v5 = vmul.f32 %v5001_v16, %v3506_v45  ;;  %v3547_v39 = vadd.f32 %v3913_v38, %v3538_v42 }
0x1425   :  { %v3539_v26 = vmul.f32 %v3912_v34, %v3530_v5  ;;  %v3550_v47 = vadd.f32 %v5009_v36, %v3547_v39 }
0x1427   :  { %v5003_v18 = vpop.eup %5002  ;;  %v3548_v35 = vadd.f32 %v3913_v38, %v3539_v26  ;;  %v3556_v52 = vrot.slane %v3550_v47, 1 }
0x1428   :  { %v3531_v50 = vmul.f32 %v5003_v18, %v3507_v1 }
0x1429   :  { %v3551_v46 = vadd.f32 %v5010_v40, %v3548_v35 }
0x142a   :  { %v3540_v44 = vmul.f32 %v3912_v34, %v3531_v50 }
0x142b   :  { %v3557_v33 = vrot.slane %v3551_v46, 1  ;;  %v3561_v31 = vrot.slane %v3551_v46, 2 }
0x142c   :  { %v3549_v37 = vadd.f32 %v3913_v38, %v3540_v44 }
0x142d   :  { %v3558_v54 = vsel %vm3555_vm0, %v3556_v52, %v3557_v33 }
0x142e   :  { %4627 = vmatprep.mubr.msk.f32.mxu1 %vm124_vm1, %v3558_v54  ;;  %v3552_v30 = vadd.f32 %v5011_v55, %v3549_v37 }
0x1430   :  { %v3562_v57 = vrot.slane %v3552_v30, 2 }
0x1432   :  { %v3563_v41 = vsel %vm3560_vm2, %v3561_v31, %v3562_v57 }
0x1433   :  { %4628 = vmatmul.mubr.msk.f32.vlgmr.msra.gmra.mrb[84].mxu1 %vm124_vm1, %v3563_v41 }
0x144d   :  { %v3695_v7 = vpop.xlane.xlu0 %3694 }
0x144e   :  { %v3696_v12 = vrot.slane %v3695_v7, 4 }
0x1450   :  { %v3697_v13 = vadd.f32 %v3696_v12, %v3695_v7 }
0x1452   :  { %v3698_v9 = vrot.slane %v3697_v13, 2 }
0x1506   :  { %v4629_v60 = vpop.f32.mrb[84].mxu1 }
0x1507   :  { %v3651_v59 = vadd.f32 %v4629_v60, %v3914_v49  ;;  %v3645_v51 = vpop.f32.mrb[85].mxu1 }
0x1508   :  { %v3646_v56 = vadd.f32 %v3914_v49, %v3645_v51 }
0x1509   :  { %3656 = vst.msk [vmem:[#allocation2 + $0x8] sm:$0xff] %vm3654_vm10, %v3651_v59  ;;  %v3660_v61 = vsub.f32 %v3651_v59, %v3658_v25 }
0x150a   :  { %3655 = vst.msk [vmem:[#allocation2] sm:$0xff] %vm3654_vm10, %v3646_v56  ;;  %v3659_v45 = vsub.f32 %v3646_v56, %v3657_v62 }
0x150b   :  { %v3664_v2 = vmul.f32 %v3660_v61, %v3660_v61 }
0x150c   :  { %v3663_v0 = vmul.f32 %v3659_v45, %v3659_v45 }
0x150d   :  { %v3676_v58 = vmul.f32 %v3673_v24, %v3664_v2 }
0x150e   :  { %v3675_v1 = vmul.f32 %v3668_v48, %v3663_v0 }
0x150f   :  { %v3678_v8 = vsel %vm3654_vm10, %v3676_v58, 0.0 }
0x1510   :  { %v3677_v4 = vsel %vm3654_vm10, %v3675_v1, 0.0 }
0x1511   :  { %v3679_v63 = vadd.f32 %v3678_v8, %v3677_v4 }
0x1513   :  { %3680 = vadd.xlane.f32.xlu1 %v3679_v63 }
0x15a0   :  { %v3681_v14 = vpop.xlane.xlu1 %3680 }
0x15a1   :  { %v3682_v3 = vrot.slane %v3681_v14, 4 }
0x15a2   :  { %5023 = shalt.err (!%p5020_p4)
}
0x15a3   :  { %s5024_s27 = scalar_lea.hbm %s6332_s15, 256 }
0x15a4   :  { %p5025_p5 = scmp.ne.s32.totalorder %s6332_s15, %s5024_s27  ;;  %p5028_p6 = scmp.lt.u32.totalorder %s5024_s27, %s6332_s15 }
0x15a6   :  { %p5030_p7 = pnand %p5028_p6, %p5025_p5 }
0x15a8   :  { %5033 = shalt.err (!%p5030_p7)
}
0x15a9   :  { %s5060_s4 = smov 128   ;;  %v3683_v19 = vadd.f32 %v3682_v3, %v3681_v14  ;;  %v3699_v11 = vadd.f32 %v3698_v9, %v3697_v13  ;;  %s5034_s2 = scalar_lea.hbm %s6333_s16, 16 }
0x15aa   :  { %3720 = dma.vmem_to_hbm [thread:$0]  %s3715_s13, 256, %s6332_s15, [#allocation3], %s5060_s4, %s5060_s4, %s5055_s17  }
0x15ab   :  { %v3684_v32 = vrot.slane %v3683_v19, 2  ;;  %v3700_v15 = vrot.slane %v3699_v11, 1  ;;  %p5035_p8 = scmp.ne.s32.totalorder %s6333_s16, %s5034_s2  ;;  %p5038_p9 = scmp.lt.u32.totalorder %s5034_s2, %s6333_s16 }
0x15ad   :  { %v3685_v21 = vadd.f32 %v3684_v32, %v3683_v19  ;;  %v3701_v29 = vadd.f32 %v3700_v15, %v3699_v11  ;;  %p5040_p10 = pnand %p5038_p9, %p5035_p8 }
0x15af   :  { %v3686_v22 = vrot.slane %v3685_v21, 1 }
0x15b1   :  { %v3687_v27 = vadd.f32 %v3686_v22, %v3685_v21 }
0x15b3   :  { %4802 = vpush %v3687_v27 }
0x15b4   :  { %4804 = vpush %v3701_v29 }
0x15e4   :  { %s4803_s14 = spop %4802 }
0x15e5   :  { %s4805_s22 = spop %4804  ;;  %s3689_s23 = smul.f32 0.015625, %s4803_s14 }
0x15e6   :  { %v3703_v53 = vstv %s4805_s22 }
0x15e7   :  { %5004 = vrcp.f32 %v3703_v53 }
0x15f1   :  { %v5005_v20 = vpop.eup %5004 }
0x15f2   :  { %4806 = vpush %v5005_v20 }
0x1623   :  { %s4807_s5 = spop %4806 }
0x1624   :  { %s3706_s30 = smul.f32 %s4807_s5, %s3689_s23 }
0x1626   :  { %3708 = sst [smem:[#allocation5]] %s3706_s30 }
0x1627   :  { %5043 = shalt.err (!%p5040_p10)
}
0x1628   :  { %s5061_s7 = smov [#allocation5]  }
0x1629   :  { %3728 = dma.smem_to_hbm %s5061_s7, 16, %s6333_s16, [#allocation4]  }
0x162a   :  { %5044 = dma.done.wait [#allocation3], 256  }
0x162b   :  { %5045 = vsyncadd [#allocation3], 4294967040 }
0x162c   :  { %5046 = dma.done.wait [#allocation4], 16  }
0x162d   :  { %5047 = vsyncadd [#allocation4], 4294967280 }
0x162e   :  { %3735 = sfence }
0x162f   :  { %3736 = vsyncpa [#allocation3], 1 }
0x1630   :  { %3737 = vsyncpa [#allocation4], 1 }

</bundles_post_ra>
